<compile_context>
chip_gen: v6e
topology: v6e:2x2x1
jax: 0.10.0
libtpu: 0.0.40
codegen_flags: <defaults>
</compile_context>

<pallas_src>
import functools

import jax
import jax.numpy as jnp
from jax.experimental import pallas as pl
from jax.experimental.pallas import tpu as pltpu

IMAGENET_MEAN = jnp.array([0.485, 0.456, 0.406], jnp.float32)
IMAGENET_STD = jnp.array([0.229, 0.224, 0.225], jnp.float32)

_LANE = 128   # channel dims padded to a multiple of the 128-lane axis (lane-dense stores)
_SUB = 8      # sublane granularity: row tiles / halo blocks are multiples of 8 rows


def _round_up(x, m):
    return (x + m - 1) // m * m


def _pick_tile_rows(h, max_rows=256):
    """Largest multiple-of-8 divisor of h that is <= max_rows (row-tile height)."""
    best = _SUB
    for cand in range(_SUB, min(h, max_rows) + 1, _SUB):
        if h % cand == 0:
            best = cand
    return best


# ------------------------------------------------------------------ fused conv3x3 + ReLU + L1
def _fused_conv3x3_l1_kernel(x_ref, xu_ref, xd_ref, g_ref, gu_ref, gd_ref,
                             w_ref, b_ref, xo_ref, go_ref, l1_ref, *, th, w, cp, cpo):
    """One (batch, row-tile) block: 3x3 'SAME' conv + bias for BOTH streams in a single
    MXU matmul, per-block L1 partial of the pre-ReLU features, ReLU outputs for next layer.

    x_ref/g_ref:   (1, th, w, cp)    row tile of each stream
    xu_/gu_/xd_/gd_ref: (1, 8, w, cp) halo blocks just above / below the tile (clamped)
    w_ref:         (9*cp, cpo)       im2col-reshaped weights, rows ordered (dy, dx, cin)
    b_ref:         (1, cpo)
    xo_/go_ref:    (1, th, w, cpo)   ReLU activations (lane-dense, cpo % 128 == 0)
    l1_ref:        (1, 1, 8, 128)    partial sum of |conv_x - conv_gt| (broadcast-filled)
    """
    ht = pl.program_id(1)
    is_first = ht == 0
    is_last = ht == pl.num_programs(1) - 1
    col = jax.lax.broadcasted_iota(jnp.int32, (1, w, 1), 1)

    def im2col(mid_ref, up_ref, dn_ref):
        mid = mid_ref[0]                                                  # (th, w, cp)
        top = jnp.where(is_first, 0.0, up_ref[0, _SUB - 1:_SUB, :, :])    # zero pad at image top
        bot = jnp.where(is_last, 0.0, dn_ref[0, 0:1, :, :])               # zero pad at image bottom
        ext = jnp.concatenate([top, mid, bot], axis=0)                    # (th+2, w, cp)
        # dx-shifted taps: XLU sublane rotation + wrap-column masking (no misaligned slices).
        left = jnp.where(col == 0, 0.0, pltpu.roll(ext, shift=1, axis=1))        # input col w-1
        right = jnp.where(col == w - 1, 0.0, pltpu.roll(ext, shift=w - 1, axis=1))  # input col w+1
        taps = []
        for dy in range(3):                       # input row = out_row + dy - 1
            for tap in (left, ext, right):        # dx = 0, 1, 2 -> matches weight row order
                taps.append(tap[dy:dy + th])      # leading-axis slice: free
        patches = jnp.concatenate(taps, axis=-1)  # (th, w, 9*cp), lane-aligned concat
        return patches.reshape(th * w, 9 * cp)

    px = im2col(x_ref, xu_ref, xd_ref)
    pg = im2col(g_ref, gu_ref, gd_ref)
    # Single MXU matmul for both streams: M = 2*th*w, K = 9*cp, N = cpo.
    both = jnp.concatenate([px, pg], axis=0)
    acc = jnp.dot(both, w_ref[...], preferred_element_type=jnp.float32) + b_ref[...]
    conv_x = acc[:th * w]
    conv_g = acc[th * w:]
    # Per-block partial L1 of pre-ReLU features (never written to HBM); padded channels are
    # exactly zero in both streams so they do not perturb the sum.
    l1_ref[...] = jnp.broadcast_to(jnp.sum(jnp.abs(conv_x - conv_g)), (1, 1, _SUB, _LANE))
    xo_ref[0] = jnp.maximum(conv_x, 0.0).reshape(th, w, cpo)
    go_ref[0] = jnp.maximum(conv_g, 0.0).reshape(th, w, cpo)


def conv3x3_relu_l1(x, gt, w9, b, *, tile_rows):
    """Fused layer for both streams.

    x, gt: (N, H, W, Cp) lane-padded activations (padded channels are zero).
    w9:    (9*Cp, Cpo) im2col weights;  b: (1, Cpo).
    Returns (x_relu, gt_relu, l1_sum) with l1_sum = sum |conv_x - conv_gt| over all elements.
    """
    n, h, w, cp = x.shape
    k9, cpo = w9.shape
    assert gt.shape == x.shape and k9 == 9 * cp and b.shape == (1, cpo)
    assert h % _SUB == 0 and w % _SUB == 0 and cp % _LANE == 0 and cpo % _LANE == 0
    th = tile_rows
    assert th % _SUB == 0 and h % th == 0
    n_h = h // th
    thb = th // _SUB        # tile height in 8-row blocks
    nb8 = h // _SUB         # number of 8-row blocks along H

    def mid_map(ni, hi):
        return (ni, hi, 0, 0)

    def up_map(ni, hi):     # 8-row block just above the tile (clamped; masked at image top)
        return (ni, jnp.maximum(hi * thb - 1, 0), 0, 0)

    def dn_map(ni, hi):     # 8-row block just below the tile (clamped; masked at image bottom)
        return (ni, jnp.minimum((hi + 1) * thb, nb8 - 1), 0, 0)

    mid_spec = pl.BlockSpec((1, th, w, cp), mid_map)
    up_spec = pl.BlockSpec((1, _SUB, w, cp), up_map)
    dn_spec = pl.BlockSpec((1, _SUB, w, cp), dn_map)
    out_spec = pl.BlockSpec((1, th, w, cpo), mid_map)

    kernel = functools.partial(_fused_conv3x3_l1_kernel, th=th, w=w, cp=cp, cpo=cpo)
    x_relu, g_relu, l1_part = pl.pallas_call(
        kernel,
        out_shape=(jax.ShapeDtypeStruct((n, h, w, cpo), jnp.float32),
                   jax.ShapeDtypeStruct((n, h, w, cpo), jnp.float32),
                   jax.ShapeDtypeStruct((n, n_h, _SUB, _LANE), jnp.float32)),
        grid_spec=pltpu.PrefetchScalarGridSpec(
            num_scalar_prefetch=0,
            grid=(n, n_h),
            in_specs=[mid_spec, up_spec, dn_spec,       # x stream: tile + halos
                      mid_spec, up_spec, dn_spec,       # gt stream: tile + halos
                      pl.BlockSpec((k9, cpo), lambda ni, hi: (0, 0)),
                      pl.BlockSpec((1, cpo), lambda ni, hi: (0, 0))],
            out_specs=[out_spec, out_spec,
                       pl.BlockSpec((1, 1, _SUB, _LANE), lambda ni, hi: (ni, hi, 0, 0))]),
        compiler_params=pltpu.CompilerParams(
            dimension_semantics=("parallel", "parallel"),
            vmem_limit_bytes=32 * 1024 * 1024),
    )(x, x, x, gt, gt, gt, w9, b)
    # Hierarchical reduction of per-(batch, row-tile) partials.
    return x_relu, g_relu, jnp.sum(l1_part[:, :, 0, 0])


# ------------------------------------------------------------------ VGG-style feature extractor
def init_vgg_params(key, layer_cfg):
    """layer_cfg: list of (name, cin, cout). Deterministic synthetic VGG-style weights.

    Returns per-layer dicts with the true-shape weights (reference path) and the lane-padded,
    im2col-reshaped weights consumed by the Pallas kernel.
    """
    # TODO(synk): the reference uses pretrained torchvision VGG19 weights; a checkpoint loader
    #             is out of scope here, so a deterministic synthetic conv stack is used.
    params = []
    for name, cin, cout in layer_cfg:
        key, kw, kb = jax.random.split(key, 3)
        w = jax.random.normal(kw, (3, 3, cin, cout), jnp.float32) / jnp.sqrt(9.0 * cin)
        b = 0.01 * jax.random.normal(kb, (cout,), jnp.float32)
        cpi, cpo = _round_up(cin, _LANE), _round_up(cout, _LANE)
        w_pad = jnp.zeros((3, 3, cpi, cpo), jnp.float32).at[:, :, :cin, :cout].set(w)
        b_pad = jnp.zeros((1, cpo), jnp.float32).at[0, :cout].set(b)
        params.append(dict(name=name, cin=cin, cout=cout, w=w, b=b,
                           w9=w_pad.reshape(9 * cpi, cpo), b_pad=b_pad))
    return params


def _preprocess(img_nchw, use_input_norm, range_norm):
    """NCHW -> NHWC, optional [-1,1]->[0,1] + ImageNet norm, zero-pad channels to 128."""
    x = jnp.transpose(img_nchw, (0, 2, 3, 1)).astype(jnp.float32)
    if range_norm:
        x = (x + 1.0) * 0.5
    if use_input_norm:
        x = (x - IMAGENET_MEAN) / IMAGENET_STD
    c = x.shape[-1]
    return jnp.pad(x, ((0, 0), (0, 0), (0, 0), (0, _round_up(c, _LANE) - c)))


# ------------------------------------------------------------------ PerceptualLoss
class PerceptualLossPallas:
    def __init__(self, layer_weights, params, vgg_type='vgg19', use_input_norm=True,
                 range_norm=True, perceptual_weight=1.0, style_weight=0.0, criterion='l1',
                 tile_rows=None):
        assert criterion == 'l1', "only the default 'l1' criterion is implemented"
        # TODO(synk): style (Gram-matrix) branch not implemented; default style_weight=0.0
        #             makes style_loss None, matching the reference module defaults.
        assert style_weight == 0.0, "style loss branch not implemented"
        self.layer_weights = layer_weights
        self.params = params
        self.vgg_type = vgg_type
        self.use_input_norm = use_input_norm
        self.range_norm = range_norm
        self.perceptual_weight = perceptual_weight
        self.style_weight = style_weight
        self.tile_rows = tile_rows

    def __call__(self, x, gt):
        style_loss = None
        if self.perceptual_weight <= 0:
            return None, style_loss
        xs = _preprocess(x, self.use_input_norm, self.range_norm)
        gs = _preprocess(jax.lax.stop_gradient(gt), self.use_input_norm, self.range_norm)
        n, h, w = xs.shape[0], xs.shape[1], xs.shape[2]
        th = self.tile_rows if self.tile_rows is not None else _pick_tile_rows(h)
        percep_loss = jnp.float32(0.0)
        for p in self.params:
            xs, gs, l1_sum = conv3x3_relu_l1(xs, gs, p['w9'], p['b_pad'], tile_rows=th)
            if p['name'] in self.layer_weights:
                mean_l1 = l1_sum / jnp.float32(n * h * w * p['cout'])  # true element count
                percep_loss = percep_loss + mean_l1 * self.layer_weights[p['name']]
        return percep_loss * self.perceptual_weight, style_loss


# ------------------------------------------------------------------ pure-JAX reference (check)
def reference_perceptual_loss(x, gt, params, layer_weights, use_input_norm, range_norm,
                              perceptual_weight):
    def feats(img):
        h = jnp.transpose(img, (0, 2, 3, 1)).astype(jnp.float32)
        if range_norm:
            h = (h + 1.0) * 0.5
        if use_input_norm:
            h = (h - IMAGENET_MEAN) / IMAGENET_STD
        out = {}
        for p in params:
            c = jax.lax.conv_general_dilated(
                h, p['w'], window_strides=(1, 1), padding='SAME',
                dimension_numbers=('NHWC', 'HWIO', 'NHWC'),
                precision=jax.lax.Precision.HIGHEST) + p['b'].reshape(1, 1, 1, -1)
            out[p['name']] = c
            h = jnp.maximum(c, 0.0)
        return out

    xf, gf = feats(x), feats(jax.lax.stop_gradient(gt))
    loss = jnp.float32(0.0)
    for k, wgt in layer_weights.items():
        loss = loss + jnp.mean(jnp.abs(xf[k] - gf[k])) * wgt
    return loss * perceptual_weight


# ------------------------------------------------------------------ main
if __name__ == "__main__":
    key = jax.random.PRNGKey(0)
    kx, kg, kp = jax.random.split(key, 3)

    N, C, H, W = 2, 3, 16, 16          # PyTorch-style NCHW inputs in [-1, 1]
    x = jax.random.uniform(kx, (N, C, H, W), jnp.float32, minval=-1.0, maxval=1.0)
    gt = jax.random.uniform(kg, (N, C, H, W), jnp.float32, minval=-1.0, maxval=1.0)

    # Synthetic mini-VGG: two 3x3 conv layers ("conv1_1": 3->16, "conv1_2": 16->32).
    layer_cfg = [("conv1_1", 3, 16), ("conv1_2", 16, 32)]
    params = init_vgg_params(kp, layer_cfg)
    layer_weights = {"conv1_1": 0.5, "conv1_2": 1.0}

    loss_fn = PerceptualLossPallas(layer_weights, params,
                                   use_input_norm=True, range_norm=True,
                                   perceptual_weight=1.0, style_weight=0.0,
                                   criterion='l1',
                                   tile_rows=8)   # 2 row-tiles -> exercises the halo path
    percep_loss, style_loss = loss_fn(x, gt)
    jax.block_until_ready(percep_loss)
    assert style_loss is None
    assert jnp.isfinite(percep_loss)

    # Numerical check against a pure-JAX reference of the same forward pass.
    ref = reference_perceptual_loss(x, gt, params, layer_weights,
                                    use_input_norm=True, range_norm=True,
                                    perceptual_weight=1.0)
    assert jnp.allclose(percep_loss, ref, rtol=1e-2, atol=1e-3)
    print("KERNEL_OK")
</pallas_src>

<mosaic_0001>
module attributes {stable_mosaic.version = 11 : i64} {
  func.func @_fused_conv3x3_l1_kernel(%arg0: i32, %arg1: i32, %arg2: memref<1x8x16x128xf32, #tpu.memory_space<vmem>>, %arg3: memref<1x8x16x128xf32, #tpu.memory_space<vmem>>, %arg4: memref<1x8x16x128xf32, #tpu.memory_space<vmem>>, %arg5: memref<1x8x16x128xf32, #tpu.memory_space<vmem>>, %arg6: memref<1x8x16x128xf32, #tpu.memory_space<vmem>>, %arg7: memref<1x8x16x128xf32, #tpu.memory_space<vmem>>, %arg8: memref<1152x128xf32, #tpu.memory_space<vmem>>, %arg9: memref<1x128xf32, #tpu.memory_space<vmem>>, %arg10: memref<1x8x16x128xf32, #tpu.memory_space<vmem>>, %arg11: memref<1x8x16x128xf32, #tpu.memory_space<vmem>>, %arg12: memref<1x1x8x128xf32, #tpu.memory_space<vmem>>) attributes {dimension_semantics = [#tpu.dimension_semantics<parallel>, #tpu.dimension_semantics<parallel>], iteration_bounds = array<i64: 2, 2>, scalar_prefetch = 0 : i64, scratch_operands = 0 : i64, tpu.core_type = #tpu.core_type<tc>, window_params = [{transform_indices = @transform_0, window_bounds = array<i64: 1, 8, 16, 128>}, {transform_indices = @transform_1, window_bounds = array<i64: 1, 8, 16, 128>}, {transform_indices = @transform_2, window_bounds = array<i64: 1, 8, 16, 128>}, {transform_indices = @transform_3, window_bounds = array<i64: 1, 8, 16, 128>}, {transform_indices = @transform_4, window_bounds = array<i64: 1, 8, 16, 128>}, {transform_indices = @transform_5, window_bounds = array<i64: 1, 8, 16, 128>}, {pipeline_mode = #tpu.pipeline_mode<synchronous>, transform_indices = @transform_6, window_bounds = array<i64: 1152, 128>}, {pipeline_mode = #tpu.pipeline_mode<synchronous>, transform_indices = @transform_7, window_bounds = array<i64: 1, 128>}, {transform_indices = @transform_8, window_bounds = array<i64: 1, 8, 16, 128>}, {transform_indices = @transform_9, window_bounds = array<i64: 1, 8, 16, 128>}, {transform_indices = @transform_10, window_bounds = array<i64: 1, 1, 8, 128>}]} {
    %c0_i32 = arith.constant 0 : i32
    %0 = arith.cmpi eq, %arg1, %c0_i32 : i32
    %c1_i32 = arith.constant 1 : i32
    %1 = arith.cmpi eq, %arg1, %c1_i32 : i32
    %2 = tpu.iota {dimensions = array<i32: 1>} : vector<1x16x1xi32>
    %c0 = arith.constant 0 : index
    %c0_0 = arith.constant 0 : index
    %c0_1 = arith.constant 0 : index
    %c0_2 = arith.constant 0 : index
    %3 = vector.load %arg2[%c0, %c0_0, %c0_1, %c0_2] : memref<1x8x16x128xf32, #tpu.memory_space<vmem>>, vector<1x8x16x128xf32>
    %4 = vector.shape_cast %3 : vector<1x8x16x128xf32> to vector<8x16x128xf32>
    %c0_3 = arith.constant 0 : index
    %c7 = arith.constant 7 : index
    %c0_4 = arith.constant 0 : index
    %c0_5 = arith.constant 0 : index
    %5 = vector.load %arg3[%c0_3, %c7, %c0_4, %c0_5] : memref<1x8x16x128xf32, #tpu.memory_space<vmem>>, vector<1x1x16x128xf32>
    %6 = vector.shape_cast %5 : vector<1x1x16x128xf32> to vector<1x16x128xf32>
    %cst = arith.constant 0.000000e+00 : f32
    %7 = vector.broadcast %cst : f32 to vector<1x16x128xf32>
    %8 = arith.select %0, %7, %6 : vector<1x16x128xf32>
    %c0_6 = arith.constant 0 : index
    %c0_7 = arith.constant 0 : index
    %c0_8 = arith.constant 0 : index
    %c0_9 = arith.constant 0 : index
    %9 = vector.load %arg4[%c0_6, %c0_7, %c0_8, %c0_9] : memref<1x8x16x128xf32, #tpu.memory_space<vmem>>, vector<1x1x16x128xf32>
    %10 = vector.shape_cast %9 : vector<1x1x16x128xf32> to vector<1x16x128xf32>
    %cst_10 = arith.constant 0.000000e+00 : f32
    %11 = vector.broadcast %cst_10 : f32 to vector<1x16x128xf32>
    %12 = arith.select %1, %11, %10 : vector<1x16x128xf32>
    %13 = tpu.concatenate %8, %4, %12 in 0 : vector<1x16x128xf32>, vector<8x16x128xf32>, vector<1x16x128xf32> -> vector<10x16x128xf32>
    %c0_i32_11 = arith.constant 0 : i32
    %14 = vector.broadcast %c0_i32_11 : i32 to vector<1x16x1xi32>
    %15 = arith.cmpi eq, %2, %14 : vector<1x16x1xi32>
    %c1_i32_12 = arith.constant 1 : i32
    %16 = tpu.dynamic_rotate %13 by %c1_i32_12 dim 1 : vector<10x16x128xf32>, i32 -> vector<10x16x128xf32>
    %cst_13 = arith.constant 0.000000e+00 : f32
    %17 = vector.shape_cast %15 : vector<1x16x1xi1> to vector<1x16x1xi1>
    %18 = vector.broadcast %17 : vector<1x16x1xi1> to vector<10x16x128xi1>
    %19 = vector.broadcast %cst_13 : f32 to vector<10x16x128xf32>
    %20 = arith.select %18, %19, %16 : vector<10x16x128xi1>, vector<10x16x128xf32>
    %c15_i32 = arith.constant 15 : i32
    %21 = vector.broadcast %c15_i32 : i32 to vector<1x16x1xi32>
    %22 = arith.cmpi eq, %2, %21 : vector<1x16x1xi32>
    %c15_i32_14 = arith.constant 15 : i32
    %23 = tpu.dynamic_rotate %13 by %c15_i32_14 dim 1 : vector<10x16x128xf32>, i32 -> vector<10x16x128xf32>
    %cst_15 = arith.constant 0.000000e+00 : f32
    %24 = vector.shape_cast %22 : vector<1x16x1xi1> to vector<1x16x1xi1>
    %25 = vector.broadcast %24 : vector<1x16x1xi1> to vector<10x16x128xi1>
    %26 = vector.broadcast %cst_15 : f32 to vector<10x16x128xf32>
    %27 = arith.select %25, %26, %23 : vector<10x16x128xi1>, vector<10x16x128xf32>
    %28 = vector.extract_strided_slice %20 {offsets = [0, 0, 0], sizes = [8, 16, 128], strides = [1, 1, 1]} : vector<10x16x128xf32> to vector<8x16x128xf32>
    %29 = vector.extract_strided_slice %13 {offsets = [0, 0, 0], sizes = [8, 16, 128], strides = [1, 1, 1]} : vector<10x16x128xf32> to vector<8x16x128xf32>
    %30 = vector.extract_strided_slice %27 {offsets = [0, 0, 0], sizes = [8, 16, 128], strides = [1, 1, 1]} : vector<10x16x128xf32> to vector<8x16x128xf32>
    %31 = vector.extract_strided_slice %20 {offsets = [1, 0, 0], sizes = [8, 16, 128], strides = [1, 1, 1]} : vector<10x16x128xf32> to vector<8x16x128xf32>
    %32 = vector.extract_strided_slice %13 {offsets = [1, 0, 0], sizes = [8, 16, 128], strides = [1, 1, 1]} : vector<10x16x128xf32> to vector<8x16x128xf32>
    %33 = vector.extract_strided_slice %27 {offsets = [1, 0, 0], sizes = [8, 16, 128], strides = [1, 1, 1]} : vector<10x16x128xf32> to vector<8x16x128xf32>
    %34 = vector.extract_strided_slice %20 {offsets = [2, 0, 0], sizes = [8, 16, 128], strides = [1, 1, 1]} : vector<10x16x128xf32> to vector<8x16x128xf32>
    %35 = vector.extract_strided_slice %13 {offsets = [2, 0, 0], sizes = [8, 16, 128], strides = [1, 1, 1]} : vector<10x16x128xf32> to vector<8x16x128xf32>
    %36 = vector.extract_strided_slice %27 {offsets = [2, 0, 0], sizes = [8, 16, 128], strides = [1, 1, 1]} : vector<10x16x128xf32> to vector<8x16x128xf32>
    %37 = tpu.concatenate %28, %29, %30, %31, %32, %33, %34, %35, %36 in 2 : vector<8x16x128xf32>, vector<8x16x128xf32>, vector<8x16x128xf32>, vector<8x16x128xf32>, vector<8x16x128xf32>, vector<8x16x128xf32>, vector<8x16x128xf32>, vector<8x16x128xf32>, vector<8x16x128xf32> -> vector<8x16x1152xf32>
    %38 = vector.shape_cast %37 : vector<8x16x1152xf32> to vector<128x1152xf32>
    %c0_16 = arith.constant 0 : index
    %c0_17 = arith.constant 0 : index
    %c0_18 = arith.constant 0 : index
    %c0_19 = arith.constant 0 : index
    %39 = vector.load %arg5[%c0_16, %c0_17, %c0_18, %c0_19] : memref<1x8x16x128xf32, #tpu.memory_space<vmem>>, vector<1x8x16x128xf32>
    %40 = vector.shape_cast %39 : vector<1x8x16x128xf32> to vector<8x16x128xf32>
    %c0_20 = arith.constant 0 : index
    %c7_21 = arith.constant 7 : index
    %c0_22 = arith.constant 0 : index
    %c0_23 = arith.constant 0 : index
    %41 = vector.load %arg6[%c0_20, %c7_21, %c0_22, %c0_23] : memref<1x8x16x128xf32, #tpu.memory_space<vmem>>, vector<1x1x16x128xf32>
    %42 = vector.shape_cast %41 : vector<1x1x16x128xf32> to vector<1x16x128xf32>
    %cst_24 = arith.constant 0.000000e+00 : f32
    %43 = vector.broadcast %cst_24 : f32 to vector<1x16x128xf32>
    %44 = arith.select %0, %43, %42 : vector<1x16x128xf32>
    %c0_25 = arith.constant 0 : index
    %c0_26 = arith.constant 0 : index
    %c0_27 = arith.constant 0 : index
    %c0_28 = arith.constant 0 : index
    %45 = vector.load %arg7[%c0_25, %c0_26, %c0_27, %c0_28] : memref<1x8x16x128xf32, #tpu.memory_space<vmem>>, vector<1x1x16x128xf32>
    %46 = vector.shape_cast %45 : vector<1x1x16x128xf32> to vector<1x16x128xf32>
    %cst_29 = arith.constant 0.000000e+00 : f32
    %47 = vector.broadcast %cst_29 : f32 to vector<1x16x128xf32>
    %48 = arith.select %1, %47, %46 : vector<1x16x128xf32>
    %49 = tpu.concatenate %44, %40, %48 in 0 : vector<1x16x128xf32>, vector<8x16x128xf32>, vector<1x16x128xf32> -> vector<10x16x128xf32>
    %c0_i32_30 = arith.constant 0 : i32
    %50 = vector.broadcast %c0_i32_30 : i32 to vector<1x16x1xi32>
    %51 = arith.cmpi eq, %2, %50 : vector<1x16x1xi32>
    %c1_i32_31 = arith.constant 1 : i32
    %52 = tpu.dynamic_rotate %49 by %c1_i32_31 dim 1 : vector<10x16x128xf32>, i32 -> vector<10x16x128xf32>
    %cst_32 = arith.constant 0.000000e+00 : f32
    %53 = vector.shape_cast %51 : vector<1x16x1xi1> to vector<1x16x1xi1>
    %54 = vector.broadcast %53 : vector<1x16x1xi1> to vector<10x16x128xi1>
    %55 = vector.broadcast %cst_32 : f32 to vector<10x16x128xf32>
    %56 = arith.select %54, %55, %52 : vector<10x16x128xi1>, vector<10x16x128xf32>
    %c15_i32_33 = arith.constant 15 : i32
    %57 = vector.broadcast %c15_i32_33 : i32 to vector<1x16x1xi32>
    %58 = arith.cmpi eq, %2, %57 : vector<1x16x1xi32>
    %c15_i32_34 = arith.constant 15 : i32
    %59 = tpu.dynamic_rotate %49 by %c15_i32_34 dim 1 : vector<10x16x128xf32>, i32 -> vector<10x16x128xf32>
    %cst_35 = arith.constant 0.000000e+00 : f32
    %60 = vector.shape_cast %58 : vector<1x16x1xi1> to vector<1x16x1xi1>
    %61 = vector.broadcast %60 : vector<1x16x1xi1> to vector<10x16x128xi1>
    %62 = vector.broadcast %cst_35 : f32 to vector<10x16x128xf32>
    %63 = arith.select %61, %62, %59 : vector<10x16x128xi1>, vector<10x16x128xf32>
    %64 = vector.extract_strided_slice %56 {offsets = [0, 0, 0], sizes = [8, 16, 128], strides = [1, 1, 1]} : vector<10x16x128xf32> to vector<8x16x128xf32>
    %65 = vector.extract_strided_slice %49 {offsets = [0, 0, 0], sizes = [8, 16, 128], strides = [1, 1, 1]} : vector<10x16x128xf32> to vector<8x16x128xf32>
    %66 = vector.extract_strided_slice %63 {offsets = [0, 0, 0], sizes = [8, 16, 128], strides = [1, 1, 1]} : vector<10x16x128xf32> to vector<8x16x128xf32>
    %67 = vector.extract_strided_slice %56 {offsets = [1, 0, 0], sizes = [8, 16, 128], strides = [1, 1, 1]} : vector<10x16x128xf32> to vector<8x16x128xf32>
    %68 = vector.extract_strided_slice %49 {offsets = [1, 0, 0], sizes = [8, 16, 128], strides = [1, 1, 1]} : vector<10x16x128xf32> to vector<8x16x128xf32>
    %69 = vector.extract_strided_slice %63 {offsets = [1, 0, 0], sizes = [8, 16, 128], strides = [1, 1, 1]} : vector<10x16x128xf32> to vector<8x16x128xf32>
    %70 = vector.extract_strided_slice %56 {offsets = [2, 0, 0], sizes = [8, 16, 128], strides = [1, 1, 1]} : vector<10x16x128xf32> to vector<8x16x128xf32>
    %71 = vector.extract_strided_slice %49 {offsets = [2, 0, 0], sizes = [8, 16, 128], strides = [1, 1, 1]} : vector<10x16x128xf32> to vector<8x16x128xf32>
    %72 = vector.extract_strided_slice %63 {offsets = [2, 0, 0], sizes = [8, 16, 128], strides = [1, 1, 1]} : vector<10x16x128xf32> to vector<8x16x128xf32>
    %73 = tpu.concatenate %64, %65, %66, %67, %68, %69, %70, %71, %72 in 2 : vector<8x16x128xf32>, vector<8x16x128xf32>, vector<8x16x128xf32>, vector<8x16x128xf32>, vector<8x16x128xf32>, vector<8x16x128xf32>, vector<8x16x128xf32>, vector<8x16x128xf32>, vector<8x16x128xf32> -> vector<8x16x1152xf32>
    %74 = vector.shape_cast %73 : vector<8x16x1152xf32> to vector<128x1152xf32>
    %75 = tpu.concatenate %38, %74 in 0 : vector<128x1152xf32>, vector<128x1152xf32> -> vector<256x1152xf32>
    %c0_36 = arith.constant 0 : index
    %c0_37 = arith.constant 0 : index
    %76 = vector.load %arg8[%c0_36, %c0_37] : memref<1152x128xf32, #tpu.memory_space<vmem>>, vector<1152x128xf32>
    %cst_38 = arith.constant dense<0.000000e+00> : vector<256x128xf32>
    %77 = tpu.matmul %75, %76, %cst_38 {dimension_numbers = #tpu.dot_dimension_numbers<[1], [0], [0], [1], [0, 0, 1, 1], [], []>} : vector<256x1152xf32>, vector<1152x128xf32>, vector<256x128xf32> -> vector<256x128xf32>
    %c0_39 = arith.constant 0 : index
    %c0_40 = arith.constant 0 : index
    %78 = vector.load %arg9[%c0_39, %c0_40] : memref<1x128xf32, #tpu.memory_space<vmem>>, vector<1x128xf32>
    %79 = vector.broadcast %78 : vector<1x128xf32> to vector<256x128xf32>
    %80 = arith.addf %77, %79 : vector<256x128xf32>
    %81 = vector.extract_strided_slice %80 {offsets = [0, 0], sizes = [128, 128], strides = [1, 1]} : vector<256x128xf32> to vector<128x128xf32>
    %82 = vector.extract_strided_slice %80 {offsets = [128, 0], sizes = [128, 128], strides = [1, 1]} : vector<256x128xf32> to vector<128x128xf32>
    %83 = arith.subf %81, %82 : vector<128x128xf32>
    %84 = math.absf %83 : vector<128x128xf32>
    %85 = vector.shape_cast %84 : vector<128x128xf32> to vector<1x128x128xf32>
    %cst_41 = arith.constant dense<0.000000e+00> : vector<1xf32>
    %86 = vector.multi_reduction <add>, %85, %cst_41 [1, 2] : vector<1x128x128xf32> to vector<1xf32>
    %87 = vector.shape_cast %86 : vector<1xf32> to vector<1x1x1xf32>
    %88 = vector.extract %87[0, 0, 0] : f32 from vector<1x1x1xf32>
    %89 = vector.broadcast %88 : f32 to vector<1x1x8x128xf32>
    %c0_42 = arith.constant 0 : index
    %c0_43 = arith.constant 0 : index
    %c0_44 = arith.constant 0 : index
    %c0_45 = arith.constant 0 : index
    %90 = vector.load %arg12[%c0_42, %c0_43, %c0_44, %c0_45] : memref<1x1x8x128xf32, #tpu.memory_space<vmem>>, vector<1x1x8x128xf32>
    tpu.vector_store %arg12[%c0_42, %c0_43, %c0_44, %c0_45], %89 {strides = array<i32>} : memref<1x1x8x128xf32, #tpu.memory_space<vmem>>, vector<1x1x8x128xf32>,
    %cst_46 = arith.constant 0.000000e+00 : f32
    %91 = vector.broadcast %cst_46 : f32 to vector<128x128xf32>
    %92 = arith.maximumf %81, %91 : vector<128x128xf32>
    %93 = vector.shape_cast %92 : vector<128x128xf32> to vector<8x16x128xf32>
    %c0_47 = arith.constant 0 : index
    %c0_48 = arith.constant 0 : index
    %c0_49 = arith.constant 0 : index
    %c0_50 = arith.constant 0 : index
    %94 = vector.load %arg10[%c0_47, %c0_48, %c0_49, %c0_50] : memref<1x8x16x128xf32, #tpu.memory_space<vmem>>, vector<1x8x16x128xf32>
    %95 = vector.shape_cast %94 : vector<1x8x16x128xf32> to vector<8x16x128xf32>
    %96 = vector.shape_cast %93 : vector<8x16x128xf32> to vector<1x8x16x128xf32>
    tpu.vector_store %arg10[%c0_47, %c0_48, %c0_49, %c0_50], %96 {strides = array<i32>} : memref<1x8x16x128xf32, #tpu.memory_space<vmem>>, vector<1x8x16x128xf32>,
    %cst_51 = arith.constant 0.000000e+00 : f32
    %97 = vector.broadcast %cst_51 : f32 to vector<128x128xf32>
    %98 = arith.maximumf %82, %97 : vector<128x128xf32>
    %99 = vector.shape_cast %98 : vector<128x128xf32> to vector<8x16x128xf32>
    %c0_52 = arith.constant 0 : index
    %c0_53 = arith.constant 0 : index
    %c0_54 = arith.constant 0 : index
    %c0_55 = arith.constant 0 : index
    %100 = vector.load %arg11[%c0_52, %c0_53, %c0_54, %c0_55] : memref<1x8x16x128xf32, #tpu.memory_space<vmem>>, vector<1x8x16x128xf32>
    %101 = vector.shape_cast %100 : vector<1x8x16x128xf32> to vector<8x16x128xf32>
    %102 = vector.shape_cast %99 : vector<8x16x128xf32> to vector<1x8x16x128xf32>
    tpu.vector_store %arg11[%c0_52, %c0_53, %c0_54, %c0_55], %102 {strides = array<i32>} : memref<1x8x16x128xf32, #tpu.memory_space<vmem>>, vector<1x8x16x128xf32>,
    return
  }
  func.func @transform_0(%arg0: i32, %arg1: i32) -> (i32, i32, i32, i32) {
    %c0_i32 = arith.constant 0 : i32
    %c0_i32_0 = arith.constant 0 : i32
    %c0_i32_1 = arith.constant 0 : i32
    return %arg0, %arg1, %c0_i32, %c0_i32_0 : i32, i32, i32, i32
  }
  func.func @transform_1(%arg0: i32, %arg1: i32) -> (i32, i32, i32, i32) {
    %c1_i32 = arith.constant 1 : i32
    %0 = arith.muli %arg1, %c1_i32 : i32
    %c1_i32_0 = arith.constant 1 : i32
    %1 = arith.subi %0, %c1_i32_0 : i32
    %c0_i32 = arith.constant 0 : i32
    %2 = arith.maxsi %1, %c0_i32 : i32
    %c0_i32_1 = arith.constant 0 : i32
    %c0_i32_2 = arith.constant 0 : i32
    %c0_i32_3 = arith.constant 0 : i32
    return %arg0, %2, %c0_i32_1, %c0_i32_2 : i32, i32, i32, i32
  }
  func.func @transform_2(%arg0: i32, %arg1: i32) -> (i32, i32, i32, i32) {
    %c1_i32 = arith.constant 1 : i32
    %0 = arith.addi %arg1, %c1_i32 : i32
    %c1_i32_0 = arith.constant 1 : i32
    %1 = arith.muli %0, %c1_i32_0 : i32
    %c1_i32_1 = arith.constant 1 : i32
    %2 = arith.minsi %1, %c1_i32_1 : i32
    %c0_i32 = arith.constant 0 : i32
    %c0_i32_2 = arith.constant 0 : i32
    %c0_i32_3 = arith.constant 0 : i32
    return %arg0, %2, %c0_i32, %c0_i32_2 : i32, i32, i32, i32
  }
  func.func @transform_3(%arg0: i32, %arg1: i32) -> (i32, i32, i32, i32) {
    %c0_i32 = arith.constant 0 : i32
    %c0_i32_0 = arith.constant 0 : i32
    %c0_i32_1 = arith.constant 0 : i32
    return %arg0, %arg1, %c0_i32, %c0_i32_0 : i32, i32, i32, i32
  }
  func.func @transform_4(%arg0: i32, %arg1: i32) -> (i32, i32, i32, i32) {
    %c1_i32 = arith.constant 1 : i32
    %0 = arith.muli %arg1, %c1_i32 : i32
    %c1_i32_0 = arith.constant 1 : i32
    %1 = arith.subi %0, %c1_i32_0 : i32
    %c0_i32 = arith.constant 0 : i32
    %2 = arith.maxsi %1, %c0_i32 : i32
    %c0_i32_1 = arith.constant 0 : i32
    %c0_i32_2 = arith.constant 0 : i32
    %c0_i32_3 = arith.constant 0 : i32
    return %arg0, %2, %c0_i32_1, %c0_i32_2 : i32, i32, i32, i32
  }
  func.func @transform_5(%arg0: i32, %arg1: i32) -> (i32, i32, i32, i32) {
    %c1_i32 = arith.constant 1 : i32
    %0 = arith.addi %arg1, %c1_i32 : i32
    %c1_i32_0 = arith.constant 1 : i32
    %1 = arith.muli %0, %c1_i32_0 : i32
    %c1_i32_1 = arith.constant 1 : i32
    %2 = arith.minsi %1, %c1_i32_1 : i32
    %c0_i32 = arith.constant 0 : i32
    %c0_i32_2 = arith.constant 0 : i32
    %c0_i32_3 = arith.constant 0 : i32
    return %arg0, %2, %c0_i32, %c0_i32_2 : i32, i32, i32, i32
  }
  func.func @transform_6(%arg0: i32, %arg1: i32) -> (i32, i32) {
    %c0_i32 = arith.constant 0 : i32
    %c0_i32_0 = arith.constant 0 : i32
    %c0_i32_1 = arith.constant 0 : i32
    return %c0_i32, %c0_i32_0 : i32, i32
  }
  func.func @transform_7(%arg0: i32, %arg1: i32) -> (i32, i32) {
    %c0_i32 = arith.constant 0 : i32
    %c0_i32_0 = arith.constant 0 : i32
    %c0_i32_1 = arith.constant 0 : i32
    return %c0_i32, %c0_i32_0 : i32, i32
  }
  func.func @transform_8(%arg0: i32, %arg1: i32) -> (i32, i32, i32, i32) {
    %c0_i32 = arith.constant 0 : i32
    %c0_i32_0 = arith.constant 0 : i32
    %c0_i32_1 = arith.constant 0 : i32
    return %arg0, %arg1, %c0_i32, %c0_i32_0 : i32, i32, i32, i32
  }
  func.func @transform_9(%arg0: i32, %arg1: i32) -> (i32, i32, i32, i32) {
    %c0_i32 = arith.constant 0 : i32
    %c0_i32_0 = arith.constant 0 : i32
    %c0_i32_1 = arith.constant 0 : i32
    return %arg0, %arg1, %c0_i32, %c0_i32_0 : i32, i32, i32, i32
  }
  func.func @transform_10(%arg0: i32, %arg1: i32) -> (i32, i32, i32, i32) {
    %c0_i32 = arith.constant 0 : i32
    %c0_i32_0 = arith.constant 0 : i32
    %c0_i32_1 = arith.constant 0 : i32
    return %arg0, %arg1, %c0_i32, %c0_i32_0 : i32, i32, i32, i32
  }
}

</mosaic_0001>

<bundles_post_ra>
// kernel: tpu_custom_call.1
= control target key start
LH: loop header
LB: loop body
LE: loop exit
PB: predicated region body
PF: predicated region fallthrough
CT: control target
= control target key end

     0   :  { %s5905_s0 = inlined_call_operand.hbm [shape: f32[2,16,16,128], index: 0, kind: input, shape index: {}]   ;;  %s5906_s1 = inlined_call_operand.hbm [shape: f32[2,16,16,128], index: 1, kind: input, shape index: {}]   ;;  %s5907_s2 = inlined_call_operand.hbm [shape: f32[2,16,16,128], index: 2, kind: input, shape index: {}]   ;;  %s5908_s3 = inlined_call_operand.hbm [shape: f32[2,16,16,128], index: 3, kind: input, shape index: {}]   ;;  %s5909_s4 = inlined_call_operand.hbm [shape: f32[2,16,16,128], index: 4, kind: input, shape index: {}]   ;;  %s5910_s5 = inlined_call_operand.hbm [shape: f32[2,16,16,128], index: 5, kind: input, shape index: {}]   ;;  %s5911_s6 = inlined_call_operand.hbm [shape: f32[1152,128], index: 6, kind: input, shape index: {}]   ;;  %s5912_s7 = inlined_call_operand.vmem [shape: f32[1,128], index: 7, kind: input, shape index: {}]   ;;  %s5913_s8 = inlined_call_operand.hbm [shape: f32[2,16,16,128], index: 8, kind: output, shape index: {0}]   ;;  %s5914_s9 = inlined_call_operand.hbm [shape: f32[2,16,16,128], index: 9, kind: output, shape index: {1}]   ;;  %s5915_s10 = inlined_call_operand.hbm [shape: f32[2,2,8,128], index: 10, kind: output, shape index: {2}]  }
   0x1   :  { %6013 = sst [smem:[#allocation78_spill]] %s5906_s1 }
   0x2   :  { %6014 = sst [smem:[#allocation79_spill]] %s5907_s2 }
   0x3   :  { %6015 = sst [smem:[#allocation80_spill]] %s5908_s3 }
   0x4   :  { %6016 = sst [smem:[#allocation81_spill]] %s5909_s4 }
   0x5   :  { %6017 = sst [smem:[#allocation82_spill]] %s5910_s5 }
   0x6   :  { %6018 = sst [smem:[#allocation83_spill]] %s5911_s6 }
   0x7   :  { %6019 = sst [smem:[#allocation84_spill]] %s5912_s7 }
   0x8   :  { %6020 = sst [smem:[#allocation85_spill]] %s5913_s8 }
   0x9   :  { %6021 = sst [smem:[#allocation86_spill]] %s5914_s9 }
   0xa   :  { %6022 = sst [smem:[#allocation87_spill]] %s5915_s10 }
   0xb   :  { %16 = vsyncpa [#allocation3], 0 }
   0xc   :  { %18 = vsyncpa [#allocation3 + $0x1], 0 }
   0xd   :  { %19 = vsyncpa [#allocation6], 0 }
   0xe   :  { %21 = vsyncpa [#allocation6 + $0x1], 0 }
   0xf   :  { %22 = vsyncpa [#allocation9], 0 }
  0x10   :  { %24 = vsyncpa [#allocation9 + $0x1], 0 }
  0x11   :  { %25 = vsyncpa [#allocation12], 0 }
  0x12   :  { %27 = vsyncpa [#allocation12 + $0x1], 0 }
  0x13   :  { %28 = vsyncpa [#allocation4], 0 }
  0x14   :  { %30 = vsyncpa [#allocation4 + $0x1], 0 }
  0x15   :  { %31 = vsyncpa [#allocation16], 0 }
  0x16   :  { %33 = vsyncpa [#allocation16 + $0x1], 0  ;;  %s3897_s13 = smov 0   ;;  %s3899_s14 = smov 0  }
  0x17   :  { %s3901_s15 = smov 0   ;;  %s3903_s16 = smov 0  }
  0x18   :  { %s3905_s17 = smov 0   ;;  %s3907_s18 = smov 0  }
  0x19   :  { %s3909_s19 = smov 0   ;;  %s3911_s20 = smov 0  }
  0x1a   :  { %s3913_s21 = smov 0   ;;  %s3915_s22 = smov 0  }
  0x1b   :  { %s3917_s23 = smov 0   ;;  %s3919_s24 = smov 0  }
  0x1c   :  { %s3921_s25 = smov 0   ;;  %s3923_s26 = smov 0  }
  0x1d LB: > { %6023 = sst [smem:[#allocation27_spill]] %s3789_s17  ;;  %s3968_s27 = sadd.s32 4294967295, %s3825_s26   ;;  %s3825_s26 = sphi %s3923_s26, %s39_s26   ;;  %s3821_s25 = sphi %s3921_s25, %s6205_s25   ;;  %s3817_s24 = sphi %s3919_s24, %s6204_s24   ;;  %s3813_s23 = sphi %s3917_s23, %s6203_s23   ;;  %s3809_s22 = sphi %s3915_s22, %s6202_s22   ;;  %s3805_s21 = sphi %s3913_s21, %s6210_s21   ;;  %s3801_s20 = sphi %s3911_s20, %s6209_s20   ;;  %s3797_s19 = sphi %s3909_s19, %s6200_s19   ;;  %s3793_s18 = sphi %s3907_s18, %s6199_s18   ;;  %s3789_s17 = sphi %s3905_s17, %s6198_s17   ;;  %s3785_s16 = sphi %s3903_s16, %s6197_s16   ;;  %s3781_s15 = sphi %s3901_s15, %s6208_s15   ;;  %s3777_s14 = sphi %s3899_s14, %s6207_s14   ;;  %s3773_s13 = sphi %s3897_s13, %s6206_s13  }
  0x1e   : > { %6024 = sst [smem:[#allocation28_spill]] %s3793_s18  ;;  %p2777_p0 = scmp.ge.s32.totalorder %s3825_s26, 1 }
  0x1f   : > { %6025 = sst [smem:[#allocation29_spill]] %s3797_s19  ;;  %p5937_p1 = scmp.eq.s32.totalorder %s3968_s27, 0 }
  0x20   : > { %6026 = sst [smem:[#allocation30_spill]] %s3801_s20  ;;  %p374_p3 = scmp.lt.s32.totalorder %s3825_s26, 5 }
  0x21   : > { %6027 = sst [smem:[#allocation31_spill]] %s3809_s22  ;;  %s3827_s29 = smov [#allocation13]  }
  0x22   : > { %6028 = sst [smem:[#allocation32_spill]] %s3813_s23  ;;  %p3974_p4 = pnand %p2777_p0, %p374_p3 }
  0x23   : > { %6029 = sst [smem:[#allocation33_spill]] %s3817_s24  ;;  %s386_s30 = sshll.u32 %s3827_s29, 4  ;;  %s387_s30 = int_to_ptr.vmem [resolvable:$true] %s386_s30 }
  0x24   : > { %6030 = sst [smem:[#allocation34_spill]] %s3821_s25  ;;  %p3245_p5 = pneg %p3974_p4 }
  0x25   : > { %s6031_s28 = scalar_select %p3974_p4, 1, 0 }
  0x26   : > { %p3246_p6 = pnand %p3245_p5, %p5937_p1  ;;  %s3414_s11 = scalar_lea.vmem %s387_s30, 18432 }
  0x27   : > { %6032 = sst [smem:[#allocation35_spill]] %s6031_s28  ;;  %p3415_p8 = scmp.ne.s32.totalorder %s387_s30, %s3414_s11 }
  0x28   : > { %p3405_p7 = pneg %p3246_p6  ;;  %p3422_p11 = scmp.lt.s32.totalorder %s387_s30, %s387_s30 }
  0x29   : > { %p3423_p12 = scmp.lt.s32.totalorder %s3414_s11, %s3414_s11 }
  0x2a   : > { %p3417_p9 = pnand %p3415_p8, %p3405_p7 }
  0x2b   : > { %p3424_p13 = por %p3423_p12, %p3422_p11 }
  0x2c   : > { %p3418_p10 = pneg %p3417_p9 }
  0x2e   : > { %p3425_p0 = pnand %p3424_p13, %p3418_p10 }
  0x30   : > { %3428 = shalt.err (!%p3425_p0)
}
  0x31   : > { %s5920_s12 = smov 128   ;;  %s5922_s29 = smov 8  }
  0x32   : > { %s6033_s6 = sld [smem:[#allocation83_spill]]  ;;  %s48_s8 = sadd.s32 1, %s3817_s24 }
  0x33   : > { %s51_s9 = sadd.s32 1, %s3821_s25  ;;  %p49_p3 = scmp.ge.s32.totalorder %s48_s8, 2 }
  0x34   : > { %p5938_p5 = scmp.eq.s32.totalorder %s3825_s26, 0  ;;  %s94_s23 = sadd.s32 1, %s3793_s18 }
  0x35   : > { %s6212_s8 = smov (%p49_p3, %s48_s8), 0  ;;  %s6214_s9 = smov (!%p49_p3, %s51_s9), %s3821_s25 }
  0x36   : > { %6034 = sst [smem:[#allocation36_spill]] %s6212_s8  ;;  %s56_s7 = ssub.s32 %s3817_s24, %s6212_s8 }
  0x37   : > { %p53_p7 = scmp.ge.s32.totalorder %s6214_s9, 2  ;;  %p107_p8 = scmp.ne.s32.totalorder %s3789_s17, %s3785_s16 }
  0x38   : > { %3248 = dma.hbm_to_vmem [thread:$0]  (!%p3246_p6), %s6033_s6, 18432, %s387_s30, [#allocation12], %s5920_s12, %s5920_s12, %s5922_s29  }
  0x39   : > { %s6216_s9 = smov (%p53_p7, %s6214_s9), 0  ;;  %p101_p6 = scmp.ne.s32.totalorder %s3793_s18, %s3789_s17 }
  0x3a   : > { %6035 = sst [smem:[#allocation37_spill]] %s6216_s9  ;;  %s4003_s10 = ssub.s32 %s3821_s25, %s6216_s9 }
  0x3b   : > { %s4008_s30 = sor.u32 %s56_s7, %s4003_s10  ;;  %p4012_p9 = por %p101_p6, %p5938_p5 }
  0x3c   : > { %p4019_p11 = por %p107_p8, %p5937_p1  ;;  %p5936_p12 = scmp.lt.s32.totalorder %s3825_s26, 4 }
  0x3d   : > { %s4026_s6 = sand.u32 1, %s3825_s26   ;;  %p5935_p13 = scmp.eq.s32.totalorder %s4003_s10, 0 }
  0x3e   : > { %s6037_s12 = scalar_select %p4019_p11, 1, 0 }
  0x3f   : > { %6039 = sst [smem:[#allocation39_spill]] %s4026_s6  ;;  %s429_s7 = sand.u32 1, %s3793_s18  }
  0x40   : > { %6038 = sst [smem:[#allocation38_spill]] %s6037_s12  ;;  %s2785_s16 = sshll.u32 %s429_s7, 7 }
  0x41   : > { %s4033_s9 = scalar_select %p5935_p13, %s3793_s18, %s94_s23  }
  0x42   : > { %s4036_s8 = sshll.u32 %s3821_s25, 12  ;;  %s431_s22 = scalar_lea.vmem [#allocation5], %s2785_s16 }
  0x43   : > { %6040 = sst [smem:[#allocation40_spill]] %s4033_s9  ;;  %s444_s17 = sshll.u32 %s431_s22, 4  ;;  %s4044_s17 = int_to_ptr.vmem [resolvable:$true] %s444_s17 }
  0x44   : > { %s6041_s1 = sld [smem:[#allocation78_spill]]  ;;  %p4050_p0 = pnand %p5936_p12, %p4012_p9 }
  0x45   : > { %s6043_s4 = sld [smem:[#allocation81_spill]]  ;;  %s509_s5 = scalar_lea.vmem [#allocation10], %s2785_s16 }
  0x46   : > { %s522_s28 = sshll.u32 %s509_s5, 4  ;;  %s5941_s9 = scalar_lea.sflag [#allocation6], %s4026_s6  ;;  %s4060_s28 = int_to_ptr.vmem [resolvable:$true] %s522_s28 }
  0x47   : > { %p5950_p7 = pneg %p4050_p0 }
  0x4a   : > { %s4042_s12 = scalar_lea.hbm %s6041_s1, %s4036_s8  ;;  %s3434_s29 = scalar_lea.hbm %s6041_s1, 8192 }
  0x4b   : > { %s4058_s22 = scalar_lea.hbm %s6043_s4, %s4036_s8  ;;  %s3429_s18 = scalar_lea.hbm %s4042_s12, 2048 }
  0x4c   : > { %p3430_p3 = scmp.ne.s32.totalorder %s4042_s12, %s3429_s18  ;;  %p3435_p9 = scmp.lt.s32.totalorder %s4042_s12, %s6041_s1 }
  0x4d   : > { %p3436_p13 = scmp.lt.s32.totalorder %s3434_s29, %s3429_s18 }
  0x4e   : > { %p3432_p6 = pnand %p5950_p7, %p3430_p3 }
  0x4f   : > { %p3437_p12 = por %p3436_p13, %p3435_p9 }
  0x50   : > { %p3433_p8 = pneg %p3432_p6 }
  0x52   : > { %p3438_p2 = pnand %p3437_p12, %p3433_p8 }
  0x54   : > { %3441 = shalt.err (!%p3438_p2)
}
  0x55   : > { %s3442_s16 = scalar_lea.vmem %s4044_s17, 2048  ;;  %s3830_s2 = smov [#allocation5]  }
  0x56   : > { %p3443_p1 = scmp.ne.s32.totalorder %s4044_s17, %s3442_s16  ;;  %s3447_s5 = sshll.u32 %s3830_s2, 4  ;;  %s3448_s5 = int_to_ptr.vmem [resolvable:$false] %s3447_s5 }
  0x57   : > { %s3449_s11 = scalar_lea.vmem %s3448_s5, 4096  ;;  %p3450_p5 = scmp.lt.s32.totalorder %s4044_s17, %s3448_s5 }
  0x58   : > { %p3445_p3 = pnand %p3443_p1, %p5950_p7  ;;  %p3451_p10 = scmp.lt.s32.totalorder %s3449_s11, %s3442_s16 }
  0x5a   : > { %p3446_p6 = pneg %p3445_p3  ;;  %p3452_p11 = por %p3451_p10, %p3450_p5 }
  0x5c   : > { %p3453_p13 = pnand %p3452_p11, %p3446_p6 }
  0x5e   : > { %3456 = shalt.err (!%p3453_p13)
}
  0x5f   : > { %s6044_s4 = smov 8   ;;  %s6045_s18 = smov 128  }
  0x60   : > { %3255 = dma.hbm_to_vmem [thread:$0]  (!%p4050_p0), %s4042_s12, 2048, %s4044_s17, %s5941_s9, %s6045_s18, %s6045_s18, %s6044_s4  }
  0x61   : > { %s5940_s29 = sadd.s32 4294967294, %s3825_s26   ;;  %s60_s7 = sadd.s32 1, %s3805_s21 }
  0x62   : > { %p6046_p1 = scmp.eq.s32.totalorder %s4008_s30, 0  ;;  %p67_p2 = scmp.ne.s32.totalorder %s3805_s21, %s3801_s20 }
  0x63   : > { %p73_p5 = scmp.ne.s32.totalorder %s3801_s20, %s3797_s19  ;;  %p311_p10 = scmp.eq.s32.totalorder %s5940_s29, 3 }
  0x64   : > { %s4097_s16 = scalar_select %p6046_p1, %s3805_s21, %s60_s7  }
  0x65   : > { %s5948_s2 = sand.u32 1, %s3805_s21   ;;  %p6048_p11 = scmp.eq.s32.totalorder %s3825_s26, 0 }
  0x66   : > { %6047 = sst [smem:[#allocation41_spill]] %s4097_s16  ;;  %p6049_p8 = scmp.eq.s32.totalorder %s3968_s27, 0 }
  0x67   : > { %p69_p12 = por %p6048_p11, %p67_p2  ;;  %p6052_p3 = scmp.eq.s32.totalorder %s3968_s27, 3 }
  0x68   : > { %p4110_p9 = por %p6049_p8, %p73_p5  ;;  %p4120_p13 = por %p311_p10, %p73_p5 }
  0x69   : > { %p4116_p6 = por %p6052_p3, %p67_p2  ;;  %s4126_s30 = sshll.u32 %s5948_s2, 7 }
  0x6a   : > { %s6050_s5 = scalar_select %p4110_p9, 1, 0 }
  0x6b   : > { %s6053_s17 = scalar_select %p4116_p6, 1, 0 }
  0x6c   : > { %6051 = sst [smem:[#allocation42_spill]] %s6050_s5  ;;  %s3051_s11 = sshll.u32 %s3817_s24, 4 }
  0x6d   : > { %6054 = sst [smem:[#allocation43_spill]] %s6053_s17  ;;  %s6057_s7 = sshll.u32 %s3821_s25, 5 }
  0x6e   : > { %s6055_s12 = scalar_select %p4120_p13, 1, 0 }
  0x6f   : > { %s414_s29 = sadd.s32 %s3051_s11, %s6057_s7  ;;  %p6058_p1 = scmp.lt.s32.totalorder %s3825_s26, 4 }
  0x70   : > { %6056 = sst [smem:[#allocation44_spill]] %s6055_s12  ;;  %s2784_s1 = sshll.u32 %s414_s29, 7 }
  0x71   : > { %p4133_p11 = pnand %p6058_p1, %p69_p12  ;;  %s6060_s3 = sld [smem:[#allocation80_spill]] }
  0x72   : > { %s485_s12 = scalar_lea.vmem [#allocation8], %s4126_s30  ;;  %s482_s2 = scalar_lea.sflag [#allocation9], %s4026_s6 }
  0x73   : > { %s495_s5 = sshll.u32 %s485_s12, 4  ;;  %p3459_p2 = pneg %p4133_p11  ;;  %s496_s5 = int_to_ptr.vmem [resolvable:$true] %s495_s5 }
  0x74   : > { %s3470_s25 = scalar_lea.vmem %s496_s5, 2048  ;;  %s3831_s11 = smov [#allocation8]  }
  0x75   : > { %p3471_p5 = scmp.ne.s32.totalorder %s496_s5, %s3470_s25  ;;  %s3475_s7 = sshll.u32 %s3831_s11, 4  ;;  %s3476_s7 = int_to_ptr.vmem [resolvable:$false] %s3475_s7 }
  0x76   : > { %s3477_s29 = scalar_lea.vmem %s3476_s7, 4096  ;;  %p3478_p8 = scmp.lt.s32.totalorder %s496_s5, %s3476_s7 }
  0x77   : > { %s494_s17 = scalar_lea.hbm %s6060_s3, %s2784_s1  ;;  %p3473_p10 = pnand %p3471_p5, %p3459_p2 }
  0x78   : > { %p3479_p3 = scmp.lt.s32.totalorder %s3477_s29, %s3470_s25 }
  0x79   : > { %p3474_p12 = pneg %p3473_p10 }
  0x7a   : > { %p3480_p1 = por %p3479_p3, %p3478_p8 }
  0x7c   : > { %p3481_p7 = pnand %p3480_p1, %p3474_p12 }
  0x7e   : > { %3484 = shalt.err (!%p3481_p7)
}
  0x7f   : > { %3261 = dma.hbm_to_vmem [thread:$0]  (!%p4133_p11), %s494_s17, 2048, %s496_s5, %s482_s2, %s6045_s18, %s6045_s18, %s6044_s4  }
  0x80   : > { %s416_s12 = scalar_lea.hbm %s5905_s0, %s2784_s1  ;;  %s407_s11 = scalar_lea.vmem [#allocation2], %s4126_s30 }
  0x81   : > { %s417_s25 = sshll.u32 %s407_s11, 4  ;;  %s6061_s7 = sand.u32 1, %s3805_s21   ;;  %s418_s25 = int_to_ptr.vmem [resolvable:$true] %s417_s25 }
  0x82   : > { %s404_s29 = scalar_lea.sflag [#allocation3], %s6061_s7  ;;  %s3498_s3 = scalar_lea.vmem %s418_s25, 2048 }
  0x83   : > { %p3499_p7 = scmp.ne.s32.totalorder %s418_s25, %s3498_s3  ;;  %s3832_s24 = smov [#allocation2]  }
  0x84   : > { %s3503_s20 = sshll.u32 %s3832_s24, 4  ;;  %s3504_s20 = int_to_ptr.vmem [resolvable:$false] %s3503_s20 }
  0x85   : > { %p3501_p5 = pnand %p3499_p7, %p3459_p2  ;;  %s3505_s6 = scalar_lea.vmem %s3504_s20, 4096 }
  0x86   : > { %p3506_p12 = scmp.lt.s32.totalorder %s418_s25, %s3504_s20  ;;  %p3507_p8 = scmp.lt.s32.totalorder %s3505_s6, %s3498_s3 }
  0x87   : > { %p3502_p10 = pneg %p3501_p5 }
  0x88   : > { %p3508_p3 = por %p3507_p8, %p3506_p12 }
  0x8a   : > { %p3509_p1 = pnand %p3508_p3, %p3502_p10 }
  0x8c   : > { %3512 = shalt.err (!%p3509_p1)
}
  0x8d   : > { %3252 = dma.hbm_to_vmem [thread:$0]  (!%p4133_p11), %s416_s12, 2048, %s418_s25, %s404_s29, %s6045_s18, %s6045_s18, %s6044_s4  }
  0x8e   : > { %s128_s1 = sadd.s32 1, %s3781_s15  ;;  %p135_p2 = scmp.ne.s32.totalorder %s3781_s15, %s3777_s14 }
  0x8f   : > { %p141_p7 = scmp.ne.s32.totalorder %s3777_s14, %s3773_s13  ;;  %s456_s3 = sand.u32 1, %s3781_s15  }
  0x90   : > { %p6062_p5 = scmp.eq.s32.totalorder %s3825_s26, 0  ;;  %p6063_p12 = scmp.eq.s32.totalorder %s3968_s27, 0 }
  0x91   : > { %s4182_s9 = sshll.u32 %s456_s3, 7  ;;  %p6065_p3 = scmp.eq.s32.totalorder %s4003_s10, 0 }
  0x92   : > { %p137_p10 = por %p135_p2, %p6062_p5  ;;  %p4178_p8 = por %p141_p7, %p6063_p12 }
  0x93   : > { %s4187_s20 = scalar_select %p6065_p3, %s3781_s15, %s128_s1  }
  0x94   : > { %s6064_s6 = scalar_select %p4178_p8, 1, 0 }
  0x95   : > { %s3769_s24 = sadd.s32 2048, %s4036_s8  ;;  %s458_s5 = scalar_lea.vmem [#allocation7], %s4182_s9 }
  0x96   : > { %s471_s17 = sshll.u32 %s458_s5, 4  ;;  %s6066_s19 = sld [smem:[#allocation79_spill]]  ;;  %s4198_s17 = int_to_ptr.vmem [resolvable:$true] %s471_s17 }
  0x97   : > { %p6068_p11 = scmp.lt.s32.totalorder %s3825_s26, 4  ;;  %s3513_s10 = scalar_lea.hbm %s4058_s22, 2048 }
  0x98   : > { %p3514_p2 = scmp.ne.s32.totalorder %s4058_s22, %s3513_s10  ;;  %p6070_p7 = pneg %p4050_p0 }
  0x99   : > { %p4202_p1 = pnand %p6068_p11, %p137_p10  ;;  %s6071_s29 = sld [smem:[#allocation81_spill]] }
  0x9a   : > { %p3516_p5 = pnand %p3514_p2, %p6070_p7 }
  0x9c   : > { %s6067_s12 = smov %s6066_s19  ;;  %s4196_s16 = scalar_lea.hbm %s6066_s19, %s3769_s24 }
  0x9d   : > { %p3517_p12 = pneg %p3516_p5 }
  0x9f   : > { %s3518_s1 = scalar_lea.hbm %s6071_s29, 8192  ;;  %p3519_p3 = scmp.lt.s32.totalorder %s4058_s22, %s6071_s29 }
  0xa0   : > { %p3520_p13 = scmp.lt.s32.totalorder %s3518_s1, %s3513_s10 }
  0xa2   : > { %p3521_p6 = por %p3520_p13, %p3519_p3 }
  0xa4   : > { %p3522_p10 = pnand %p3521_p6, %p3517_p12 }
  0xa6   : > { %3525 = shalt.err (!%p3522_p10)
}
  0xa7   : > { %s3526_s13 = scalar_lea.vmem %s4060_s28, 2048  ;;  %p6072_p2 = pmov %p6070_p7 }
  0xa8   : > { %p3527_p11 = scmp.ne.s32.totalorder %s4060_s28, %s3526_s13  ;;  %s3833_s30 = smov [#allocation10]  }
  0xa9   : > { %s3531_s19 = sshll.u32 %s3833_s30, 4  ;;  %s3532_s19 = int_to_ptr.vmem [resolvable:$false] %s3531_s19 }
  0xaa   : > { %p3529_p7 = pnand %p3527_p11, %p6072_p2  ;;  %s3533_s25 = scalar_lea.vmem %s3532_s19, 4096 }
  0xab   : > { %p3534_p8 = scmp.lt.s32.totalorder %s4060_s28, %s3532_s19  ;;  %p3535_p9 = scmp.lt.s32.totalorder %s3533_s25, %s3526_s13 }
  0xac   : > { %p3530_p5 = pneg %p3529_p7 }
  0xad   : > { %p3536_p4 = por %p3535_p9, %p3534_p8 }
  0xaf   : > { %p3537_p13 = pnand %p3536_p4, %p3530_p5 }
  0xb1   : > { %3540 = shalt.err (!%p3537_p13)
}
  0xb2   : > { %s6073_s10 = sld [smem:[#allocation39_spill]]  ;;  %s3541_s7 = scalar_lea.hbm %s4196_s16, 2048 }
  0xb3   : > { %3264 = dma.hbm_to_vmem [thread:$0]  (!%p4050_p0), %s4058_s22, 2048, %s4060_s28, %s482_s2, %s6045_s18, %s6045_s18, %s6044_s4  }
  0xb4   : > { %p3542_p6 = scmp.ne.s32.totalorder %s4196_s16, %s3541_s7  ;;  %p3543_p9 = pneg %p4202_p1 }
  0xb5   : > { %s3546_s1 = scalar_lea.hbm %s6067_s12, 8192 }
  0xb6   : > { %p3544_p4 = pnand %p3543_p9, %p3542_p6  ;;  %p3548_p12 = scmp.lt.s32.totalorder %s3546_s1, %s3541_s7 }
  0xb8   : > { %p3545_p8 = pneg %p3544_p4 }
  0xba   : > { %p3550_p3 = pnand %p3548_p12, %p3545_p8 }
  0xbc   : > { %3553 = shalt.err (!%p3550_p3)
}
  0xbd   : > { %s3554_s22 = scalar_lea.vmem %s4198_s17, 2048  ;;  %s3834_s28 = smov [#allocation7]  }
  0xbe   : > { %p3555_p0 = scmp.ne.s32.totalorder %s4198_s17, %s3554_s22  ;;  %s3559_s2 = sshll.u32 %s3834_s28, 4  ;;  %s3560_s2 = int_to_ptr.vmem [resolvable:$false] %s3559_s2 }
  0xbf   : > { %s3561_s3 = scalar_lea.vmem %s3560_s2, 4096  ;;  %p3562_p2 = scmp.lt.s32.totalorder %s4198_s17, %s3560_s2 }
  0xc0   : > { %p3557_p10 = pnand %p3555_p0, %p3543_p9  ;;  %p3563_p7 = scmp.lt.s32.totalorder %s3561_s3, %s3554_s22 }
  0xc2   : > { %p3558_p11 = pneg %p3557_p10  ;;  %p3564_p5 = por %p3563_p7, %p3562_p2 }
  0xc4   : > { %p3565_p13 = pnand %p3564_p5, %p3558_p11 }
  0xc6   : > { %3568 = shalt.err (!%p3565_p13)
}
  0xc7   : > { %s6074_s5 = scalar_lea.sflag [#allocation6], %s6073_s10  ;;  %s6075_s19 = sld [smem:[#allocation82_spill]] }
  0xc8   : > { %3258 = dma.hbm_to_vmem [thread:$0]  (!%p4202_p1), %s4196_s16, 2048, %s4198_s17, %s6074_s5, %s6045_s18, %s6045_s18, %s6044_s4  }
  0xc9   : > { %s536_s23 = scalar_lea.vmem [#allocation11], %s4182_s9  ;;  %s533_s1 = scalar_lea.sflag [#allocation12], %s6073_s10 }
  0xca   : > { %s549_s29 = sshll.u32 %s536_s23, 4  ;;  %s550_s29 = int_to_ptr.vmem [resolvable:$true] %s549_s29 }
  0xcd   : > { %s6076_s7 = smov %s6075_s19  ;;  %s4263_s25 = scalar_lea.hbm %s6075_s19, %s3769_s24 }
  0xce   : > { %s3569_s22 = scalar_lea.hbm %s4263_s25, 2048  ;;  %s3574_s8 = scalar_lea.hbm %s6076_s7, 8192 }
  0xcf   : > { %p3570_p6 = scmp.ne.s32.totalorder %s4263_s25, %s3569_s22  ;;  %p3576_p12 = scmp.lt.s32.totalorder %s3574_s8, %s3569_s22 }
  0xd1   : > { %p3572_p4 = pnand %p3570_p6, %p3543_p9 }
  0xd3   : > { %p3573_p8 = pneg %p3572_p4 }
  0xd5   : > { %p3578_p3 = pnand %p3576_p12, %p3573_p8 }
  0xd7   : > { %3581 = shalt.err (!%p3578_p3)
}
  0xd8   : > { %s3582_s24 = scalar_lea.vmem %s550_s29, 2048  ;;  %s3835_s9 = smov [#allocation11]  }
  0xd9   : > { %p3583_p0 = scmp.ne.s32.totalorder %s550_s29, %s3582_s24  ;;  %s3587_s16 = sshll.u32 %s3835_s9, 4  ;;  %s3588_s16 = int_to_ptr.vmem [resolvable:$false] %s3587_s16 }
  0xda   : > { %s3589_s10 = scalar_lea.vmem %s3588_s16, 4096  ;;  %p3590_p2 = scmp.lt.s32.totalorder %s550_s29, %s3588_s16 }
  0xdb   : > { %p3585_p10 = pnand %p3583_p0, %p3543_p9  ;;  %p3591_p7 = scmp.lt.s32.totalorder %s3589_s10, %s3582_s24 }
  0xdd   : > { %p3586_p11 = pneg %p3585_p10  ;;  %p3592_p5 = por %p3591_p7, %p3590_p2 }
  0xdf   : > { %p3593_p13 = pnand %p3592_p5, %p3586_p11 }
  0xe1   : > { %3596 = shalt.err (!%p3593_p13)
}
  0xe2   : > { %3267 = dma.hbm_to_vmem [thread:$0]  (!%p4202_p1), %s4263_s25, 2048, %s550_s29, %s533_s1, %s6045_s18, %s6045_s18, %s6044_s4  }
  0xe3   : > { %s6077_s2 = sld [smem:[#allocation35_spill]] }
  0xe9   : > { %p6078_p6 = scmp.ne.s32.totalorder %s6077_s2, 0 }
  0xeb   : > { %561 = sbr.rel (%p6078_p6) target bundleno = 1044 (0x414), region = 52 }
  0xf0   : > { %s6079_s3 = sld [smem:[#allocation30_spill]] }
  0xf1   : > { %s6080_s5 = sld [smem:[#allocation42_spill]] }
  0xf6   : > { %s4287_s13 = sand.u32 1, %s6079_s3  }
  0xf7   : > { %s4290_s30 = sshll.u32 %s4287_s13, 7  ;;  %s564_s19 = scalar_lea.sflag [#allocation3], %s4287_s13 }
  0xf8   : > { %s4294_s23 = scalar_lea.vmem [#allocation2], %s4290_s30  ;;  %p6081_p9 = scmp.ne.s32.totalorder %s6080_s5, 0 }
  0xfa   : > { %3732 = dma.done.wait (%p6081_p9), %s564_s19, 2048  }
  0xfb   : > { %3734 = vsyncadd (%p6081_p9), %s564_s19, 4294965248  ;;  %s6082_s4 = sld [smem:[#allocation27_spill]]  ;;  %s4301_s11 = sand.u32 1, %s3968_s27  }
  0xfc   : > { %s6083_s18 = sld [smem:[#allocation38_spill]]  ;;  %s573_s1 = scalar_lea.sflag [#allocation6], %s4301_s11 }
 0x101   : > { %s574_s25 = sand.u32 1, %s6082_s4  }
 0x102   : > { %s4304_s29 = sshll.u32 %s574_s25, 7  ;;  %p6084_p1 = scmp.ne.s32.totalorder %s6083_s18, 0 }
 0x103   : > { %s576_s22 = scalar_lea.vmem [#allocation5], %s4304_s29 }
 0x104   : > { %3736 = dma.done.wait (%p6084_p1), %s573_s1, 2048  }
 0x105   : > { %3738 = vsyncadd (%p6084_p1), %s573_s1, 4294965248  ;;  %s583_s28 = sand.u32 1, %s3777_s14   ;;  %p6085_p4 = scmp.ne.s32.totalorder %s6064_s6, 0 }
 0x106   : > { %s4313_s17 = sshll.u32 %s583_s28, 7 }
 0x107   : > { %s585_s8 = scalar_lea.vmem [#allocation7], %s4313_s17 }
 0x108   : > { %3740 = dma.done.wait (%p6085_p4), %s573_s1, 2048  }
 0x109   : > { %3742 = vsyncadd (%p6085_p4), %s573_s1, 4294965248  ;;  %s591_s24 = scalar_lea.sflag [#allocation9], %s4301_s11  ;;  %s4322_s9 = scalar_lea.vmem [#allocation8], %s4290_s30 }
 0x10a   : > { %3744 = dma.done.wait (%p6081_p9), %s591_s24, 2048  }
 0x10b   : > { %3746 = vsyncadd (%p6081_p9), %s591_s24, 4294965248  ;;  %s603_s16 = scalar_lea.vmem [#allocation10], %s4304_s29 }
 0x10c   : > { %3748 = dma.done.wait (%p6084_p1), %s591_s24, 2048  }
 0x10d   : > { %3750 = vsyncadd (%p6084_p1), %s591_s24, 4294965248  ;;  %s609_s10 = scalar_lea.sflag [#allocation12], %s4301_s11  ;;  %s612_s2 = scalar_lea.vmem [#allocation11], %s4313_s17 }
 0x10e   : > { %3752 = dma.done.wait (%p6085_p4), %s609_s10, 2048  }
 0x10f   : > { %3754 = vsyncadd (%p6085_p4), %s609_s10, 4294965248  ;;  %p6086_p8 = scmp.eq.s32.totalorder %s3968_s27, 0 }
 0x111   : > { %3756 = dma.done.wait (%p6086_p8), [#allocation12], 18432   ;;  %p6087_p12 = pmov %p6086_p8 }
 0x112   : > { %v5959_v0 = vmov 0.0   ;;  %v1038_v1 = vld [vmem:[#allocation13 + $0x78] sm:$0xff]  ;;  %v1037_v3 = vld [vmem:[#allocation13 + $0x70] sm:$0xff]  ;;  %v1036_v5 = vld [vmem:[#allocation13 + $0x68] sm:$0xff]  ;;  %s6088_s27 = sld [smem:[#allocation31_spill]]  ;;  %v710_v54 = vlaneseq  ;;  %s5668_s4 = scalar_lea.vmem [#allocation14], %s4290_s30 }
 0x113   : > { %3758 = vsyncadd (%p6087_p12), [#allocation12], 4294948864  ;;  %1174 = vmatprep.subr.mxu0 %v5959_v0  ;;  %1399 = vmatprep.subr.mxu1 %v5959_v0  ;;  %v1070_v2 = vld [vmem:[#allocation13 + $0x178] sm:$0xff]  ;;  %v1069_v4 = vld [vmem:[#allocation13 + $0x170] sm:$0xff]  ;;  %s5672_s18 = scalar_lea.vmem [#allocation15], %s4290_s30  ;;  %s6185_s30 = sld [smem:[#allocation32_spill]] }
 0x114   : > { %1175 = vmatpush1.msra.mxu0 %v1038_v1  ;;  %1400 = vmatpush1.msra.mxu1 %v1070_v2  ;;  %v1068_v6 = vld [vmem:[#allocation13 + $0x168] sm:$0xff]  ;;  %v1035_v7 = vld [vmem:[#allocation13 + $0x60] sm:$0xff]  ;;  %v1034_v9 = vld [vmem:[#allocation13 + $0x58] sm:$0xff]  ;;  %v4408_v63 = vshrl.u32 %v710_v54, 7  ;;  %s6186_s25 = sld [smem:[#allocation43_spill]]  ;;  %s2467_s17 = sshll.u32 %s5672_s18, 4  ;;  %s5763_s17 = int_to_ptr.vmem [resolvable:$true] %s2467_s17 }
 0x115   : > { %1176 = vmatprep.subr.mxu0 %v5959_v0  ;;  %1401 = vmatprep.subr.mxu1 %v5959_v0  ;;  %v1067_v8 = vld [vmem:[#allocation13 + $0x160] sm:$0xff]  ;;  %v1066_v10 = vld [vmem:[#allocation13 + $0x158] sm:$0xff]  ;;  %v1033_v11 = vld [vmem:[#allocation13 + $0x50] sm:$0xff]  ;;  %s2427_s10 = scalar_lea.sflag [#allocation16], %s4301_s11 }
 0x116   : > { %1177 = vmatpush1.msra.mxu0 %v1037_v3  ;;  %1402 = vmatpush1.msra.mxu1 %v1069_v4  ;;  %v1065_v12 = vld [vmem:[#allocation13 + $0x150] sm:$0xff]  ;;  %v1032_v13 = vld [vmem:[#allocation13 + $0x48] sm:$0xff]  ;;  %v1031_v15 = vld [vmem:[#allocation13 + $0x40] sm:$0xff]  ;;  %vm766_vm1 = vcmp.lt.s32.totalorder %v4408_v63, 1  ;;  %vm833_vm2 = vcmp.lt.s32.totalorder %v4408_v63, 7  ;;  %vm3059_vm4 = vcmp.ne.s32.totalorder %v4408_v63, 0 }
 0x117   : > { %1178 = vmatprep.subr.mxu0 %v5959_v0  ;;  %1403 = vmatprep.subr.mxu1 %v5959_v0  ;;  %v1064_v14 = vld [vmem:[#allocation13 + $0x148] sm:$0xff]  ;;  %v1063_v16 = vld [vmem:[#allocation13 + $0x140] sm:$0xff]  ;;  %v1030_v17 = vld [vmem:[#allocation13 + $0x38] sm:$0xff] }
 0x118   : > { %1179 = vmatpush1.msra.mxu0 %v1036_v5  ;;  %1404 = vmatpush1.msra.mxu1 %v1068_v6  ;;  %v1062_v18 = vld [vmem:[#allocation13 + $0x138] sm:$0xff]  ;;  %v1029_v19 = vld [vmem:[#allocation13 + $0x30] sm:$0xff]  ;;  %v1028_v21 = vld [vmem:[#allocation13 + $0x28] sm:$0xff]  ;;  %p708_p3 = scmp.eq.s32.totalorder %s6088_s27, 0  ;;  %p709_p0 = scmp.eq.s32.totalorder %s6088_s27, 1 }
 0x119   : > { %1180 = vmatprep.subr.mxu0 %v5959_v0  ;;  %1405 = vmatprep.subr.mxu1 %v5959_v0  ;;  %v1061_v20 = vld [vmem:[#allocation13 + $0x130] sm:$0xff]  ;;  %v1060_v22 = vld [vmem:[#allocation13 + $0x128] sm:$0xff]  ;;  %v1027_v23 = vld [vmem:[#allocation13 + $0x20] sm:$0xff]  ;;  %s3057_s29 = sshll.u32 %s6088_s27, 4  ;;  %s3041_s1 = sshll.u32 %s6185_s30, 5 }
 0x11a   : > { %1181 = vmatpush1.msra.mxu0 %v1035_v7  ;;  %1406 = vmatpush1.msra.mxu1 %v1067_v8  ;;  %v1059_v24 = vld [vmem:[#allocation13 + $0x120] sm:$0xff]  ;;  %v1026_v25 = vld [vmem:[#allocation13 + $0x18] sm:$0xff]  ;;  %v1025_v27 = vld [vmem:[#allocation13 + $0x10] sm:$0xff]  ;;  %s732_s6 = scalar_select %p708_p3, 1, 0 }
 0x11b   : > { %1182 = vmatprep.subr.mxu0 %v5959_v0  ;;  %1407 = vmatprep.subr.mxu1 %v5959_v0  ;;  %v1058_v26 = vld [vmem:[#allocation13 + $0x118] sm:$0xff]  ;;  %v1057_v28 = vld [vmem:[#allocation13 + $0x110] sm:$0xff]  ;;  %v1024_v29 = vld [vmem:[#allocation13 + $0x8] sm:$0xff]  ;;  %s739_s3 = scalar_select %p709_p0, 1, 0 }
 0x11c   : > { %1183 = vmatpush1.msra.mxu0 %v1034_v9  ;;  %1408 = vmatpush1.msra.mxu1 %v1066_v10  ;;  %v1056_v30 = vld [vmem:[#allocation13 + $0x108] sm:$0xff]  ;;  %v1023_v31 = vld [vmem:[#allocation13] sm:$0xff]  ;;  %v1054_v33 = vld [vmem:[#allocation13 + $0xf8] sm:$0xff]  ;;  %v733_v53 = vstv %s732_s6  ;;  %p6188_p11 = scmp.ne.s32.totalorder %s6186_s25, 0  ;;  %s3837_s6 = smov [#allocation15]  }
 0x11d   : > { %1184 = vmatprep.subr.mxu0 %v5959_v0  ;;  %1409 = vmatprep.subr.mxu1 %v5959_v0  ;;  %v1055_v32 = vld [vmem:[#allocation13 + $0x100] sm:$0xff]  ;;  %v1086_v34 = vld [vmem:[#allocation13 + $0x1f8] sm:$0xff]  ;;  %v1053_v35 = vld [vmem:[#allocation13 + $0xf0] sm:$0xff]  ;;  %vm4400_vm0 = vcmp.eq.s32.totalorder %v733_v53, 1 }
 0x11e   : > { %1185 = vmatpush1.msra.mxu0 %v1033_v11  ;;  %1410 = vmatpush1.msra.mxu1 %v1065_v12  ;;  %v1085_v36 = vld [vmem:[#allocation13 + $0x1f0] sm:$0xff]  ;;  %v1052_v37 = vld [vmem:[#allocation13 + $0xe8] sm:$0xff]  ;;  %v1051_v39 = vld [vmem:[#allocation13 + $0xe0] sm:$0xff] }
 0x11f   : > { %1186 = vmatprep.subr.mxu0 %v5959_v0  ;;  %1411 = vmatprep.subr.mxu1 %v5959_v0  ;;  %v1084_v38 = vld [vmem:[#allocation13 + $0x1e8] sm:$0xff]  ;;  %v1083_v40 = vld [vmem:[#allocation13 + $0x1e0] sm:$0xff]  ;;  %v1050_v41 = vld [vmem:[#allocation13 + $0xd8] sm:$0xff] }
 0x120   : > { %1187 = vmatpush1.msra.mxu0 %v1032_v13  ;;  %1412 = vmatpush1.msra.mxu1 %v1064_v14  ;;  %v1082_v42 = vld [vmem:[#allocation13 + $0x1d8] sm:$0xff]  ;;  %v1049_v43 = vld [vmem:[#allocation13 + $0xd0] sm:$0xff]  ;;  %v1048_v45 = vld [vmem:[#allocation13 + $0xc8] sm:$0xff] }
 0x121   : > { %1188 = vmatprep.subr.mxu0 %v5959_v0  ;;  %1413 = vmatprep.subr.mxu1 %v5959_v0  ;;  %v1081_v44 = vld [vmem:[#allocation13 + $0x1d0] sm:$0xff]  ;;  %v1080_v46 = vld [vmem:[#allocation13 + $0x1c8] sm:$0xff]  ;;  %v1047_v47 = vld [vmem:[#allocation13 + $0xc0] sm:$0xff] }
 0x122   : > { %1189 = vmatpush1.msra.mxu0 %v1031_v15  ;;  %1414 = vmatpush1.msra.mxu1 %v1063_v16  ;;  %v1079_v48 = vld [vmem:[#allocation13 + $0x1c0] sm:$0xff]  ;;  %v1046_v49 = vld [vmem:[#allocation13 + $0xb8] sm:$0xff]  ;;  %v1045_v51 = vld [vmem:[#allocation13 + $0xb0] sm:$0xff] }
 0x123   : > { %1190 = vmatprep.subr.mxu0 %v5959_v0  ;;  %1415 = vmatprep.subr.mxu1 %v5959_v0  ;;  %v1078_v50 = vld [vmem:[#allocation13 + $0x1b8] sm:$0xff]  ;;  %v1077_v52 = vld [vmem:[#allocation13 + $0x1b0] sm:$0xff]  ;;  %v1044_v55 = vld [vmem:[#allocation13 + $0xa8] sm:$0xff] }
 0x124   : > { %1191 = vmatpush1.msra.mxu0 %v1030_v17  ;;  %1416 = vmatpush1.msra.mxu1 %v1062_v18  ;;  %v1076_v56 = vld [vmem:[#allocation13 + $0x1a8] sm:$0xff]  ;;  %v1043_v57 = vld [vmem:[#allocation13 + $0xa0] sm:$0xff]  ;;  %v2823_v59 = vld [vmem:[%s576_s22 + $0x70] sm:$0xff]  ;;  %v4436_v18 = vadd.s32 8, %v4408_v63 }
 0x125   : > { %1192 = vmatprep.subr.mxu0 %v5959_v0  ;;  %1417 = vmatprep.subr.mxu1 %v5959_v0  ;;  %v1075_v58 = vld [vmem:[#allocation13 + $0x1a0] sm:$0xff]  ;;  %v4406_v61 = vld [vmem:[%s576_s22 + $0x78] sm:$0xff]  ;;  %v4416_v3 = vld [vmem:[%s4294_s23 + $0x8] sm:$0xff]  ;;  %v735_v4 = vsel %vm4400_vm0, 0.0, %v2823_v59  ;;  %s5752_s22 = sadd.s32 %s3057_s29, %s3041_s1 }
 0x126   : > { %1193 = vmatpush1.msra.mxu0 %v1029_v19  ;;  %1418 = vmatpush1.msra.mxu1 %v1061_v20  ;;  %v1042_v62 = vld [vmem:[#allocation13 + $0x98] sm:$0xff]  ;;  %v4413_v2 = vld [vmem:[%s4294_s23] sm:$0xff]  ;;  %v736_v5 = vsel %vm4400_vm0, 0.0, %v4406_v61  ;;  %v1041_v6 = vld [vmem:[#allocation13 + $0x90] sm:$0xff]  ;;  %v757_v9 = vrot.slane %v4416_v3, 7  ;;  %v746_v12 = vrot.slane %v735_v4, 7 }
 0x127   : > { %1194 = vmatprep.subr.mxu0 %v5959_v0  ;;  %1419 = vmatprep.subr.mxu1 %v5959_v0  ;;  %v1074_v1 = vld [vmem:[#allocation13 + $0x198] sm:$0xff]  ;;  %v1073_v7 = vld [vmem:[#allocation13 + $0x190] sm:$0xff]  ;;  %v747_v8 = vrot.slane %v4413_v2, 7  ;;  %v1040_v10 = vld [vmem:[#allocation13 + $0x88] sm:$0xff]  ;;  %v813_v13 = vrot.slane %v735_v4, 1  ;;  %v756_v14 = vrot.slane %v736_v5, 7 }
 0x128   : > { %1195 = vmatpush1.msra.mxu0 %v1028_v21  ;;  %1420 = vmatpush1.msra.mxu1 %v1060_v22  ;;  %v1072_v11 = vld [vmem:[#allocation13 + $0x188] sm:$0xff]  ;;  %v823_v15 = vrot.slane %v736_v5, 1  ;;  %v1039_v16 = vld [vmem:[#allocation13 + $0x80] sm:$0xff]  ;;  %vm2828_vm3 = vmneg %vm4400_vm0  ;;  %vm3060_vm5 = vcmp.ne.s32.totalorder %v4436_v18, 15  ;;  %s3042_s28 = sshll.u32 %s5752_s22, 7 }
 0x129   : > { %1196 = vmatprep.subr.mxu0 %v5959_v0  ;;  %1421 = vmatprep.subr.mxu1 %v5959_v0  ;;  %v1071_v17 = vld [vmem:[#allocation13 + $0x180] sm:$0xff]  ;;  %v778_v19 = vsel %vm766_vm1, %v757_v9, %v747_v8  ;;  %v777_v20 = vsel %vm766_vm1, %v756_v14, %v746_v12  ;;  %v4448_v22 = vld [vmem:[%s4294_s23 + $0x10] sm:$0xff]  ;;  %v1098_v53 = vld [vmem:[#allocation13 + $0x258] sm:$0xff] }
 0x12a   : > { %1197 = vmatpush1.msra.mxu0 %v1027_v23  ;;  %1422 = vmatpush1.msra.mxu1 %v1059_v24  ;;  %v834_v21 = vsel %vm833_vm2, %v813_v13, %v823_v15  ;;  %v4451_v23 = vld [vmem:[%s4294_s23 + $0x18] sm:$0xff]  ;;  %v4576_v4 = vld [vmem:[%s4294_s23 + $0x40] sm:$0xff]  ;;  %v4579_v5 = vld [vmem:[%s4294_s23 + $0x48] sm:$0xff] }
 0x12b   : > { %1198 = vmatprep.subr.mxu0 %v5959_v0  ;;  %1423 = vmatprep.subr.mxu1 %v5959_v0  ;;  %v1102_v24 = vld [vmem:[#allocation13 + $0x278] sm:$0xff]  ;;  %v4844_v60 = vld [vmem:[%s4322_s9 + $0x20] sm:$0xff] }
 0x12c   : > { %1199 = vmatpush1.msra.mxu0 %v1026_v25  ;;  %1424 = vmatpush1.msra.mxu1 %v1058_v26  ;;  %v1134_v25 = vld [vmem:[#allocation13 + $0x378] sm:$0xff]  ;;  %v768_v26 = vsel %vm766_vm1, %v747_v8, %v757_v9  ;;  %v751_v9 = vrot.slane %v4576_v4, 7  ;;  %6098 = vst [vmem:[#allocation51_spill] sm:$0xff] %v4844_v60 }
 0x12d   : > { %1200 = vmatprep.subr.mxu0 %v5959_v0  ;;  %1425 = vmatprep.subr.mxu1 %v5959_v0  ;;  %v1130_v54 = vld [vmem:[#allocation13 + $0x358] sm:$0xff] }
 0x12e   : > { %1201 = vmatpush1.msra.mxu0 %v1025_v27  ;;  %1426 = vmatpush1.msra.mxu1 %v1057_v28  ;;  %v748_v27 = vrot.slane %v4448_v22, 7  ;;  %v758_v28 = vrot.slane %v4451_v23, 7 }
 0x12f   : > { %1202 = vmatprep.subr.mxu0 %v5959_v0  ;;  %1427 = vmatprep.subr.mxu1 %v5959_v0 }
 0x130   : > { %1203 = vmatpush1.msra.mxu0 %v1024_v29  ;;  %1428 = vmatpush1.msra.mxu1 %v1056_v30  ;;  %v767_v29 = vsel %vm766_vm1, %v746_v12, %v756_v14  ;;  %v844_v30 = vsel %vm833_vm2, %v823_v15, %v813_v13  ;;  %v1095_v14 = vld [vmem:[#allocation13 + $0x240] sm:$0xff] }
 0x131   : > { %1204 = vmatprep.subr.mxu0 %v5959_v0  ;;  %1429 = vmatprep.subr.mxu1 %v5959_v0  ;;  %v1127_v15 = vld [vmem:[#allocation13 + $0x340] sm:$0xff] }
 0x132   : > { %1205 = vmatpush1.msra.mxu0 %v1023_v31  ;;  %1430 = vmatpush1.msra.mxu1 %v1055_v32  ;;  %v814_v31 = vrot.slane %v4413_v2, 1  ;;  %v824_v32 = vrot.slane %v4416_v3, 1 }
 0x133   : > { %1206 = vmatprep.subr.mxu0 %v5959_v0  ;;  %1431 = vmatprep.subr.mxu1 %v5959_v0 }
 0x134   : > { %1207 = vmatpush2.msra.mxu0 %v1054_v33  ;;  %1432 = vmatpush2.msra.mxu1 %v1086_v34  ;;  %v1101_v33 = vld [vmem:[#allocation13 + $0x270] sm:$0xff] }
 0x135   : > { %1208 = vmatprep.subr.mxu0 %v5959_v0  ;;  %1433 = vmatprep.subr.mxu1 %v5959_v0  ;;  %v1133_v34 = vld [vmem:[#allocation13 + $0x370] sm:$0xff] }
 0x136   : > { %1209 = vmatpush2.msra.mxu0 %v1053_v35  ;;  %1434 = vmatpush2.msra.mxu1 %v1085_v36  ;;  %v4481_v35 = vsel %vm766_vm1, %v758_v28, %v748_v27  ;;  %v4487_v36 = vsel %vm833_vm2, %v814_v31, %v824_v32 }
 0x137   : > { %1210 = vmatprep.subr.mxu0 %v5959_v0  ;;  %1435 = vmatprep.subr.mxu1 %v5959_v0 }
 0x138   : > { %1211 = vmatpush2.msra.mxu0 %v1052_v37  ;;  %1436 = vmatpush2.msra.mxu1 %v1084_v38  ;;  %v4490_v37 = vld [vmem:[%s4294_s23 + $0x20] sm:$0xff]  ;;  %v4493_v38 = vld [vmem:[%s4294_s23 + $0x28] sm:$0xff] }
 0x139   : > { %1212 = vmatprep.subr.mxu0 %v5959_v0  ;;  %1437 = vmatprep.subr.mxu1 %v5959_v0 }
 0x13a   : > { %1213 = vmatpush2.msra.mxu0 %v1051_v39  ;;  %1438 = vmatpush2.msra.mxu1 %v1083_v40  ;;  %v1100_v39 = vld [vmem:[#allocation13 + $0x268] sm:$0xff] }
 0x13b   : > { %1214 = vmatprep.subr.mxu0 %v5959_v0  ;;  %1439 = vmatprep.subr.mxu1 %v5959_v0  ;;  %v1132_v40 = vld [vmem:[#allocation13 + $0x368] sm:$0xff] }
 0x13c   : > { %1215 = vmatpush2.msra.mxu0 %v1050_v41  ;;  %1440 = vmatpush2.msra.mxu1 %v1082_v42  ;;  %v4504_v41 = vsel %vm766_vm1, %v748_v27, %v758_v28  ;;  %v749_v42 = vrot.slane %v4490_v37, 7 }
 0x13d   : > { %1216 = vmatprep.subr.mxu0 %v5959_v0  ;;  %1441 = vmatprep.subr.mxu1 %v5959_v0 }
 0x13e   : > { %1217 = vmatpush2.msra.mxu0 %v1049_v43  ;;  %1442 = vmatpush2.msra.mxu1 %v1081_v44  ;;  %v759_v43 = vrot.slane %v4493_v38, 7  ;;  %v4512_v44 = vsel %vm833_vm2, %v824_v32, %v814_v31  ;;  %v1093_v31 = vld [vmem:[#allocation13 + $0x230] sm:$0xff] }
 0x13f   : > { %1218 = vmatprep.subr.mxu0 %v5959_v0  ;;  %1443 = vmatprep.subr.mxu1 %v5959_v0  ;;  %v1125_v32 = vld [vmem:[#allocation13 + $0x330] sm:$0xff] }
 0x140   : > { %1219 = vmatpush2.msra.mxu0 %v1048_v45  ;;  %1444 = vmatpush2.msra.mxu1 %v1080_v46  ;;  %v815_v45 = vrot.slane %v4448_v22, 1  ;;  %v825_v46 = vrot.slane %v4451_v23, 1 }
 0x141   : > { %1220 = vmatprep.subr.mxu0 %v5959_v0  ;;  %1445 = vmatprep.subr.mxu1 %v5959_v0 }
 0x142   : > { %1221 = vmatpush2.msra.mxu0 %v1047_v47  ;;  %1446 = vmatpush2.msra.mxu1 %v1079_v48  ;;  %v1099_v47 = vld [vmem:[#allocation13 + $0x260] sm:$0xff] }
 0x143   : > { %1222 = vmatprep.subr.mxu0 %v5959_v0  ;;  %1447 = vmatprep.subr.mxu1 %v5959_v0  ;;  %v1131_v48 = vld [vmem:[#allocation13 + $0x360] sm:$0xff] }
 0x144   : > { %1223 = vmatpush2.msra.mxu0 %v1046_v49  ;;  %1448 = vmatpush2.msra.mxu1 %v1078_v50  ;;  %v4523_v49 = vsel %vm766_vm1, %v759_v43, %v749_v42  ;;  %v4529_v50 = vsel %vm833_vm2, %v815_v45, %v825_v46 }
 0x145   : > { %1224 = vmatprep.subr.mxu0 %v5959_v0  ;;  %1449 = vmatprep.subr.mxu1 %v5959_v0 }
 0x146   : > { %1225 = vmatpush2.msra.mxu0 %v1045_v51  ;;  %1450 = vmatpush2.msra.mxu1 %v1077_v52  ;;  %v4532_v51 = vld [vmem:[%s4294_s23 + $0x30] sm:$0xff]  ;;  %v4535_v52 = vld [vmem:[%s4294_s23 + $0x38] sm:$0xff] }
 0x147   : > { %1226 = vmatprep.subr.mxu0 %v5959_v0  ;;  %1451 = vmatprep.subr.mxu1 %v5959_v0  ;;  %v817_v12 = vrot.slane %v4532_v51, 1  ;;  %v827_v13 = vrot.slane %v4535_v52, 1 }
 0x148   : > { %1227 = vmatpush2.msra.mxu0 %v1044_v55  ;;  %1452 = vmatpush2.msra.mxu1 %v1076_v56  ;;  %v4547_v55 = vsel %vm766_vm1, %v749_v42, %v759_v43  ;;  %v750_v56 = vrot.slane %v4532_v51, 7  ;;  %v1092_v42 = vld [vmem:[#allocation13 + $0x228] sm:$0xff] }
 0x149   : > { %1228 = vmatprep.subr.mxu0 %v5959_v0  ;;  %1453 = vmatprep.subr.mxu1 %v5959_v0  ;;  %v4643_v28 = vsel %vm833_vm2, %v827_v13, %v817_v12  ;;  %v1124_v43 = vld [vmem:[#allocation13 + $0x328] sm:$0xff] }
 0x14a   : > { %1229 = vmatpush2.msra.mxu0 %v1043_v57  ;;  %1454 = vmatpush2.msra.mxu1 %v1075_v58  ;;  %v760_v57 = vrot.slane %v4535_v52, 7  ;;  %v4555_v58 = vsel %vm833_vm2, %v825_v46, %v815_v45 }
 0x14b   : > { %1230 = vmatprep.subr.mxu0 %v5959_v0  ;;  %1455 = vmatprep.subr.mxu1 %v5959_v0 }
 0x14c   : > { %1231 = vmatpush2.msra.mxu0 %v1042_v62  ;;  %1456 = vmatpush2.msra.mxu1 %v1074_v1  ;;  %v1097_v62 = vld [vmem:[#allocation13 + $0x250] sm:$0xff]  ;;  %v4591_v8 = vsel %vm766_vm1, %v750_v56, %v760_v57 }
 0x14d   : > { %1232 = vmatprep.subr.mxu0 %v5959_v0  ;;  %1457 = vmatprep.subr.mxu1 %v5959_v0  ;;  %v1129_v1 = vld [vmem:[#allocation13 + $0x350] sm:$0xff] }
 0x14e   : > { %1233 = vmatpush2.msra.mxu0 %v1041_v6  ;;  %1458 = vmatpush2.msra.mxu1 %v1073_v7  ;;  %v1096_v6 = vld [vmem:[#allocation13 + $0x248] sm:$0xff] }
 0x14f   : > { %1234 = vmatprep.subr.mxu0 %v5959_v0  ;;  %1459 = vmatprep.subr.mxu1 %v5959_v0  ;;  %v1128_v7 = vld [vmem:[#allocation13 + $0x348] sm:$0xff] }
 0x150   : > { %1235 = vmatpush2.msra.mxu0 %v1040_v10  ;;  %1460 = vmatpush2.msra.mxu1 %v1072_v11  ;;  %v761_v10 = vrot.slane %v4579_v5, 7 }
 0x151   : > { %1236 = vmatprep.subr.mxu0 %v5959_v0  ;;  %1461 = vmatprep.subr.mxu1 %v5959_v0 }
 0x152   : > { %1237 = vmatpush2.msra.mxu0 %v1039_v16  ;;  %2829 = vmatprep.mubr.msk.f32.mxu0 %vm2828_vm3, %v2823_v59  ;;  %v816_v59 = vrot.slane %v4490_v37, 1  ;;  %v4611_v16 = vsel %vm766_vm1, %v761_v10, %v751_v9 }
 0x153   : > { %1462 = vmatpush2.msra.mxu1 %v1071_v17  ;;  %2869 = vmatprep.mubr.msk.f32.mxu1 %vm3059_vm4, %v778_v19  ;;  %v4617_v17 = vsel %vm833_vm2, %v817_v12, %v827_v13 }
 0x154   : > { %2831 = vmatmul.mubr.msk.f32.vlgmr.msra.gmra.mxu0 %vm3059_vm4, %v777_v20  ;;  %1464 = vmatmul.mubr.f32.vlgmr.msra.gmra.mxu1 %v834_v21  ;;  %v4623_v20 = vld [vmem:[%s4294_s23 + $0x58] sm:$0xff] }
 0x155   : > { %1624 = vmatprep.subr.mxu0 %v5959_v0  ;;  %1849 = vmatprep.subr.mxu1 %v5959_v0  ;;  %v1094_v21 = vld [vmem:[#allocation13 + $0x238] sm:$0xff]  ;;  %v762_v27 = vrot.slane %v4623_v20, 7 }
 0x156   : > { %1625 = vmatpush1.msra.mxu0 %v1102_v24  ;;  %1850 = vmatpush1.msra.mxu1 %v1134_v25  ;;  %v1126_v24 = vld [vmem:[#allocation13 + $0x338] sm:$0xff]  ;;  %v4635_v25 = vsel %vm766_vm1, %v751_v9, %v761_v10 }
 0x157   : > { %2833 = vmatprep.mubr.msk.f32.mxu0 %vm2828_vm3, %v4406_v61  ;;  %1468 = vmatprep.mubr.f32.mxu1 %v768_v26  ;;  %v826_v61 = vrot.slane %v4493_v38, 1 }
 0x158   : > { %1244 = vmatmul.mubr.f32.gmra.mxu0 %v767_v29  ;;  %2871 = vmatmul.mubr.msk.f32.gmra.mxu1 %vm3060_vm5, %v844_v30  ;;  %v818_v29 = vrot.slane %v4576_v4, 1  ;;  %v828_v30 = vrot.slane %v4579_v5, 1 }
 0x159   : > { %1626 = vmatprep.subr.mxu0 %v5959_v0  ;;  %1851 = vmatprep.subr.mxu1 %v5959_v0  ;;  %v4599_v11 = vsel %vm833_vm2, %v826_v61, %v816_v59 }
 0x15a   : > { %1627 = vmatpush1.msra.mxu0 %v1101_v33  ;;  %1852 = vmatpush1.msra.mxu1 %v1133_v34  ;;  %v4661_v34 = vsel %vm833_vm2, %v818_v29, %v828_v30 }
 0x15b   : > { %1248 = vmatprep.mubr.f32.mxu0 %v4413_v2  ;;  %2873 = vmatprep.mubr.msk.f32.mxu1 %vm3059_vm4, %v4481_v35  ;;  %v4567_v2 = vsel %vm766_vm1, %v760_v57, %v750_v56  ;;  %v1091_v56 = vld [vmem:[#allocation13 + $0x220] sm:$0xff] }
 0x15c   : > { %2835 = vmatmul.mubr.msk.f32.gmra.mxu0 %vm3059_vm4, %v778_v19  ;;  %1474 = vmatmul.mubr.f32.gmra.mxu1 %v4487_v36  ;;  %v4620_v19 = vld [vmem:[%s4294_s23 + $0x50] sm:$0xff]  ;;  %v1123_v57 = vld [vmem:[#allocation13 + $0x320] sm:$0xff] }
 0x15d   : > { %1628 = vmatprep.subr.mxu0 %v5959_v0  ;;  %1853 = vmatprep.subr.mxu1 %v5959_v0 }
 0x15e   : > { %1629 = vmatpush1.msra.mxu0 %v1100_v39  ;;  %1854 = vmatpush1.msra.mxu1 %v1132_v40  ;;  %v4664_v39 = vld [vmem:[%s4294_s23 + $0x60] sm:$0xff]  ;;  %v4667_v40 = vld [vmem:[%s4294_s23 + $0x68] sm:$0xff] }
 0x15f   : > { %1253 = vmatprep.mubr.f32.mxu0 %v4416_v3  ;;  %1478 = vmatprep.mubr.f32.mxu1 %v4504_v41  ;;  %v4573_v3 = vsel %vm833_vm2, %v816_v59, %v826_v61  ;;  %v753_v46 = vrot.slane %v4664_v39, 7 }
 0x160   : > { %1254 = vmatmul.mubr.f32.gmra.mxu0 %v768_v26  ;;  %2875 = vmatmul.mubr.msk.f32.gmra.mxu1 %vm3060_vm5, %v4512_v44  ;;  %v752_v26 = vrot.slane %v4620_v19, 7 }
 0x161   : > { %1630 = vmatprep.subr.mxu0 %v5959_v0  ;;  %1855 = vmatprep.subr.mxu1 %v5959_v0 }
 0x162   : > { %1631 = vmatpush1.msra.mxu0 %v1099_v47  ;;  %1856 = vmatpush1.msra.mxu1 %v1131_v48  ;;  %v4655_v33 = vsel %vm766_vm1, %v762_v27, %v752_v26  ;;  %v4679_v45 = vsel %vm766_vm1, %v752_v26, %v762_v27  ;;  %v763_v47 = vrot.slane %v4667_v40, 7  ;;  %v4687_v48 = vsel %vm833_vm2, %v828_v30, %v818_v29  ;;  %v2825_v26 = vld [vmem:[%s603_s16 + $0x70] sm:$0xff]  ;;  %v4741_v27 = vld [vmem:[%s603_s16 + $0x78] sm:$0xff] }
 0x163   : > { %1258 = vmatprep.mubr.f32.mxu0 %v4448_v22  ;;  %2877 = vmatprep.mubr.msk.f32.mxu1 %vm3059_vm4, %v4523_v49 }
 0x164   : > { %2837 = vmatmul.mubr.msk.f32.gmra.mxu0 %vm3059_vm4, %v4481_v35  ;;  %1484 = vmatmul.mubr.f32.gmra.mxu1 %v4529_v50  ;;  %v4699_v59 = vsel %vm766_vm1, %v763_v47, %v753_v46  ;;  %v4723_v9 = vsel %vm766_vm1, %v753_v46, %v763_v47  ;;  %v1088_v46 = vld [vmem:[#allocation13 + $0x208] sm:$0xff] }
 0x165   : > { %1632 = vmatprep.subr.mxu0 %v5959_v0  ;;  %1857 = vmatprep.subr.mxu1 %v5959_v0  ;;  %v1120_v47 = vld [vmem:[#allocation13 + $0x308] sm:$0xff] }
 0x166   : > { %1633 = vmatpush1.msra.mxu0 %v1098_v53  ;;  %1858 = vmatpush1.msra.mxu1 %v1130_v54  ;;  %v819_v53 = vrot.slane %v4620_v19, 1  ;;  %v829_v54 = vrot.slane %v4623_v20, 1 }
 0x167   : > { %1263 = vmatprep.mubr.f32.mxu0 %v4451_v23  ;;  %1488 = vmatprep.mubr.f32.mxu1 %v4547_v55 }
 0x168   : > { %1264 = vmatmul.mubr.f32.gmra.mxu0 %v4504_v41  ;;  %2879 = vmatmul.mubr.msk.f32.gmra.mxu1 %vm3060_vm5, %v4555_v58  ;;  %v4705_v61 = vsel %vm833_vm2, %v819_v53, %v829_v54  ;;  %v4731_v13 = vsel %vm833_vm2, %v829_v54, %v819_v53 }
 0x169   : > { %1634 = vmatprep.subr.mxu0 %v5959_v0  ;;  %1859 = vmatprep.subr.mxu1 %v5959_v0 }
 0x16a   : > { %1635 = vmatpush1.msra.mxu0 %v1097_v62  ;;  %1860 = vmatpush1.msra.mxu1 %v1129_v1  ;;  %v4708_v62 = vld [vmem:[%s4294_s23 + $0x70] sm:$0xff]  ;;  %v4711_v1 = vld [vmem:[%s4294_s23 + $0x78] sm:$0xff] }
 0x16b   : > { %1268 = vmatprep.mubr.f32.mxu0 %v4490_v37  ;;  %2881 = vmatprep.mubr.msk.f32.mxu1 %vm3059_vm4, %v4567_v2  ;;  %v754_v10 = vrot.slane %v4708_v62, 7  ;;  %v764_v12 = vrot.slane %v4711_v1, 7 }
 0x16c   : > { %2839 = vmatmul.mubr.msk.f32.gmra.mxu0 %vm3059_vm4, %v4523_v49  ;;  %1494 = vmatmul.mubr.f32.gmra.mxu1 %v4573_v3 }
 0x16d   : > { %1636 = vmatprep.subr.mxu0 %v5959_v0  ;;  %1861 = vmatprep.subr.mxu1 %v5959_v0  ;;  %v4749_v29 = vsel %vm766_vm1, %v764_v12, %v754_v10  ;;  %v4778_v53 = vsel %vm766_vm1, %v754_v10, %v764_v12  ;;  %v1087_v10 = vld [vmem:[#allocation13 + $0x200] sm:$0xff] }
 0x16e   : > { %1637 = vmatpush1.msra.mxu0 %v1096_v6  ;;  %1862 = vmatpush1.msra.mxu1 %v1128_v7  ;;  %v1090_v6 = vld [vmem:[#allocation13 + $0x218] sm:$0xff]  ;;  %6091 = vst [vmem:[#allocation45_spill] sm:$0xff] %v4749_v29  ;;  %6093 = vst [vmem:[#allocation47_spill] sm:$0xff] %v4778_v53  ;;  %v1119_v12 = vld [vmem:[#allocation13 + $0x300] sm:$0xff] }
 0x16f   : > { %1273 = vmatprep.mubr.f32.mxu0 %v4493_v38  ;;  %1498 = vmatprep.mubr.f32.mxu1 %v4591_v8  ;;  %v1122_v7 = vld [vmem:[#allocation13 + $0x318] sm:$0xff] }
 0x170   : > { %1274 = vmatmul.mubr.f32.gmra.mxu0 %v4547_v55  ;;  %2883 = vmatmul.mubr.msk.f32.gmra.mxu1 %vm3060_vm5, %v4599_v11 }
 0x171   : > { %1638 = vmatprep.subr.mxu0 %v5959_v0  ;;  %1863 = vmatprep.subr.mxu1 %v5959_v0 }
 0x172   : > { %1639 = vmatpush1.msra.mxu0 %v1095_v14  ;;  %1864 = vmatpush1.msra.mxu1 %v1127_v15  ;;  %v820_v14 = vrot.slane %v4664_v39, 1  ;;  %v830_v15 = vrot.slane %v4667_v40, 1 }
 0x173   : > { %1278 = vmatprep.mubr.f32.mxu0 %v4532_v51  ;;  %2885 = vmatprep.mubr.msk.f32.mxu1 %vm3059_vm4, %v4611_v16 }
 0x174   : > { %2841 = vmatmul.mubr.msk.f32.gmra.mxu0 %vm3059_vm4, %v4567_v2  ;;  %1504 = vmatmul.mubr.f32.gmra.mxu1 %v4617_v17  ;;  %v4755_v30 = vsel %vm833_vm2, %v820_v14, %v830_v15  ;;  %v4782_v54 = vsel %vm833_vm2, %v830_v15, %v820_v14 }
 0x175   : > { %1640 = vmatprep.subr.mxu0 %v5959_v0  ;;  %1865 = vmatprep.subr.mxu1 %v5959_v0  ;;  %6094 = vst [vmem:[#allocation48_spill] sm:$0xff] %v4782_v54 }
 0x176   : > { %1641 = vmatpush1.msra.mxu0 %v1094_v21  ;;  %1866 = vmatpush1.msra.mxu1 %v1126_v24  ;;  %v1089_v21 = vld [vmem:[#allocation13 + $0x210] sm:$0xff] }
 0x177   : > { %1283 = vmatprep.mubr.f32.mxu0 %v4535_v52  ;;  %1508 = vmatprep.mubr.f32.mxu1 %v4635_v25  ;;  %v1121_v24 = vld [vmem:[#allocation13 + $0x310] sm:$0xff] }
 0x178   : > { %1284 = vmatmul.mubr.f32.gmra.mxu0 %v4591_v8  ;;  %2887 = vmatmul.mubr.msk.f32.gmra.mxu1 %vm3060_vm5, %v4643_v28 }
 0x179   : > { %1642 = vmatprep.subr.mxu0 %v5959_v0  ;;  %1867 = vmatprep.subr.mxu1 %v5959_v0 }
 0x17a   : > { %1643 = vmatpush1.msra.mxu0 %v1093_v31  ;;  %1868 = vmatpush1.msra.mxu1 %v1125_v32  ;;  %v4758_v31 = vld [vmem:[%s4322_s9] sm:$0xff]  ;;  %v4761_v32 = vld [vmem:[%s4322_s9 + $0x8] sm:$0xff] }
 0x17b   : > { %1288 = vmatprep.mubr.f32.mxu0 %v4576_v4  ;;  %2889 = vmatprep.mubr.msk.f32.mxu1 %vm3059_vm4, %v4655_v33  ;;  %6092 = vst [vmem:[#allocation46_spill] sm:$0xff] %v4761_v32 }
 0x17c   : > { %2843 = vmatmul.mubr.msk.f32.gmra.mxu0 %vm3059_vm4, %v4611_v16  ;;  %1514 = vmatmul.mubr.f32.gmra.mxu1 %v4661_v34 }
 0x17d   : > { %1644 = vmatprep.subr.mxu0 %v5959_v0  ;;  %1869 = vmatprep.subr.mxu1 %v5959_v0 }
 0x17e   : > { %1645 = vmatpush1.msra.mxu0 %v1092_v42  ;;  %1870 = vmatpush1.msra.mxu1 %v1124_v43  ;;  %v897_v42 = vsel %vm4400_vm0, 0.0, %v2825_v26  ;;  %v898_v43 = vsel %vm4400_vm0, 0.0, %v4741_v27 }
 0x17f   : > { %1293 = vmatprep.mubr.f32.mxu0 %v4579_v5  ;;  %1518 = vmatprep.mubr.f32.mxu1 %v4679_v45 }
 0x180   : > { %1294 = vmatmul.mubr.f32.gmra.mxu0 %v4635_v25  ;;  %2891 = vmatmul.mubr.msk.f32.gmra.mxu1 %vm3060_vm5, %v4687_v48 }
 0x181   : > { %1646 = vmatprep.subr.mxu0 %v5959_v0  ;;  %1871 = vmatprep.subr.mxu1 %v5959_v0 }
 0x182   : > { %1647 = vmatpush1.msra.mxu0 %v1091_v56  ;;  %1872 = vmatpush1.msra.mxu1 %v1123_v57  ;;  %v904_v56 = vrot.slane %v4758_v31, 7  ;;  %v914_v57 = vrot.slane %v4761_v32, 7 }
 0x183   : > { %1298 = vmatprep.mubr.f32.mxu0 %v4620_v19  ;;  %2893 = vmatprep.mubr.msk.f32.mxu1 %vm3059_vm4, %v4699_v59 }
 0x184   : > { %2845 = vmatmul.mubr.msk.f32.gmra.mxu0 %vm3059_vm4, %v4655_v33  ;;  %1524 = vmatmul.mubr.f32.gmra.mxu1 %v4705_v61  ;;  %v934_v14 = vsel %vm766_vm1, %v914_v57, %v904_v56 }
 0x185   : > { %1648 = vmatprep.subr.mxu0 %v5959_v0  ;;  %1873 = vmatprep.subr.mxu1 %v5959_v0 }
 0x186   : > { %1649 = vmatpush1.msra.mxu0 %v1090_v6  ;;  %1874 = vmatpush1.msra.mxu1 %v1122_v7  ;;  %v903_v6 = vrot.slane %v897_v42, 7  ;;  %v963_v7 = vrot.slane %v897_v42, 1 }
 0x187   : > { %1303 = vmatprep.mubr.f32.mxu0 %v4623_v20  ;;  %1528 = vmatprep.mubr.f32.mxu1 %v4723_v9 }
 0x188   : > { %1304 = vmatmul.mubr.f32.gmra.mxu0 %v4679_v45  ;;  %2895 = vmatmul.mubr.msk.f32.gmra.mxu1 %vm3060_vm5, %v4731_v13 }
 0x189   : > { %1650 = vmatprep.subr.mxu0 %v5959_v0  ;;  %1875 = vmatprep.subr.mxu1 %v5959_v0 }
 0x18a   : > { %1651 = vmatpush1.msra.mxu0 %v1089_v21  ;;  %1876 = vmatpush1.msra.mxu1 %v1121_v24  ;;  %v913_v21 = vrot.slane %v898_v43, 7  ;;  %v973_v24 = vrot.slane %v898_v43, 1  ;;  %v4803_v43 = vld [vmem:[%s4322_s9 + $0x10] sm:$0xff] }
 0x18b   : > { %1308 = vmatprep.mubr.f32.mxu0 %v4664_v39  ;;  %2897 = vmatprep.mubr.msk.f32.mxu1 %vm3059_vm4, %v4749_v29 }
 0x18c   : > { %2847 = vmatmul.mubr.msk.f32.gmra.mxu0 %vm3059_vm4, %v4699_v59  ;;  %1534 = vmatmul.mubr.f32.gmra.mxu1 %v4755_v30  ;;  %v933_v15 = vsel %vm766_vm1, %v913_v21, %v903_v6  ;;  %v983_v42 = vsel %vm833_vm2, %v963_v7, %v973_v24  ;;  %v993_v29 = vsel %vm833_vm2, %v973_v24, %v963_v7  ;;  %v1148_v7 = vld [vmem:[#allocation13 + $0x3e8] sm:$0xff]  ;;  %v906_v24 = vrot.slane %v4844_v60, 7 }
 0x18d   : > { %1652 = vmatprep.subr.mxu0 %v5959_v0  ;;  %1877 = vmatprep.subr.mxu1 %v5959_v0 }
 0x18e   : > { %1653 = vmatpush1.msra.mxu0 %v1088_v46  ;;  %1878 = vmatpush1.msra.mxu1 %v1120_v47  ;;  %v4806_v46 = vld [vmem:[%s4322_s9 + $0x18] sm:$0xff] }
 0x18f   : > { %1313 = vmatprep.mubr.f32.mxu0 %v4667_v40  ;;  %1538 = vmatprep.mubr.f32.mxu1 %v4778_v53  ;;  %6095 = vst [vmem:[#allocation49_spill] sm:$0xff] %v4806_v46  ;;  %v1118_v47 = vld [vmem:[#allocation13 + $0x2f8] sm:$0xff]  ;;  %v924_v53 = vsel %vm766_vm1, %v904_v56, %v914_v57  ;;  %v974_v56 = vrot.slane %v4761_v32, 1  ;;  %v1117_v57 = vld [vmem:[#allocation13 + $0x2f0] sm:$0xff] }
 0x190   : > { %1314 = vmatmul.mubr.f32.gmra.mxu0 %v4723_v9  ;;  %2899 = vmatmul.mubr.msk.f32.gmra.mxu1 %vm3060_vm5, %v4782_v54  ;;  %v905_v54 = vrot.slane %v4803_v43, 7 }
 0x191   : > { %1654 = vmatprep.subr.mxu0 %v5959_v0  ;;  %1879 = vmatprep.subr.mxu1 %v5959_v0  ;;  %v1150_v0 = vld [vmem:[#allocation13 + $0x3f8] sm:$0xff] }
 0x192   : > { %1655 = vmatpush1.msra.mxu0 %v1087_v10  ;;  %1880 = vmatpush1.msra.mxu1 %v1119_v12  ;;  %v915_v10 = vrot.slane %v4806_v46, 7  ;;  %v6096_v12 = vmov 0.0  }
 0x193   : > { %2849 = vmatprep.mubr.msk.f32.mxu0 %vm2828_vm3, %v2825_v26  ;;  %2901 = vmatprep.mubr.msk.f32.mxu1 %vm3059_vm4, %v934_v14  ;;  %v923_v26 = vsel %vm766_vm1, %v903_v6, %v913_v21 }
 0x194   : > { %2851 = vmatmul.mubr.msk.f32.gmra.mxu0 %vm3059_vm4, %v933_v15  ;;  %1544 = vmatmul.mubr.f32.gmra.mxu1 %v983_v42  ;;  %v964_v15 = vrot.slane %v4758_v31, 1  ;;  %v1149_v42 = vld [vmem:[#allocation13 + $0x3f0] sm:$0xff]  ;;  %v4835_v6 = vsel %vm766_vm1, %v915_v10, %v905_v54  ;;  %v4858_v21 = vsel %vm766_vm1, %v905_v54, %v915_v10  ;;  %v1115_v54 = vld [vmem:[#allocation13 + $0x2e0] sm:$0xff] }
 0x195   : > { %1656 = vmatprep.subr.mxu0 %v6096_v12  ;;  %1881 = vmatprep.subr.mxu1 %v6096_v12  ;;  %6097 = vst [vmem:[#allocation50_spill] sm:$0xff] %v4835_v6  ;;  %6100 = vst [vmem:[#allocation53_spill] sm:$0xff] %v4858_v21  ;;  %v1147_v10 = vld [vmem:[#allocation13 + $0x3e0] sm:$0xff] }
 0x196   : > { %1657 = vmatpush2.msra.mxu0 %v1118_v47  ;;  %1882 = vmatpush2.msra.mxu1 %v1150_v0  ;;  %v4841_v0 = vsel %vm833_vm2, %v964_v15, %v974_v56 }
 0x197   : > { %2853 = vmatprep.mubr.msk.f32.mxu0 %vm2828_vm3, %v4741_v27  ;;  %1548 = vmatprep.mubr.f32.mxu1 %v924_v53  ;;  %v4847_v27 = vld [vmem:[%s4322_s9 + $0x28] sm:$0xff] }
 0x198   : > { %1324 = vmatmul.mubr.f32.gmra.mxu0 %v923_v26  ;;  %2903 = vmatmul.mubr.msk.f32.gmra.mxu1 %vm3060_vm5, %v993_v29  ;;  %6099 = vst [vmem:[#allocation52_spill] sm:$0xff] %v4847_v27  ;;  %v1116_v29 = vld [vmem:[#allocation13 + $0x2e8] sm:$0xff]  ;;  %v916_v47 = vrot.slane %v4847_v27, 7  ;;  %v4866_v26 = vsel %vm833_vm2, %v974_v56, %v964_v15 }
 0x199   : > { %1658 = vmatprep.subr.mxu0 %v6096_v12  ;;  %1883 = vmatprep.subr.mxu1 %v6096_v12  ;;  %6101 = vst [vmem:[#allocation54_spill] sm:$0xff] %v4866_v26 }
 0x19a   : > { %1659 = vmatpush2.msra.mxu0 %v1117_v57  ;;  %1884 = vmatpush2.msra.mxu1 %v1149_v42  ;;  %v975_v57 = vrot.slane %v4806_v46, 1  ;;  %v4877_v15 = vsel %vm766_vm1, %v916_v47, %v906_v24  ;;  %v4886_v42 = vld [vmem:[%s4322_s9 + $0x30] sm:$0xff] }
 0x19b   : > { %1328 = vmatprep.mubr.f32.mxu0 %v4758_v31  ;;  %2905 = vmatprep.mubr.msk.f32.mxu1 %vm3059_vm4, %v4835_v6  ;;  %6102 = vst [vmem:[#allocation55_spill] sm:$0xff] %v4877_v15  ;;  %6104 = vst [vmem:[#allocation57_spill] sm:$0xff] %v4886_v42 }
 0x19c   : > { %2855 = vmatmul.mubr.msk.f32.gmra.mxu0 %vm3059_vm4, %v934_v14  ;;  %1554 = vmatmul.mubr.f32.gmra.mxu1 %v4841_v0  ;;  %v965_v14 = vrot.slane %v4803_v43, 1 }
 0x19d   : > { %1660 = vmatprep.subr.mxu0 %v6096_v12  ;;  %1885 = vmatprep.subr.mxu1 %v6096_v12 }
 0x19e   : > { %1661 = vmatpush2.msra.mxu0 %v1116_v29  ;;  %1886 = vmatpush2.msra.mxu1 %v1148_v7  ;;  %v4883_v56 = vsel %vm833_vm2, %v965_v14, %v975_v57  ;;  %v4889_v29 = vld [vmem:[%s4322_s9 + $0x38] sm:$0xff] }
 0x19f   : > { %1333 = vmatprep.mubr.f32.mxu0 %v4761_v32  ;;  %1558 = vmatprep.mubr.f32.mxu1 %v4858_v21  ;;  %6103 = vst [vmem:[#allocation56_spill] sm:$0xff] %v4883_v56  ;;  %6105 = vst [vmem:[#allocation58_spill] sm:$0xff] %v4889_v29  ;;  %v1146_v7 = vld [vmem:[#allocation13 + $0x3d8] sm:$0xff]  ;;  %v4901_v32 = vsel %vm766_vm1, %v906_v24, %v916_v47  ;;  %v1113_v24 = vld [vmem:[#allocation13 + $0x2d0] sm:$0xff] }
 0x1a0   : > { %1334 = vmatmul.mubr.f32.gmra.mxu0 %v924_v53  ;;  %2907 = vmatmul.mubr.msk.f32.gmra.mxu1 %vm3060_vm5, %v4866_v26  ;;  %v1114_v53 = vld [vmem:[#allocation13 + $0x2d8] sm:$0xff]  ;;  %6106 = vst [vmem:[#allocation59_spill] sm:$0xff] %v4901_v32  ;;  %v4909_v26 = vsel %vm833_vm2, %v975_v57, %v965_v14  ;;  %v1145_v47 = vld [vmem:[#allocation13 + $0x3d0] sm:$0xff] }
 0x1a1   : > { %1662 = vmatprep.subr.mxu0 %v6096_v12  ;;  %1887 = vmatprep.subr.mxu1 %v6096_v12  ;;  %6107 = vst [vmem:[#allocation60_spill] sm:$0xff] %v4909_v26 }
 0x1a2   : > { %1663 = vmatpush2.msra.mxu0 %v1115_v54  ;;  %1888 = vmatpush2.msra.mxu1 %v1147_v10  ;;  %v907_v54 = vrot.slane %v4886_v42, 7  ;;  %v917_v10 = vrot.slane %v4889_v29, 7 }
 0x1a3   : > { %1338 = vmatprep.mubr.f32.mxu0 %v4803_v43  ;;  %2909 = vmatprep.mubr.msk.f32.mxu1 %vm3059_vm4, %v4877_v15 }
 0x1a4   : > { %2857 = vmatmul.mubr.msk.f32.gmra.mxu0 %vm3059_vm4, %v4835_v6  ;;  %1564 = vmatmul.mubr.f32.gmra.mxu1 %v4883_v56  ;;  %v966_v56 = vrot.slane %v4844_v60, 1  ;;  %v976_v6 = vrot.slane %v4847_v27, 1  ;;  %v4921_v14 = vsel %vm766_vm1, %v917_v10, %v907_v54 }
 0x1a5   : > { %1664 = vmatprep.subr.mxu0 %v6096_v12  ;;  %1889 = vmatprep.subr.mxu1 %v6096_v12  ;;  %6108 = vst [vmem:[#allocation61_spill] sm:$0xff] %v4921_v14 }
 0x1a6   : > { %1665 = vmatpush2.msra.mxu0 %v1114_v53  ;;  %1890 = vmatpush2.msra.mxu1 %v1146_v7  ;;  %v4927_v57 = vsel %vm833_vm2, %v966_v56, %v976_v6  ;;  %v4930_v53 = vld [vmem:[%s4322_s9 + $0x40] sm:$0xff]  ;;  %v4933_v7 = vld [vmem:[%s4322_s9 + $0x48] sm:$0xff] }
 0x1a7   : > { %1343 = vmatprep.mubr.f32.mxu0 %v4806_v46  ;;  %1568 = vmatprep.mubr.f32.mxu1 %v4901_v32  ;;  %6109 = vst [vmem:[#allocation62_spill] sm:$0xff] %v4927_v57  ;;  %6110 = vst [vmem:[#allocation63_spill] sm:$0xff] %v4930_v53  ;;  %v4945_v46 = vsel %vm766_vm1, %v907_v54, %v917_v10  ;;  %v1111_v54 = vld [vmem:[#allocation13 + $0x2c0] sm:$0xff] }
 0x1a8   : > { %1344 = vmatmul.mubr.f32.gmra.mxu0 %v4858_v21  ;;  %2911 = vmatmul.mubr.msk.f32.gmra.mxu1 %vm3060_vm5, %v4909_v26  ;;  %6111 = vst [vmem:[#allocation64_spill] sm:$0xff] %v4933_v7  ;;  %v1112_v26 = vld [vmem:[#allocation13 + $0x2c8] sm:$0xff]  ;;  %6112 = vst [vmem:[#allocation65_spill] sm:$0xff] %v4945_v46  ;;  %v1143_v10 = vld [vmem:[#allocation13 + $0x3c0] sm:$0xff] }
 0x1a9   : > { %1666 = vmatprep.subr.mxu0 %v6096_v12  ;;  %1891 = vmatprep.subr.mxu1 %v6096_v12  ;;  %v1144_v21 = vld [vmem:[#allocation13 + $0x3c8] sm:$0xff] }
 0x1aa   : > { %1667 = vmatpush2.msra.mxu0 %v1113_v24  ;;  %1892 = vmatpush2.msra.mxu1 %v1145_v47  ;;  %v908_v24 = vrot.slane %v4930_v53, 7  ;;  %v918_v47 = vrot.slane %v4933_v7, 7 }
 0x1ab   : > { %1348 = vmatprep.mubr.f32.mxu0 %v4844_v60  ;;  %2913 = vmatprep.mubr.msk.f32.mxu1 %vm3059_vm4, %v4921_v14  ;;  %v4953_v60 = vsel %vm833_vm2, %v976_v6, %v966_v56  ;;  %v4977_v56 = vld [vmem:[%s4322_s9 + $0x58] sm:$0xff] }
 0x1ac   : > { %2859 = vmatmul.mubr.msk.f32.gmra.mxu0 %vm3059_vm4, %v4877_v15  ;;  %1574 = vmatmul.mubr.f32.gmra.mxu1 %v4927_v57  ;;  %6113 = vst [vmem:[#allocation66_spill] sm:$0xff] %v4953_v60  ;;  %v967_v57 = vrot.slane %v4886_v42, 1  ;;  %v977_v15 = vrot.slane %v4889_v29, 1  ;;  %v4965_v6 = vsel %vm766_vm1, %v918_v47, %v908_v24 }
 0x1ad   : > { %1668 = vmatprep.subr.mxu0 %v6096_v12  ;;  %1893 = vmatprep.subr.mxu1 %v6096_v12  ;;  %6114 = vst [vmem:[#allocation67_spill] sm:$0xff] %v4965_v6 }
 0x1ae   : > { %1669 = vmatpush2.msra.mxu0 %v1112_v26  ;;  %1894 = vmatpush2.msra.mxu1 %v1144_v21  ;;  %v4971_v21 = vsel %vm833_vm2, %v967_v57, %v977_v15  ;;  %v4974_v26 = vld [vmem:[%s4322_s9 + $0x50] sm:$0xff] }
 0x1af   : > { %1353 = vmatprep.mubr.f32.mxu0 %v4847_v27  ;;  %1578 = vmatprep.mubr.f32.mxu1 %v4945_v46  ;;  %6115 = vst [vmem:[#allocation68_spill] sm:$0xff] %v4971_v21  ;;  %6116 = vst [vmem:[#allocation69_spill] sm:$0xff] %v4974_v26  ;;  %v4989_v27 = vsel %vm766_vm1, %v908_v24, %v918_v47  ;;  %v1109_v24 = vld [vmem:[#allocation13 + $0x2b0] sm:$0xff] }
 0x1b0   : > { %1354 = vmatmul.mubr.f32.gmra.mxu0 %v4901_v32  ;;  %2915 = vmatmul.mubr.msk.f32.gmra.mxu1 %vm3060_vm5, %v4953_v60  ;;  %v1110_v60 = vld [vmem:[#allocation13 + $0x2b8] sm:$0xff]  ;;  %6117 = vst [vmem:[#allocation70_spill] sm:$0xff] %v4989_v27  ;;  %v1141_v47 = vld [vmem:[#allocation13 + $0x3b0] sm:$0xff] }
 0x1b1   : > { %1670 = vmatprep.subr.mxu0 %v6096_v12  ;;  %1895 = vmatprep.subr.mxu1 %v6096_v12  ;;  %v1142_v32 = vld [vmem:[#allocation13 + $0x3b8] sm:$0xff] }
 0x1b2   : > { %1671 = vmatpush2.msra.mxu0 %v1111_v54  ;;  %1896 = vmatpush2.msra.mxu1 %v1143_v10  ;;  %v909_v54 = vrot.slane %v4974_v26, 7  ;;  %v919_v10 = vrot.slane %v4977_v56, 7 }
 0x1b3   : > { %1358 = vmatprep.mubr.f32.mxu0 %v4886_v42  ;;  %2917 = vmatprep.mubr.msk.f32.mxu1 %vm3059_vm4, %v4965_v6  ;;  %v4997_v42 = vsel %vm833_vm2, %v977_v15, %v967_v57  ;;  %v5021_v57 = vld [vmem:[%s4322_s9 + $0x68] sm:$0xff] }
 0x1b4   : > { %2861 = vmatmul.mubr.msk.f32.gmra.mxu0 %vm3059_vm4, %v4921_v14  ;;  %1584 = vmatmul.mubr.f32.gmra.mxu1 %v4971_v21  ;;  %6118 = vst [vmem:[#allocation71_spill] sm:$0xff] %v4997_v42  ;;  %v968_v21 = vrot.slane %v4930_v53, 1  ;;  %v978_v14 = vrot.slane %v4933_v7, 1  ;;  %v5009_v15 = vsel %vm766_vm1, %v919_v10, %v909_v54 }
 0x1b5   : > { %1672 = vmatprep.subr.mxu0 %v6096_v12  ;;  %1897 = vmatprep.subr.mxu1 %v6096_v12  ;;  %6119 = vst [vmem:[#allocation72_spill] sm:$0xff] %v5009_v15 }
 0x1b6   : > { %1673 = vmatpush2.msra.mxu0 %v1110_v60  ;;  %1898 = vmatpush2.msra.mxu1 %v1142_v32  ;;  %v5015_v32 = vsel %vm833_vm2, %v968_v21, %v978_v14  ;;  %v5018_v60 = vld [vmem:[%s4322_s9 + $0x60] sm:$0xff] }
 0x1b7   : > { %1363 = vmatprep.mubr.f32.mxu0 %v4889_v29  ;;  %1588 = vmatprep.mubr.f32.mxu1 %v4989_v27  ;;  %6120 = vst [vmem:[#allocation73_spill] sm:$0xff] %v5015_v32  ;;  %v5033_v29 = vsel %vm766_vm1, %v909_v54, %v919_v10  ;;  %v1107_v54 = vld [vmem:[#allocation13 + $0x2a0] sm:$0xff] }
 0x1b8   : > { %1364 = vmatmul.mubr.f32.gmra.mxu0 %v4945_v46  ;;  %2919 = vmatmul.mubr.msk.f32.gmra.mxu1 %vm3060_vm5, %v4997_v42  ;;  %v1108_v42 = vld [vmem:[#allocation13 + $0x2a8] sm:$0xff]  ;;  %v1139_v10 = vld [vmem:[#allocation13 + $0x3a0] sm:$0xff] }
 0x1b9   : > { %1674 = vmatprep.subr.mxu0 %v6096_v12  ;;  %1899 = vmatprep.subr.mxu1 %v6096_v12  ;;  %v1140_v46 = vld [vmem:[#allocation13 + $0x3a8] sm:$0xff] }
 0x1ba   : > { %1675 = vmatpush2.msra.mxu0 %v1109_v24  ;;  %1900 = vmatpush2.msra.mxu1 %v1141_v47  ;;  %v910_v24 = vrot.slane %v5018_v60, 7  ;;  %v920_v47 = vrot.slane %v5021_v57, 7 }
 0x1bb   : > { %1368 = vmatprep.mubr.f32.mxu0 %v4930_v53  ;;  %2921 = vmatprep.mubr.msk.f32.mxu1 %vm3059_vm4, %v5009_v15  ;;  %v5041_v53 = vsel %vm833_vm2, %v978_v14, %v968_v21  ;;  %v5065_v21 = vld [vmem:[%s4322_s9 + $0x78] sm:$0xff] }
 0x1bc   : > { %2863 = vmatmul.mubr.msk.f32.gmra.mxu0 %vm3059_vm4, %v4965_v6  ;;  %1594 = vmatmul.mubr.f32.gmra.mxu1 %v5015_v32  ;;  %6121 = vst [vmem:[#allocation74_spill] sm:$0xff] %v5041_v53  ;;  %v969_v32 = vrot.slane %v4974_v26, 1  ;;  %v979_v6 = vrot.slane %v4977_v56, 1  ;;  %v5053_v14 = vsel %vm766_vm1, %v920_v47, %v910_v24  ;;  %6123 = vst [vmem:[#allocation76_spill] sm:$0xff] %v5065_v21 }
 0x1bd   : > { %1676 = vmatprep.subr.mxu0 %v6096_v12  ;;  %1901 = vmatprep.subr.mxu1 %v6096_v12 }
 0x1be   : > { %1677 = vmatpush2.msra.mxu0 %v1108_v42  ;;  %1902 = vmatpush2.msra.mxu1 %v1140_v46  ;;  %v5059_v46 = vsel %vm833_vm2, %v969_v32, %v979_v6  ;;  %v5062_v42 = vld [vmem:[%s4322_s9 + $0x70] sm:$0xff]  ;;  %s6187_s9 = sld [smem:[#allocation86_spill]] }
 0x1bf   : > { %1373 = vmatprep.mubr.f32.mxu0 %v4933_v7  ;;  %1598 = vmatprep.mubr.f32.mxu1 %v5033_v29  ;;  %6122 = vst [vmem:[#allocation75_spill] sm:$0xff] %v5059_v46  ;;  %v5077_v7 = vsel %vm766_vm1, %v910_v24, %v920_v47  ;;  %v1105_v24 = vld [vmem:[#allocation13 + $0x290] sm:$0xff] }
 0x1c0   : > { %1374 = vmatmul.mubr.f32.gmra.mxu0 %v4989_v27  ;;  %2923 = vmatmul.mubr.msk.f32.gmra.mxu1 %vm3060_vm5, %v5041_v53  ;;  %v1106_v53 = vld [vmem:[#allocation13 + $0x298] sm:$0xff]  ;;  %v1137_v47 = vld [vmem:[#allocation13 + $0x390] sm:$0xff] }
 0x1c1   : > { %1678 = vmatprep.subr.mxu0 %v6096_v12  ;;  %1903 = vmatprep.subr.mxu1 %v6096_v12  ;;  %v1138_v27 = vld [vmem:[#allocation13 + $0x398] sm:$0xff] }
 0x1c2   : > { %1679 = vmatpush2.msra.mxu0 %v1107_v54  ;;  %1904 = vmatpush2.msra.mxu1 %v1139_v10  ;;  %v911_v54 = vrot.slane %v5062_v42, 7  ;;  %v921_v10 = vrot.slane %v5065_v21, 7 }
 0x1c3   : > { %1378 = vmatprep.mubr.f32.mxu0 %v4974_v26  ;;  %2925 = vmatprep.mubr.msk.f32.mxu1 %vm3059_vm4, %v5053_v14  ;;  %v5085_v26 = vsel %vm833_vm2, %v979_v6, %v969_v32  ;;  %v1136_v32 = vld [vmem:[#allocation13 + $0x388] sm:$0xff] }
 0x1c4   : > { %2865 = vmatmul.mubr.msk.f32.gmra.mxu0 %vm3059_vm4, %v5009_v15  ;;  %1604 = vmatmul.mubr.f32.gmra.mxu1 %v5059_v46  ;;  %v970_v15 = vrot.slane %v5018_v60, 1  ;;  %v980_v46 = vrot.slane %v5021_v57, 1  ;;  %v5097_v6 = vsel %vm766_vm1, %v921_v10, %v911_v54  ;;  %v5115_v21 = vsel %vm766_vm1, %v911_v54, %v921_v10  ;;  %s5761_s16 = scalar_lea.hbm %s6187_s9, %s3042_s28 }
 0x1c5   : > { %1680 = vmatprep.subr.mxu0 %v6096_v12  ;;  %1905 = vmatprep.subr.mxu1 %v6096_v12  ;;  %6124 = vst [vmem:[#allocation77_spill] sm:$0xff] %v5097_v6 }
 0x1c6   : > { %1681 = vmatpush2.msra.mxu0 %v1106_v53  ;;  %1906 = vmatpush2.msra.mxu1 %v1138_v27  ;;  %v5103_v27 = vsel %vm833_vm2, %v970_v15, %v980_v46  ;;  %v1104_v53 = vld [vmem:[#allocation13 + $0x288] sm:$0xff] }
 0x1c7   : > { %1383 = vmatprep.mubr.f32.mxu0 %v4977_v56  ;;  %1608 = vmatprep.mubr.f32.mxu1 %v5077_v7 }
 0x1c8   : > { %1384 = vmatmul.mubr.f32.gmra.mxu0 %v5033_v29  ;;  %2927 = vmatmul.mubr.msk.f32.gmra.mxu1 %vm3060_vm5, %v5085_v26 }
 0x1c9   : > { %1682 = vmatprep.subr.mxu0 %v6096_v12  ;;  %1907 = vmatprep.subr.mxu1 %v6096_v12 }
 0x1ca   : > { %1683 = vmatpush2.msra.mxu0 %v1105_v24  ;;  %1908 = vmatpush2.msra.mxu1 %v1137_v47  ;;  %v5121_v24 = vsel %vm833_vm2, %v980_v46, %v970_v15  ;;  %v1103_v47 = vld [vmem:[#allocation13 + $0x280] sm:$0xff]  ;;  %v1166_v15 = vld [vmem:[#allocation13 + $0x478] sm:$0xff] }
 0x1cb   : > { %1388 = vmatprep.mubr.f32.mxu0 %v5018_v60  ;;  %2929 = vmatprep.mubr.msk.f32.mxu1 %vm3059_vm4, %v5097_v6  ;;  %v1135_v6 = vld [vmem:[#allocation13 + $0x380] sm:$0xff] }
 0x1cc   : > { %2867 = vmatmul.mubr.msk.f32.gmra.mxu0 %vm3059_vm4, %v5053_v14  ;;  %1614 = vmatmul.mubr.f32.gmra.mxu1 %v5103_v27  ;;  %v3400_v46 = vld [vmem:[%s4294_s23] sm:$0xff] }
 0x1cd   : > { %1684 = vmatprep.subr.mxu0 %v6096_v12  ;;  %1909 = vmatprep.subr.mxu1 %v6096_v12 }
 0x1ce   : > { %1685 = vmatpush2.msra.mxu0 %v1104_v53  ;;  %1910 = vmatpush2.msra.mxu1 %v1136_v32 }
 0x1cf   : > { %1393 = vmatprep.mubr.f32.mxu0 %v5021_v57  ;;  %1618 = vmatprep.mubr.f32.mxu1 %v5115_v21 }
 0x1d0   : > { %1394 = vmatmul.mubr.f32.gmra.mxu0 %v5077_v7  ;;  %2931 = vmatmul.mubr.msk.f32.gmra.mxu1 %vm3060_vm5, %v5121_v24 }
 0x1d1   : > { %1686 = vmatprep.subr.mxu0 %v6096_v12  ;;  %1911 = vmatprep.subr.mxu1 %v6096_v12  ;;  %v1165_v12 = vld [vmem:[#allocation13 + $0x470] sm:$0xff] }
 0x1d2   : > { %1687 = vmatpush2.msra.mxu0 %v1103_v47  ;;  %1912 = vmatpush2.msra.mxu1 %v1135_v6  ;;  %v6129_v6 = vld [vmem:[#allocation47_spill] sm:$0xff] }
 0x1d3   : > { %1688 = vmatprep.mubr.f32.mxu0 %v4487_v36  ;;  %1913 = vmatprep.mubr.f32.mxu1 %v4448_v22  ;;  %v3401_v36 = vld [vmem:[%s4294_s23 + $0x8] sm:$0xff] }
 0x1d4   : > { %1689 = vmatmul.mubr.f32.vlgmr.msra.gmra.mxu0 %v3400_v46  ;;  %2965 = vmatmul.mubr.msk.f32.vlgmr.msra.gmra.mxu1 %vm3059_vm4, %v4481_v35  ;;  %v1164_v35 = vld [vmem:[#allocation13 + $0x468] sm:$0xff] }
 0x1d5   : > { %3109 = vmatprep.subr.mxu0 %v1166_v15  ;;  %3189 = vmatprep.subr.mxu1 %v1166_v15 }
 0x1d6   : > { %3110 = vmatpush3.msra.mxu0 %v1166_v15  ;;  %3205 = vmatpush3.msra.mxu1 %v1166_v15  ;;  %v1151_v15 = vld [vmem:[#allocation13 + $0x400] sm:$0xff] }
 0x1d7   : > { %2933 = vmatprep.mubr.msk.f32.mxu0 %vm3060_vm5, %v4512_v44  ;;  %1918 = vmatprep.mubr.f32.mxu1 %v4451_v23  ;;  %v1163_v23 = vld [vmem:[#allocation13 + $0x460] sm:$0xff]  ;;  %v1161_v44 = vld [vmem:[#allocation13 + $0x450] sm:$0xff] }
 0x1d8   : > { %1694 = vmatmul.mubr.f32.gmra.mxu0 %v3401_v36  ;;  %1919 = vmatmul.mubr.f32.gmra.mxu1 %v4504_v41  ;;  %v3402_v41 = vld [vmem:[%s4294_s23 + $0x18] sm:$0xff]  ;;  %s6130_s23 = sld [smem:[#allocation84_spill]] }
 0x1d9   : > { %1698 = vmatprep.mubr.f32.mxu0 %v4529_v50  ;;  %1923 = vmatprep.mubr.f32.mxu1 %v4490_v37  ;;  %v6131_v36 = vld [vmem:[#allocation50_spill] sm:$0xff] }
 0x1da   : > { %3111 = vmatprep.subr.mxu0 %v1165_v12  ;;  %3190 = vmatprep.subr.mxu1 %v1165_v12 }
 0x1db   : > { %3112 = vmatpush3.msra.mxu0 %v1165_v12  ;;  %3206 = vmatpush3.msra.mxu1 %v1165_v12 }
 0x1dc   : > { %1699 = vmatmul.mubr.f32.gmra.mxu0 %v4448_v22  ;;  %2967 = vmatmul.mubr.msk.f32.gmra.mxu1 %vm3059_vm4, %v4523_v49  ;;  %v1162_v22 = vld [vmem:[#allocation13 + $0x458] sm:$0xff] }
 0x1dd   : > { %2935 = vmatprep.mubr.msk.f32.mxu0 %vm3060_vm5, %v4555_v58  ;;  %1928 = vmatprep.mubr.f32.mxu1 %v4493_v38  ;;  %v1158_v49 = vld [vmem:[#allocation13 + $0x438] sm:$0xff] }
 0x1de   : > { %3113 = vmatprep.subr.mxu0 %v1164_v35  ;;  %3191 = vmatprep.subr.mxu1 %v1164_v35 }
 0x1df   : > { %3114 = vmatpush3.msra.mxu0 %v1164_v35  ;;  %3207 = vmatpush3.msra.mxu1 %v1164_v35  ;;  %v6133_v35 = vld [vmem:[#allocation49_spill] sm:$0xff] }
 0x1e0   : > { %1704 = vmatmul.mubr.f32.gmra.mxu0 %v3402_v41  ;;  %1929 = vmatmul.mubr.f32.gmra.mxu1 %v4547_v55  ;;  %v740_v55 = vstv %s739_s3  ;;  %s3601_s3 = sshll.u32 %s3837_s6, 4  ;;  %s3602_s3 = int_to_ptr.vmem [resolvable:$false] %s3601_s3 }
 0x1e1   : > { %1708 = vmatprep.mubr.f32.mxu0 %v4573_v3  ;;  %1933 = vmatprep.mubr.f32.mxu1 %v4532_v51  ;;  %vm5204_vm6 = vcmp.eq.s32.totalorder %v740_v55, 1  ;;  %s3603_s5 = scalar_lea.vmem %s3602_s3, 4096  ;;  %p3604_p5 = scmp.lt.s32.totalorder %s5763_s17, %s3602_s3 }
 0x1e2   : > { %3115 = vmatprep.subr.mxu0 %v1163_v23  ;;  %3192 = vmatprep.subr.mxu1 %v1163_v23  ;;  %vm2978_vm7 = vmneg %vm5204_vm6 }
 0x1e3   : > { %3116 = vmatpush3.msra.mxu0 %v1163_v23  ;;  %3208 = vmatpush3.msra.mxu1 %v1163_v23 }
 0x1e4   : > { %1709 = vmatmul.mubr.f32.gmra.mxu0 %v4490_v37  ;;  %2969 = vmatmul.mubr.msk.f32.gmra.mxu1 %vm3059_vm4, %v4567_v2  ;;  %v1160_v37 = vld [vmem:[#allocation13 + $0x448] sm:$0xff]  ;;  %v737_v2 = vld [vmem:[%s585_s8] sm:$0xff] }
 0x1e5   : > { %2937 = vmatprep.mubr.msk.f32.mxu0 %vm3060_vm5, %v4599_v11  ;;  %1938 = vmatprep.mubr.f32.mxu1 %v4535_v52 }
 0x1e6   : > { %3117 = vmatprep.subr.mxu0 %v1162_v22  ;;  %3193 = vmatprep.subr.mxu1 %v1162_v22 }
 0x1e7   : > { %3118 = vmatpush3.msra.mxu0 %v1162_v22  ;;  %3209 = vmatpush3.msra.mxu1 %v1162_v22 }
 0x1e8   : > { %1714 = vmatmul.mubr.f32.gmra.mxu0 %v4493_v38  ;;  %1939 = vmatmul.mubr.f32.gmra.mxu1 %v4591_v8  ;;  %v1159_v38 = vld [vmem:[#allocation13 + $0x440] sm:$0xff] }
 0x1e9   : > { %1718 = vmatprep.mubr.f32.mxu0 %v4617_v17  ;;  %1943 = vmatprep.mubr.f32.mxu1 %v4576_v4  ;;  %v1155_v8 = vld [vmem:[#allocation13 + $0x420] sm:$0xff] }
 0x1ea   : > { %3119 = vmatprep.subr.mxu0 %v1161_v44  ;;  %3194 = vmatprep.subr.mxu1 %v1161_v44 }
 0x1eb   : > { %3120 = vmatpush3.msra.mxu0 %v1161_v44  ;;  %3210 = vmatpush3.msra.mxu1 %v1161_v44 }
 0x1ec   : > { %1719 = vmatmul.mubr.f32.gmra.mxu0 %v4532_v51  ;;  %2971 = vmatmul.mubr.msk.f32.gmra.mxu1 %vm3059_vm4, %v4611_v16  ;;  %v1157_v51 = vld [vmem:[#allocation13 + $0x430] sm:$0xff]  ;;  %v821_v16 = vrot.slane %v4708_v62, 1 }
 0x1ed   : > { %2939 = vmatprep.mubr.msk.f32.mxu0 %vm3060_vm5, %v4643_v28  ;;  %1948 = vmatprep.mubr.f32.mxu1 %v4579_v5 }
 0x1ee   : > { %3121 = vmatprep.subr.mxu0 %v1160_v37  ;;  %3195 = vmatprep.subr.mxu1 %v1160_v37 }
 0x1ef   : > { %3122 = vmatpush3.msra.mxu0 %v1160_v37  ;;  %3211 = vmatpush3.msra.mxu1 %v1160_v37 }
 0x1f0   : > { %1724 = vmatmul.mubr.f32.gmra.mxu0 %v4535_v52  ;;  %1949 = vmatmul.mubr.f32.gmra.mxu1 %v4635_v25  ;;  %v1156_v52 = vld [vmem:[#allocation13 + $0x428] sm:$0xff]  ;;  %v5218_v25 = vsel %vm5204_vm6, 0.0, %v737_v2 }
 0x1f1   : > { %1728 = vmatprep.mubr.f32.mxu0 %v4661_v34  ;;  %1953 = vmatprep.mubr.f32.mxu1 %v4620_v19 }
 0x1f2   : > { %3123 = vmatprep.subr.mxu0 %v1159_v38  ;;  %3196 = vmatprep.subr.mxu1 %v1159_v38 }
 0x1f3   : > { %3124 = vmatpush3.msra.mxu0 %v1159_v38  ;;  %3212 = vmatpush3.msra.mxu1 %v1159_v38  ;;  %v6134_v38 = vld [vmem:[#allocation46_spill] sm:$0xff] }
 0x1f4   : > { %1729 = vmatmul.mubr.f32.gmra.mxu0 %v4576_v4  ;;  %2973 = vmatmul.mubr.msk.f32.gmra.mxu1 %vm3059_vm4, %v4655_v33 }
 0x1f5   : > { %2941 = vmatprep.mubr.msk.f32.mxu0 %vm3060_vm5, %v4687_v48  ;;  %1958 = vmatprep.mubr.f32.mxu1 %v4623_v20 }
 0x1f6   : > { %3125 = vmatprep.subr.mxu0 %v1158_v49  ;;  %3197 = vmatprep.subr.mxu1 %v1158_v49 }
 0x1f7   : > { %3126 = vmatpush3.msra.mxu0 %v1158_v49  ;;  %3213 = vmatpush3.msra.mxu1 %v1158_v49 }
 0x1f8   : > { %1734 = vmatmul.mubr.f32.gmra.mxu0 %v4579_v5  ;;  %1959 = vmatmul.mubr.f32.gmra.mxu1 %v4679_v45  ;;  %v738_v5 = vld [vmem:[%s585_s8 + $0x8] sm:$0xff]  ;;  %v6127_v45 = vld [vmem:[#allocation45_spill] sm:$0xff] }
 0x1f9   : > { %1738 = vmatprep.mubr.f32.mxu0 %v4705_v61  ;;  %1963 = vmatprep.mubr.f32.mxu1 %v4664_v39  ;;  %v5222_v33 = vsel %vm5204_vm6, 0.0, %v738_v5 }
 0x1fa   : > { %3127 = vmatprep.subr.mxu0 %v1157_v51  ;;  %3198 = vmatprep.subr.mxu1 %v1157_v51  ;;  %v765_v54 = vrot.slane %v5222_v33, 7 }
 0x1fb   : > { %3128 = vmatpush3.msra.mxu0 %v1157_v51  ;;  %3214 = vmatpush3.msra.mxu1 %v1157_v51  ;;  %v6136_v51 = vld [vmem:[#allocation56_spill] sm:$0xff] }
 0x1fc   : > { %1739 = vmatmul.mubr.f32.gmra.mxu0 %v4620_v19  ;;  %2975 = vmatmul.mubr.msk.f32.gmra.mxu1 %vm3059_vm4, %v4699_v59  ;;  %v831_v19 = vrot.slane %v4711_v1, 1  ;;  %v6128_v59 = vld [vmem:[#allocation48_spill] sm:$0xff] }
 0x1fd   : > { %2943 = vmatprep.mubr.msk.f32.mxu0 %vm3060_vm5, %v4731_v13  ;;  %1968 = vmatprep.mubr.f32.mxu1 %v4667_v40 }
 0x1fe   : > { %3129 = vmatprep.subr.mxu0 %v1156_v52  ;;  %3199 = vmatprep.subr.mxu1 %v1156_v52  ;;  %v5236_v10 = vsel %vm833_vm2, %v821_v16, %v831_v19  ;;  %v5250_v32 = vsel %vm833_vm2, %v831_v19, %v821_v16  ;;  %v6138_v19 = vld [vmem:[#allocation55_spill] sm:$0xff] }
 0x1ff   : > { %3130 = vmatpush3.msra.mxu0 %v1156_v52  ;;  %3215 = vmatpush3.msra.mxu1 %v1156_v52  ;;  %v6137_v52 = vld [vmem:[#allocation51_spill] sm:$0xff] }
 0x200   : > { %1744 = vmatmul.mubr.f32.gmra.mxu0 %v4623_v20  ;;  %1969 = vmatmul.mubr.f32.gmra.mxu1 %v4723_v9  ;;  %v1154_v20 = vld [vmem:[#allocation13 + $0x418] sm:$0xff]  ;;  %v755_v9 = vrot.slane %v5218_v25, 7 }
 0x201   : > { %1748 = vmatprep.mubr.f32.mxu0 %v4755_v30  ;;  %1973 = vmatprep.mubr.f32.mxu1 %v4708_v62 }
 0x202   : > { %3131 = vmatprep.subr.mxu0 %v1155_v8  ;;  %3200 = vmatprep.subr.mxu1 %v1155_v8  ;;  %v786_v53 = vsel %vm766_vm1, %v765_v54, %v755_v9  ;;  %v776_v47 = vsel %vm766_vm1, %v755_v9, %v765_v54  ;;  %v6140_v9 = vld [vmem:[#allocation52_spill] sm:$0xff] }
 0x203   : > { %3132 = vmatpush3.msra.mxu0 %v1155_v8  ;;  %3216 = vmatpush3.msra.mxu1 %v1155_v8 }
 0x204   : > { %1749 = vmatmul.mubr.f32.gmra.mxu0 %v4664_v39  ;;  %2977 = vmatmul.mubr.msk.f32.gmra.mxu1 %vm3059_vm4, %v6127_v45  ;;  %v1153_v39 = vld [vmem:[#allocation13 + $0x410] sm:$0xff]  ;;  %v6139_v45 = vld [vmem:[#allocation60_spill] sm:$0xff] }
 0x205   : > { %2945 = vmatprep.mubr.msk.f32.mxu0 %vm3060_vm5, %v6128_v59  ;;  %1978 = vmatprep.mubr.f32.mxu1 %v4711_v1 }
 0x206   : > { %3133 = vmatprep.subr.mxu0 %v1154_v20  ;;  %3201 = vmatprep.subr.mxu1 %v1154_v20 }
 0x207   : > { %3134 = vmatpush3.msra.mxu0 %v1154_v20  ;;  %3217 = vmatpush3.msra.mxu1 %v1154_v20 }
 0x208   : > { %1754 = vmatmul.mubr.f32.gmra.mxu0 %v4667_v40  ;;  %1979 = vmatmul.mubr.f32.gmra.mxu1 %v6129_v6  ;;  %v1152_v40 = vld [vmem:[#allocation13 + $0x408] sm:$0xff] }
 0x209   : > { %1758 = vmatprep.mubr.f32.mxu0 %v5236_v10  ;;  %2979 = vmatprep.mubr.msk.f32.mxu1 %vm2978_vm7, %v737_v2 }
 0x20a   : > { %3135 = vmatprep.subr.mxu0 %v1153_v39  ;;  %3202 = vmatprep.subr.mxu1 %v1153_v39 }
 0x20b   : > { %3136 = vmatpush3.msra.mxu0 %v1153_v39  ;;  %3218 = vmatpush3.msra.mxu1 %v1153_v39 }
 0x20c   : > { %1759 = vmatmul.mubr.f32.gmra.mxu0 %v4708_v62  ;;  %2981 = vmatmul.mubr.msk.f32.gmra.mxu1 %vm3059_vm4, %v786_v53  ;;  %v5269_v62 = vld [vmem:[%s6130_s23] ss:$0 sm:$0xff] }
 0x20d   : > { %2947 = vmatprep.mubr.msk.f32.mxu0 %vm3060_vm5, %v5250_v32  ;;  %2983 = vmatprep.mubr.msk.f32.mxu1 %vm2978_vm7, %v738_v5 }
 0x20e   : > { %3137 = vmatprep.subr.mxu0 %v1152_v40  ;;  %3203 = vmatprep.subr.mxu1 %v1152_v40 }
 0x20f   : > { %3138 = vmatpush3.msra.mxu0 %v1152_v40  ;;  %3219 = vmatpush3.msra.mxu1 %v1152_v40 }
 0x210   : > { %1764 = vmatmul.mubr.f32.gmra.mxu0 %v4711_v1  ;;  %1989 = vmatmul.mubr.f32.gmra.mxu1 %v776_v47 }
 0x211   : > { %1768 = vmatprep.mubr.f32.mxu0 %v4841_v0  ;;  %1993 = vmatprep.mubr.f32.mxu1 %v4803_v43  ;;  %v6132_v0 = vld [vmem:[#allocation54_spill] sm:$0xff] }
 0x212   : > { %3139 = vmatprep.subr.mxu0 %v1151_v15  ;;  %3204 = vmatprep.subr.mxu1 %v1151_v15 }
 0x213   : > { %3140 = vmatpush3.msra.mxu0 %v1151_v15  ;;  %3220 = vmatpush3.msra.mxu1 %v1151_v15  ;;  %v6142_v15 = vld [vmem:[#allocation62_spill] sm:$0xff] }
 0x214   : > { %v1240_v46 = vpop.f32.mrf.mxu0  ;;  %v1465_v12 = vpop.f32.mrf.mxu1  ;;  %1769 = vmatmul.mubr.f32.gmra.mxu0 %v4758_v31  ;;  %2985 = vmatmul.mubr.msk.f32.gmra.mxu1 %vm3059_vm4, %v6131_v36  ;;  %v6135_v31 = vld [vmem:[#allocation53_spill] sm:$0xff] }
 0x215   : > { %v1241_v1 = vadd.f32 %v5269_v62, %v1240_v46  ;;  %2949 = vmatprep.mubr.msk.f32.mxu0 %vm3060_vm5, %v6132_v0  ;;  %1998 = vmatprep.mubr.f32.mxu1 %v6133_v35  ;;  %v6143_v46 = vld [vmem:[#allocation57_spill] sm:$0xff] }
 0x216   : > { %v1242_v23 = vpop.f32.mrf.mxu0  ;;  %v1467_v41 = vpop.f32.mrf.mxu1 }
 0x217   : > { %v5280_v22 = vadd.f32 %v1465_v12, %v1241_v1  ;;  %v6144_v41 = vld [vmem:[#allocation61_spill] sm:$0xff] }
 0x218   : > { %v1245_v44 = vpop.f32.mrf.mxu0  ;;  %v1470_v37 = vpop.f32.mrf.mxu1  ;;  %1774 = vmatmul.mubr.f32.gmra.mxu0 %v6134_v38  ;;  %1999 = vmatmul.mubr.f32.gmra.mxu1 %v6135_v31 }
 0x219   : > { %v1246_v49 = vadd.f32 %v5269_v62, %v1245_v44  ;;  %1778 = vmatprep.mubr.f32.mxu0 %v6136_v51  ;;  %2003 = vmatprep.mubr.f32.mxu1 %v6137_v52  ;;  %v6145_v44 = vld [vmem:[#allocation66_spill] sm:$0xff] }
 0x21a   : > { %v1247_v55 = vpop.f32.mrf.mxu0  ;;  %v1472_v2 = vpop.f32.mrf.mxu1 }
 0x21b   : > { %v5287_v5 = vadd.f32 %v1470_v37, %v1246_v49  ;;  %v6146_v37 = vld [vmem:[#allocation58_spill] sm:$0xff] }
 0x21c   : > { %v1250_v8 = vpop.f32.mrf.mxu0  ;;  %v1475_v16 = vpop.f32.mrf.mxu1  ;;  %1779 = vmatmul.mubr.f32.gmra.mxu0 %v4803_v43  ;;  %2987 = vmatmul.mubr.msk.f32.gmra.mxu1 %vm3059_vm4, %v6138_v19  ;;  %v6141_v43 = vld [vmem:[#allocation59_spill] sm:$0xff] }
 0x21d   : > { %v1251_v20 = vadd.f32 %v5269_v62, %v1250_v8  ;;  %2951 = vmatprep.mubr.msk.f32.mxu0 %vm3060_vm5, %v6139_v45  ;;  %2008 = vmatprep.mubr.f32.mxu1 %v6140_v9  ;;  %v6149_v19 = vld [vmem:[#allocation63_spill] sm:$0xff] }
 0x21e   : > { %v1252_v54 = vpop.f32.mrf.mxu0  ;;  %v1477_v39 = vpop.f32.mrf.mxu1 }
 0x21f   : > { %v5298_v6 = vadd.f32 %v1475_v16, %v1251_v20  ;;  %v6148_v16 = vld [vmem:[#allocation68_spill] sm:$0xff] }
 0x220   : > { %v1255_v53 = vpop.f32.mrf.mxu0  ;;  %v1480_v40 = vpop.f32.mrf.mxu1  ;;  %1784 = vmatmul.mubr.f32.gmra.mxu0 %v6133_v35  ;;  %2009 = vmatmul.mubr.f32.gmra.mxu1 %v6141_v43  ;;  %v6150_v43 = vld [vmem:[#allocation67_spill] sm:$0xff] }
 0x221   : > { %v1256_v47 = vadd.f32 %v5269_v62, %v1255_v53  ;;  %1788 = vmatprep.mubr.f32.mxu0 %v6142_v15  ;;  %2013 = vmatprep.mubr.f32.mxu1 %v6143_v46 }
 0x222   : > { %v1257_v12 = vpop.f32.mrf.mxu0  ;;  %v1482_v36 = vpop.f32.mrf.mxu1 }
 0x223   : > { %v5305_v1 = vadd.f32 %v1480_v40, %v1256_v47  ;;  %v6151_v47 = vld [vmem:[#allocation71_spill] sm:$0xff]  ;;  %v6152_v12 = vld [vmem:[#allocation64_spill] sm:$0xff] }
 0x224   : > { %v1260_v0 = vpop.f32.mrf.mxu0  ;;  %v1485_v23 = vpop.f32.mrf.mxu1  ;;  %1789 = vmatmul.mubr.f32.gmra.mxu0 %v6137_v52  ;;  %2989 = vmatmul.mubr.msk.f32.gmra.mxu1 %vm3059_vm4, %v6144_v41  ;;  %v6147_v52 = vld [vmem:[#allocation65_spill] sm:$0xff] }
 0x225   : > { %v1261_v35 = vadd.f32 %v5269_v62, %v1260_v0  ;;  %2953 = vmatprep.mubr.msk.f32.mxu0 %vm3060_vm5, %v6145_v44  ;;  %2018 = vmatprep.mubr.f32.mxu1 %v6146_v37 }
 0x226   : > { %v1262_v38 = vpop.f32.mrf.mxu0  ;;  %v1487_v31 = vpop.f32.mrf.mxu1 }
 0x227   : > { %v5316_v49 = vadd.f32 %v1485_v23, %v1261_v35  ;;  %v6154_v31 = vld [vmem:[#allocation73_spill] sm:$0xff] }
 0x228   : > { %v1265_v55 = vpop.f32.mrf.mxu0  ;;  %v1490_v2 = vpop.f32.mrf.mxu1  ;;  %1794 = vmatmul.mubr.f32.gmra.mxu0 %v6140_v9  ;;  %2019 = vmatmul.mubr.f32.gmra.mxu1 %v6147_v52 }
 0x229   : > { %v1266_v8 = vadd.f32 %v5269_v62, %v1265_v55  ;;  %1798 = vmatprep.mubr.f32.mxu0 %v6148_v16  ;;  %2023 = vmatprep.mubr.f32.mxu1 %v6149_v19  ;;  %v6155_v55 = vld [vmem:[#allocation69_spill] sm:$0xff] }
 0x22a   : > { %v1267_v20 = vpop.f32.mrf.mxu0  ;;  %v1492_v54 = vpop.f32.mrf.mxu1 }
 0x22b   : > { %v5323_v39 = vadd.f32 %v1490_v2, %v1266_v8 }
 0x22c   : > { %v1270_v53 = vpop.f32.mrf.mxu0  ;;  %v1495_v40 = vpop.f32.mrf.mxu1  ;;  %1799 = vmatmul.mubr.f32.gmra.mxu0 %v6143_v46  ;;  %2991 = vmatmul.mubr.msk.f32.gmra.mxu1 %vm3059_vm4, %v6150_v43  ;;  %v6153_v46 = vld [vmem:[#allocation70_spill] sm:$0xff] }
 0x22d   : > { %v1271_v9 = vadd.f32 %v5269_v62, %v1270_v53  ;;  %2955 = vmatprep.mubr.msk.f32.mxu0 %vm3060_vm5, %v6151_v47  ;;  %2028 = vmatprep.mubr.f32.mxu1 %v6152_v12  ;;  %v6156_v53 = vld [vmem:[#allocation72_spill] sm:$0xff] }
 0x22e   : > { %v1272_v36 = vpop.f32.mrf.mxu0  ;;  %v1497_v0 = vpop.f32.mrf.mxu1 }
 0x22f   : > { %v5334_v23 = vadd.f32 %v1495_v40, %v1271_v9  ;;  %v6157_v40 = vld [vmem:[#allocation74_spill] sm:$0xff] }
 0x230   : > { %v1275_v41 = vpop.f32.mrf.mxu0  ;;  %v1500_v35 = vpop.f32.mrf.mxu1  ;;  %1804 = vmatmul.mubr.f32.gmra.mxu0 %v6146_v37  ;;  %2029 = vmatmul.mubr.f32.gmra.mxu1 %v6153_v46 }
 0x231   : > { %v1276_v38 = vadd.f32 %v5269_v62, %v1275_v41  ;;  %1808 = vmatprep.mubr.f32.mxu0 %v6154_v31  ;;  %2033 = vmatprep.mubr.f32.mxu1 %v6155_v55 }
 0x232   : > { %v1277_v2 = vpop.f32.mrf.mxu0  ;;  %v1502_v52 = vpop.f32.mrf.mxu1 }
 0x233   : > { %v5341_v8 = vadd.f32 %v1500_v35, %v1276_v38  ;;  %v6158_v35 = vld [vmem:[#allocation75_spill] sm:$0xff] }
 0x234   : > { %v1280_v20 = vpop.f32.mrf.mxu0  ;;  %v1505_v54 = vpop.f32.mrf.mxu1  ;;  %1809 = vmatmul.mubr.f32.gmra.mxu0 %v6149_v19  ;;  %2993 = vmatmul.mubr.msk.f32.gmra.mxu1 %vm3059_vm4, %v6156_v53 }
 0x235   : > { %v1281_v37 = vadd.f32 %v5269_v62, %v1280_v20  ;;  %2957 = vmatprep.mubr.msk.f32.mxu0 %vm3060_vm5, %v6157_v40  ;;  %2038 = vmatprep.mubr.f32.mxu1 %v4977_v56 }
 0x236   : > { %v1282_v43 = vpop.f32.mrf.mxu0  ;;  %v1507_v9 = vpop.f32.mrf.mxu1 }
 0x237   : > { %v5352_v36 = vadd.f32 %v1505_v54, %v1281_v37  ;;  %v899_v37 = vld [vmem:[%s612_s2] sm:$0xff] }
 0x238   : > { %v1285_v0 = vpop.f32.mrf.mxu0  ;;  %v1510_v41 = vpop.f32.mrf.mxu1  ;;  %1814 = vmatmul.mubr.f32.gmra.mxu0 %v6152_v12  ;;  %2039 = vmatmul.mubr.f32.gmra.mxu1 %v5033_v29 }
 0x239   : > { %v1286_v19 = vadd.f32 %v5269_v62, %v1285_v0  ;;  %1818 = vmatprep.mubr.f32.mxu0 %v6158_v35  ;;  %2043 = vmatprep.mubr.f32.mxu1 %v5018_v60 }
 0x23a   : > { %v1287_v46 = vpop.f32.mrf.mxu0  ;;  %v1512_v38 = vpop.f32.mrf.mxu1 }
 0x23b   : > { %v5359_v2 = vadd.f32 %v1510_v41, %v1286_v19  ;;  %v971_v19 = vrot.slane %v5062_v42, 1  ;;  %v6159_v46 = vld [vmem:[#allocation76_spill] sm:$0xff] }
 0x23c   : > { %v1290_v52 = vpop.f32.mrf.mxu0  ;;  %v1515_v20 = vpop.f32.mrf.mxu1  ;;  %1819 = vmatmul.mubr.f32.gmra.mxu0 %v6155_v55  ;;  %2995 = vmatmul.mubr.msk.f32.gmra.mxu1 %vm3059_vm4, %v5053_v14  ;;  %v900_v55 = vld [vmem:[%s612_s2 + $0x8] sm:$0xff]  ;;  %v981_v38 = vrot.slane %v6159_v46, 1  ;;  %s3597_s2 = scalar_lea.vmem %s5763_s17, 2048 }
 0x23d   : > { %v1291_v29 = vadd.f32 %v5269_v62, %v1290_v52  ;;  %2959 = vmatprep.mubr.msk.f32.mxu0 %vm3060_vm5, %v5085_v26  ;;  %2048 = vmatprep.mubr.f32.mxu1 %v5021_v57  ;;  %v5385_v52 = vsel %vm5204_vm6, 0.0, %v899_v37  ;;  %p3598_p10 = scmp.ne.s32.totalorder %s5763_s17, %s3597_s2  ;;  %p3605_p13 = scmp.lt.s32.totalorder %s3603_s5, %s3597_s2 }
 0x23e   : > { %v1292_v12 = vpop.f32.mrf.mxu0  ;;  %v1517_v54 = vpop.f32.mrf.mxu1 }
 0x23f   : > { %v5370_v53 = vadd.f32 %v1515_v20, %v1291_v29  ;;  %v6161_v12 = vld [vmem:[#allocation77_spill] sm:$0xff]  ;;  %p3599_p2 = pnand %p3598_p10, %p6188_p11  ;;  %p3606_p6 = por %p3605_p13, %p3604_p5 }
 0x240   : > { %v1295_v43 = vpop.f32.mrf.mxu0  ;;  %v1520_v9 = vpop.f32.mrf.mxu1  ;;  %1824 = vmatmul.mubr.f32.gmra.mxu0 %v4977_v56  ;;  %2049 = vmatmul.mubr.f32.gmra.mxu1 %v5077_v7  ;;  %v5389_v56 = vsel %vm5204_vm6, 0.0, %v900_v55 }
 0x241   : > { %v1296_v14 = vadd.f32 %v5269_v62, %v1295_v43  ;;  %1828 = vmatprep.mubr.f32.mxu0 %v5103_v27  ;;  %2053 = vmatprep.mubr.f32.mxu1 %v5062_v42  ;;  %v912_v43 = vrot.slane %v5385_v52, 7  ;;  %p3600_p7 = pneg %p3599_p2 }
 0x242   : > { %v1297_v0 = vpop.f32.mrf.mxu0  ;;  %v1522_v41 = vpop.f32.mrf.mxu1 }
 0x243   : > { %v5391_v7 = vadd.f32 %v1520_v9, %v1296_v14  ;;  %v922_v9 = vrot.slane %v5389_v56, 7  ;;  %p3607_p9 = pnand %p3606_p6, %p3600_p7 }
 0x244   : > { %v1300_v20 = vpop.f32.mrf.mxu0  ;;  %v1525_v29 = vpop.f32.mrf.mxu1  ;;  %1829 = vmatmul.mubr.f32.gmra.mxu0 %v5018_v60  ;;  %2997 = vmatmul.mubr.msk.f32.gmra.mxu1 %vm3059_vm4, %v6161_v12  ;;  %v5406_v60 = vsel %vm833_vm2, %v971_v19, %v981_v38 }
 0x245   : > { %6160 = vst [vmem:[#allocation45_spill] sm:$0xff] %v5391_v7  ;;  %v1301_v54 = vadd.f32 %v5269_v62, %v1300_v20  ;;  %2961 = vmatprep.mubr.msk.f32.mxu0 %vm3060_vm5, %v5121_v24  ;;  %2058 = vmatprep.mubr.f32.mxu1 %v6159_v46 }
 0x246   : > { %v1302_v14 = vpop.f32.mrf.mxu0  ;;  %v1527_v0 = vpop.f32.mrf.mxu1 }
 0x247   : > { %v5408_v41 = vadd.f32 %v1525_v29, %v1301_v54  ;;  %v942_v14 = vsel %vm766_vm1, %v922_v9, %v912_v43  ;;  %v5421_v54 = vsel %vm833_vm2, %v981_v38, %v971_v19  ;;  %v932_v19 = vsel %vm766_vm1, %v912_v43, %v922_v9 }
 0x248   : > { %v1305_v12 = vpop.f32.mrf.mxu0  ;;  %v1530_v20 = vpop.f32.mrf.mxu1  ;;  %1834 = vmatmul.mubr.f32.gmra.mxu0 %v5021_v57  ;;  %2059 = vmatmul.mubr.f32.gmra.mxu1 %v5115_v21 }
 0x249   : > { %6162 = vst [vmem:[#allocation48_spill] sm:$0xff] %v5408_v41  ;;  %v1306_v7 = vadd.f32 %v5269_v62, %v1305_v12  ;;  %1838 = vmatprep.mubr.f32.mxu0 %v5406_v60  ;;  %2999 = vmatprep.mubr.msk.f32.mxu1 %vm2978_vm7, %v899_v37 }
 0x24a   : > { %v1307_v0 = vpop.f32.mrf.mxu0  ;;  %v1532_v29 = vpop.f32.mrf.mxu1 }
 0x24b   : > { %v5423_v57 = vadd.f32 %v1530_v20, %v1306_v7 }
 0x24c   : > { %v1310_v21 = vpop.f32.mrf.mxu0  ;;  %v1535_v41 = vpop.f32.mrf.mxu1  ;;  %1839 = vmatmul.mubr.f32.gmra.mxu0 %v5062_v42  ;;  %3001 = vmatmul.mubr.msk.f32.gmra.mxu1 %vm3059_vm4, %v942_v14 }
 0x24d   : > { %v1311_v37 = vadd.f32 %v5269_v62, %v1310_v21  ;;  %2963 = vmatprep.mubr.msk.f32.mxu0 %vm3060_vm5, %v5421_v54  ;;  %3003 = vmatprep.mubr.msk.f32.mxu1 %vm2978_vm7, %v900_v55 }
 0x24e   : > { %v1312_v38 = vpop.f32.mrf.mxu0  ;;  %v1537_v7 = vpop.f32.mrf.mxu1 }
 0x24f   : > { %v5437_v12 = vadd.f32 %v1535_v41, %v1311_v37 }
 0x250   : > { %v1315_v42 = vpop.f32.mrf.mxu0  ;;  %v1540_v20 = vpop.f32.mrf.mxu1  ;;  %1844 = vmatmul.mubr.f32.gmra.mxu0 %v6159_v46  ;;  %2069 = vmatmul.mubr.f32.gmra.mxu1 %v932_v19 }
 0x251   : > { %v1316_v14 = vadd.f32 %v5269_v62, %v1315_v42  ;;  %3141 = vmatprep.mubr.f32.mxu0 %v4529_v50  ;;  %3165 = vmatprep.mubr.f32.mxu1 %v6136_v51 }
 0x252   : > { %v1317_v4 = vpop.f32.mrf.mxu0  ;;  %v1542_v55 = vpop.f32.mrf.mxu1 }
 0x253   : > { %v5443_v0 = vadd.f32 %v1540_v20, %v1316_v14  ;;  %v832_v4 = vrot.slane %v5222_v33, 1 }
 0x254   : > { %v1320_v43 = vpop.f32.mrf.mxu0  ;;  %v1545_v9 = vpop.f32.mrf.mxu1  ;;  %3142 = vmatmul.mubr.msk.f32.vlgmr.msra.gmra.mxu0 %vm3060_vm5, %v4555_v58  ;;  %3166 = vmatmul.mubr.msk.f32.vlgmr.msra.gmra.mxu1 %vm3060_vm5, %v6139_v45 }
 0x255   : > { %v1321_v46 = vadd.f32 %v5269_v62, %v1320_v43  ;;  %3144 = vmatprep.mubr.f32.mxu0 %v4573_v3  ;;  %3168 = vmatprep.mubr.f32.mxu1 %v6142_v15 }
 0x256   : > { %v1322_v50 = vpop.f32.mrf.mxu0  ;;  %v1547_v51 = vpop.f32.mrf.mxu1 }
 0x257   : > { %v5454_v41 = vadd.f32 %v1545_v9, %v1321_v46 }
 0x258   : > { %v1325_v29 = vpop.f32.mrf.mxu0  ;;  %v1550_v21 = vpop.f32.mrf.mxu1  ;;  %3145 = vmatmul.mubr.msk.f32.gmra.mxu0 %vm3060_vm5, %v4599_v11  ;;  %3169 = vmatmul.mubr.msk.f32.gmra.mxu1 %vm3060_vm5, %v6145_v44 }
 0x259   : > { %v1326_v58 = vadd.f32 %v5269_v62, %v1325_v29  ;;  %3147 = vmatprep.mubr.f32.mxu0 %v4617_v17  ;;  %3171 = vmatprep.mubr.f32.mxu1 %v6148_v16 }
 0x25a   : > { %v1327_v3 = vpop.f32.mrf.mxu0  ;;  %v1552_v45 = vpop.f32.mrf.mxu1 }
 0x25b   : > { %v5465_v15 = vadd.f32 %v1550_v21, %v1326_v58 }
 0x25c   : > { %v1330_v37 = vpop.f32.mrf.mxu0  ;;  %v1555_v19 = vpop.f32.mrf.mxu1  ;;  %3148 = vmatmul.mubr.msk.f32.gmra.mxu0 %vm3060_vm5, %v4643_v28  ;;  %3172 = vmatmul.mubr.msk.f32.gmra.mxu1 %vm3060_vm5, %v6151_v47 }
 0x25d   : > { %v1331_v11 = vadd.f32 %v5269_v62, %v1330_v37  ;;  %3150 = vmatprep.mubr.f32.mxu0 %v4661_v34  ;;  %3174 = vmatprep.mubr.f32.mxu1 %v6154_v31 }
 0x25e   : > { %v1332_v17 = vpop.f32.mrf.mxu0  ;;  %v1557_v44 = vpop.f32.mrf.mxu1 }
 0x25f   : > { %v5476_v16 = vadd.f32 %v1555_v19, %v1331_v11 }
 0x260   : > { %v1335_v38 = vpop.f32.mrf.mxu0  ;;  %v1560_v7 = vpop.f32.mrf.mxu1  ;;  %3151 = vmatmul.mubr.msk.f32.gmra.mxu0 %vm3060_vm5, %v4687_v48  ;;  %3175 = vmatmul.mubr.msk.f32.gmra.mxu1 %vm3060_vm5, %v6157_v40  ;;  %v972_v40 = vrot.slane %v5385_v52, 1 }
 0x261   : > { %v1336_v28 = vadd.f32 %v5269_v62, %v1335_v38  ;;  %3153 = vmatprep.mubr.f32.mxu0 %v4705_v61  ;;  %3177 = vmatprep.mubr.f32.mxu1 %v6158_v35  ;;  %v822_v61 = vrot.slane %v5218_v25, 1 }
 0x262   : > { %v1337_v34 = vpop.f32.mrf.mxu0  ;;  %v1562_v47 = vpop.f32.mrf.mxu1 }
 0x263   : > { %v5487_v31 = vadd.f32 %v1560_v7, %v1336_v28  ;;  %v843_v33 = vsel %vm833_vm2, %v822_v61, %v832_v4 }
 0x264   : > { %v1340_v42 = vpop.f32.mrf.mxu0  ;;  %v1565_v20 = vpop.f32.mrf.mxu1  ;;  %3154 = vmatmul.mubr.msk.f32.gmra.mxu0 %vm3060_vm5, %v4731_v13  ;;  %3178 = vmatmul.mubr.msk.f32.gmra.mxu1 %vm3060_vm5, %v5085_v26  ;;  %v982_v13 = vrot.slane %v5389_v56, 1 }
 0x265   : > { %v1341_v48 = vadd.f32 %v5269_v62, %v1340_v42  ;;  %3156 = vmatprep.mubr.f32.mxu0 %v4755_v30  ;;  %3180 = vmatprep.mubr.f32.mxu1 %v5103_v27 }
 0x266   : > { %v1342_v35 = vpop.f32.mrf.mxu0  ;;  %v1567_v14 = vpop.f32.mrf.mxu1  ;;  %v992_v52 = vsel %vm833_vm2, %v972_v40, %v982_v13 }
 0x267   : > { %v5502_v55 = vadd.f32 %v1565_v20, %v1341_v48 }
 0x268   : > { %v1345_v43 = vpop.f32.mrf.mxu0  ;;  %v1570_v26 = vpop.f32.mrf.mxu1  ;;  %3157 = vmatmul.mubr.msk.f32.gmra.mxu0 %vm3060_vm5, %v6128_v59  ;;  %3181 = vmatmul.mubr.msk.f32.gmra.mxu1 %vm3060_vm5, %v5121_v24 }
 0x269   : > { %v1346_v30 = vadd.f32 %v5269_v62, %v1345_v43  ;;  %3159 = vmatprep.mubr.f32.mxu0 %v5236_v10  ;;  %3183 = vmatprep.mubr.f32.mxu1 %v5406_v60  ;;  %v853_v10 = vsel %vm833_vm2, %v832_v4, %v822_v61  ;;  %v1002_v60 = vsel %vm833_vm2, %v982_v13, %v972_v40 }
 0x26a   : > { %v1347_v27 = vpop.f32.mrf.mxu0  ;;  %v1572_v25 = vpop.f32.mrf.mxu1 }
 0x26b   : > { %v5517_v56 = vadd.f32 %v1570_v26, %v1346_v30 }
 0x26c   : > { %v1350_v59 = vpop.f32.mrf.mxu0  ;;  %v1575_v9 = vpop.f32.mrf.mxu1  ;;  %3160 = vmatmul.mubr.msk.f32.gmra.mxu0 %vm3060_vm5, %v5250_v32  ;;  %3184 = vmatmul.mubr.msk.f32.gmra.mxu1 %vm3060_vm5, %v5421_v54 }
 0x26d   : > { %v1351_v24 = vadd.f32 %v5269_v62, %v1350_v59  ;;  %3162 = vmatprep.mubr.f32.mxu0 %v843_v33  ;;  %3186 = vmatprep.mubr.f32.mxu1 %v992_v52 }
 0x26e   : > { %v1352_v46 = vpop.f32.mrf.mxu0  ;;  %v1577_v50 = vpop.f32.mrf.mxu1 }
 0x26f   : > { %v5530_v51 = vadd.f32 %v1575_v9, %v1351_v24 }
 0x270   : > { %v1355_v29 = vpop.f32.mrf.mxu0  ;;  %v1580_v32 = vpop.f32.mrf.mxu1  ;;  %3163 = vmatmul.mubr.msk.f32.gmra.mxu0 %vm3060_vm5, %v853_v10  ;;  %3187 = vmatmul.mubr.msk.f32.gmra.mxu1 %vm3060_vm5, %v1002_v60 }
 0x271   : > { %v1356_v54 = vadd.f32 %v5269_v62, %v1355_v29 }
 0x272   : > { %v1357_v21 = vpop.f32.mrf.mxu0  ;;  %v1582_v58 = vpop.f32.mrf.mxu1 }
 0x273   : > { %v5537_v3 = vadd.f32 %v1580_v32, %v1356_v54 }
 0x274   : > { %v1360_v63 = vpop.f32.mrf.mxu0  ;;  %v1585_v45 = vpop.f32.mrf.mxu1 }
 0x275   : > { %v1361_v37 = vadd.f32 %v5269_v62, %v1360_v63 }
 0x276   : > { %v1362_v19 = vpop.f32.mrf.mxu0  ;;  %v1587_v11 = vpop.f32.mrf.mxu1 }
 0x277   : > { %v5540_v17 = vadd.f32 %v1585_v45, %v1361_v37 }
 0x278   : > { %v1365_v44 = vpop.f32.mrf.mxu0  ;;  %v1590_v38 = vpop.f32.mrf.mxu1 }
 0x279   : > { %v1366_v7 = vadd.f32 %v5269_v62, %v1365_v44 }
 0x27a   : > { %v1367_v18 = vpop.f32.mrf.mxu0  ;;  %v1592_v28 = vpop.f32.mrf.mxu1 }
 0x27b   : > { %v5543_v34 = vadd.f32 %v1590_v38, %v1366_v7 }
 0x27c   : > { %v1370_v47 = vpop.f32.mrf.mxu0  ;;  %v1595_v42 = vpop.f32.mrf.mxu1 }
 0x27d   : > { %v1371_v20 = vadd.f32 %v5269_v62, %v1370_v47 }
 0x27e   : > { %v1372_v48 = vpop.f32.mrf.mxu0  ;;  %v1597_v61 = vpop.f32.mrf.mxu1 }
 0x27f   : > { %v5546_v40 = vadd.f32 %v1595_v42, %v1371_v20 }
 0x280   : > { %v1375_v35 = vpop.f32.mrf.mxu0  ;;  %v1600_v14 = vpop.f32.mrf.mxu1 }
 0x281   : > { %v1376_v4 = vadd.f32 %v5269_v62, %v1375_v35 }
 0x282   : > { %v1377_v13 = vpop.f32.mrf.mxu0  ;;  %v1602_v43 = vpop.f32.mrf.mxu1 }
 0x283   : > { %v5549_v26 = vadd.f32 %v1600_v14, %v1376_v4 }
 0x284   : > { %v1380_v30 = vpop.f32.mrf.mxu0  ;;  %v1605_v27 = vpop.f32.mrf.mxu1 }
 0x285   : > { %v1381_v25 = vadd.f32 %v5269_v62, %v1380_v30 }
 0x286   : > { %v1382_v33 = vpop.f32.mrf.mxu0  ;;  %v1607_v52 = vpop.f32.mrf.mxu1 }
 0x287   : > { %v5552_v59 = vadd.f32 %v1605_v27, %v1381_v25 }
 0x288   : > { %v1385_v9 = vpop.f32.mrf.mxu0  ;;  %v1610_v24 = vpop.f32.mrf.mxu1 }
 0x289   : > { %v1386_v10 = vadd.f32 %v5269_v62, %v1385_v9 }
 0x28a   : > { %v1387_v60 = vpop.f32.mrf.mxu0  ;;  %v1612_v46 = vpop.f32.mrf.mxu1 }
 0x28b   : > { %v5555_v50 = vadd.f32 %v1610_v24, %v1386_v10 }
 0x28c   : > { %v1390_v29 = vpop.f32.mrf.mxu0  ;;  %v1615_v32 = vpop.f32.mrf.mxu1 }
 0x28d   : > { %v1391_v54 = vadd.f32 %v5269_v62, %v1390_v29 }
 0x28e   : > { %v1392_v21 = vpop.f32.mrf.mxu0  ;;  %v1617_v58 = vpop.f32.mrf.mxu1 }
 0x28f   : > { %v5558_v63 = vadd.f32 %v1615_v32, %v1391_v54 }
 0x290   : > { %v1395_v45 = vpop.f32.mrf.mxu0  ;;  %v1620_v37 = vpop.f32.mrf.mxu1 }
 0x291   : > { %6163 = vst [vmem:[#allocation47_spill] sm:$0xff] %v5558_v63  ;;  %v1396_v19 = vadd.f32 %v5269_v62, %v1395_v45 }
 0x292   : > { %v1397_v11 = vpop.f32.mrf.mxu0  ;;  %v1622_v44 = vpop.f32.mrf.mxu1 }
 0x293   : > { %v5561_v38 = vadd.f32 %v1620_v37, %v1396_v19 }
 0x294   : > { %v1690_v7 = vpop.f32.mrf.mxu0  ;;  %v1915_v18 = vpop.f32.mrf.mxu1 }
 0x295   : > { %v1691_v28 = vadd.f32 %v1690_v7, %v5280_v22 }
 0x296   : > { %v1692_v47 = vpop.f32.mrf.mxu0  ;;  %v1917_v42 = vpop.f32.mrf.mxu1 }
 0x297   : > { %v5564_v20 = vadd.f32 %v1915_v18, %v1691_v28 }
 0x298   : > { %v1695_v48 = vpop.f32.mrf.mxu0  ;;  %v1920_v61 = vpop.f32.mrf.mxu1 }
 0x299   : > { %v1696_v35 = vadd.f32 %v1695_v48, %v5287_v5 }
 0x29a   : > { %v1697_v14 = vpop.f32.mrf.mxu0  ;;  %v1922_v4 = vpop.f32.mrf.mxu1 }
 0x29b   : > { %v5567_v13 = vadd.f32 %v1920_v61, %v1696_v35 }
 0x29c   : > { %v1700_v62 = vpop.f32.mrf.mxu0  ;;  %v1925_v43 = vpop.f32.mrf.mxu1 }
 0x29d   : > { %v1701_v30 = vadd.f32 %v1700_v62, %v5298_v6 }
 0x29e   : > { %v1702_v27 = vpop.f32.mrf.mxu0  ;;  %v1927_v25 = vpop.f32.mrf.mxu1 }
 0x29f   : > { %v5570_v33 = vadd.f32 %v1925_v43, %v1701_v30 }
 0x2a0   : > { %v1705_v22 = vpop.f32.mrf.mxu0  ;;  %v1930_v52 = vpop.f32.mrf.mxu1 }
 0x2a1   : > { %v1706_v9 = vadd.f32 %v1705_v22, %v5305_v1 }
 0x2a2   : > { %v1707_v24 = vpop.f32.mrf.mxu0  ;;  %v1932_v10 = vpop.f32.mrf.mxu1 }
 0x2a3   : > { %v5573_v60 = vadd.f32 %v1930_v52, %v1706_v9 }
 0x2a4   : > { %v1710_v5 = vpop.f32.mrf.mxu0  ;;  %v1935_v46 = vpop.f32.mrf.mxu1 }
 0x2a5   : > { %v1711_v29 = vadd.f32 %v1710_v5, %v5316_v49 }
 0x2a6   : > { %v1712_v32 = vpop.f32.mrf.mxu0  ;;  %v1937_v54 = vpop.f32.mrf.mxu1 }
 0x2a7   : > { %v5576_v21 = vadd.f32 %v1935_v46, %v1711_v29 }
 0x2a8   : > { %v1715_v6 = vpop.f32.mrf.mxu0  ;;  %v1940_v58 = vpop.f32.mrf.mxu1 }
 0x2a9   : > { %v1716_v45 = vadd.f32 %v1715_v6, %v5323_v39  ;;  %v6165_v6 = vld [vmem:[#allocation45_spill] sm:$0xff] }
 0x2aa   : > { %v1717_v37 = vpop.f32.mrf.mxu0  ;;  %v1942_v19 = vpop.f32.mrf.mxu1 }
 0x2ab   : > { %v5579_v11 = vadd.f32 %v1940_v58, %v1716_v45 }
 0x2ac   : > { %v1720_v1 = vpop.f32.mrf.mxu0  ;;  %v1945_v44 = vpop.f32.mrf.mxu1 }
 0x2ad   : > { %v1721_v7 = vadd.f32 %v1720_v1, %v5334_v23 }
 0x2ae   : > { %v1722_v18 = vpop.f32.mrf.mxu0  ;;  %v1947_v28 = vpop.f32.mrf.mxu1 }
 0x2af   : > { %v5582_v47 = vadd.f32 %v1945_v44, %v1721_v7  ;;  %v6167_v44 = vld [vmem:[#allocation48_spill] sm:$0xff] }
 0x2b0   : > { %v1725_v49 = vpop.f32.mrf.mxu0  ;;  %v1950_v42 = vpop.f32.mrf.mxu1 }
 0x2b1   : > { %v1726_v48 = vadd.f32 %v1725_v49, %v5341_v8 }
 0x2b2   : > { %v1727_v61 = vpop.f32.mrf.mxu0  ;;  %v1952_v35 = vpop.f32.mrf.mxu1 }
 0x2b3   : > { %v5585_v14 = vadd.f32 %v1950_v42, %v1726_v48 }
 0x2b4   : > { %v1730_v39 = vpop.f32.mrf.mxu0  ;;  %v1955_v4 = vpop.f32.mrf.mxu1 }
 0x2b5   : > { %v1731_v62 = vadd.f32 %v1730_v39, %v5352_v36 }
 0x2b6   : > { %v1732_v43 = vpop.f32.mrf.mxu0  ;;  %v1957_v30 = vpop.f32.mrf.mxu1 }
 0x2b7   : > { %v5588_v27 = vadd.f32 %v1955_v4, %v1731_v62 }
 0x2b8   : > { %v1735_v23 = vpop.f32.mrf.mxu0  ;;  %v1960_v25 = vpop.f32.mrf.mxu1 }
 0x2b9   : > { %v1736_v22 = vadd.f32 %v1735_v23, %v5359_v2 }
 0x2ba   : > { %v1737_v52 = vpop.f32.mrf.mxu0  ;;  %v1962_v9 = vpop.f32.mrf.mxu1 }
 0x2bb   : > { %v5591_v24 = vadd.f32 %v1960_v25, %v1736_v22 }
 0x2bc   : > { %v1740_v8 = vpop.f32.mrf.mxu0  ;;  %v1965_v10 = vpop.f32.mrf.mxu1 }
 0x2bd   : > { %v1741_v5 = vadd.f32 %v1740_v8, %v5370_v53 }
 0x2be   : > { %v1742_v46 = vpop.f32.mrf.mxu0  ;;  %v1967_v29 = vpop.f32.mrf.mxu1 }
 0x2bf   : > { %v5594_v32 = vadd.f32 %v1965_v10, %v1741_v5 }
 0x2c0   : > { %v1745_v36 = vpop.f32.mrf.mxu0  ;;  %v1970_v54 = vpop.f32.mrf.mxu1 }
 0x2c1   : > { %6164 = vst [vmem:[#allocation50_spill] sm:$0xff] %v5594_v32  ;;  %v1746_v58 = vadd.f32 %v1745_v36, %v6165_v6 }
 0x2c2   : > { %v1747_v45 = vpop.f32.mrf.mxu0  ;;  %v1972_v37 = vpop.f32.mrf.mxu1 }
 0x2c3   : > { %v5597_v19 = vadd.f32 %v1970_v54, %v1746_v58 }
 0x2c4   : > { %v1750_v2 = vpop.f32.mrf.mxu0  ;;  %v1975_v1 = vpop.f32.mrf.mxu1 }
 0x2c5   : > { %6166 = vst [vmem:[#allocation54_spill] sm:$0xff] %v5597_v19  ;;  %v1751_v7 = vadd.f32 %v1750_v2, %v6167_v44 }
 0x2c6   : > { %v1752_v18 = vpop.f32.mrf.mxu0  ;;  %v1977_v28 = vpop.f32.mrf.mxu1 }
 0x2c7   : > { %v5600_v49 = vadd.f32 %v1975_v1, %v1751_v7 }
 0x2c8   : > { %v1755_v53 = vpop.f32.mrf.mxu0  ;;  %v1980_v42 = vpop.f32.mrf.mxu1 }
 0x2c9   : > { %6168 = vst [vmem:[#allocation49_spill] sm:$0xff] %v5600_v49  ;;  %v1756_v48 = vadd.f32 %v1755_v53, %v5423_v57 }
 0x2ca   : > { %v1757_v61 = vpop.f32.mrf.mxu0  ;;  %v1982_v35 = vpop.f32.mrf.mxu1 }
 0x2cb   : > { %v5603_v39 = vadd.f32 %v1980_v42, %v1756_v48 }
 0x2cc   : > { %v1760_v4 = vpop.f32.mrf.mxu0  ;;  %v1985_v62 = vpop.f32.mrf.mxu1 }
 0x2cd   : > { %6169 = vst [vmem:[#allocation46_spill] sm:$0xff] %v5603_v39  ;;  %v1761_v43 = vadd.f32 %v1760_v4, %v5437_v12 }
 0x2ce   : > { %v1762_v30 = vpop.f32.mrf.mxu0  ;;  %v1987_v23 = vpop.f32.mrf.mxu1 }
 0x2cf   : > { %v5606_v25 = vadd.f32 %v1985_v62, %v1761_v43 }
 0x2d0   : > { %v1765_v22 = vpop.f32.mrf.mxu0  ;;  %v1990_v52 = vpop.f32.mrf.mxu1 }
 0x2d1   : > { %6170 = vst [vmem:[#allocation53_spill] sm:$0xff] %v5606_v25  ;;  %v1766_v9 = vadd.f32 %v1765_v22, %v5443_v0 }
 0x2d2   : > { %v1767_v8 = vpop.f32.mrf.mxu0  ;;  %v1992_v10 = vpop.f32.mrf.mxu1 }
 0x2d3   : > { %v5609_v5 = vadd.f32 %v1990_v52, %v1766_v9 }
 0x2d4   : > { %v1770_v57 = vpop.f32.mrf.mxu0  ;;  %v1995_v46 = vpop.f32.mrf.mxu1 }
 0x2d5   : > { %6171 = vst [vmem:[#allocation56_spill] sm:$0xff] %v5609_v5  ;;  %v1771_v29 = vadd.f32 %v1770_v57, %v5454_v41 }
 0x2d6   : > { %v1772_v36 = vpop.f32.mrf.mxu0  ;;  %v1997_v54 = vpop.f32.mrf.mxu1 }
 0x2d7   : > { %v5612_v6 = vadd.f32 %v1995_v46, %v1771_v29 }
 0x2d8   : > { %v1775_v12 = vpop.f32.mrf.mxu0  ;;  %v5614_v58 = vpop.f32.mrf.mxu1 }
 0x2da   : > { %v1777_v45 = vpop.f32.mrf.mxu0  ;;  %v2002_v37 = vpop.f32.mrf.mxu1 }
 0x2dc   : > { %v1780_v2 = vpop.f32.mrf.mxu0  ;;  %v5616_v1 = vpop.f32.mrf.mxu1 }
 0x2de   : > { %v1782_v0 = vpop.f32.mrf.mxu0  ;;  %v2007_v44 = vpop.f32.mrf.mxu1 }
 0x2e0   : > { %v1785_v7 = vpop.f32.mrf.mxu0  ;;  %v5618_v18 = vpop.f32.mrf.mxu1 }
 0x2e2   : > { %v1787_v28 = vpop.f32.mrf.mxu0  ;;  %v2012_v53 = vpop.f32.mrf.mxu1 }
 0x2e4   : > { %v1790_v41 = vpop.f32.mrf.mxu0  ;;  %v2015_v42 = vpop.f32.mrf.mxu1 }
 0x2e5   : > { %v1791_v32 = vadd.f32 %v1790_v41, %v5502_v55 }
 0x2e6   : > { %v1792_v48 = vpop.f32.mrf.mxu0  ;;  %v2017_v61 = vpop.f32.mrf.mxu1 }
 0x2e7   : > { %v2016_v55 = vadd.f32 %v2015_v42, %v1791_v32 }
 0x2e8   : > { %v1795_v35 = vpop.f32.mrf.mxu0  ;;  %v5620_v4 = vpop.f32.mrf.mxu1 }
 0x2ea   : > { %v1797_v62 = vpop.f32.mrf.mxu0  ;;  %v2022_v43 = vpop.f32.mrf.mxu1 }
 0x2ec   : > { %v1800_v30 = vpop.f32.mrf.mxu0  ;;  %v2025_v23 = vpop.f32.mrf.mxu1 }
 0x2ee   : > { %v1802_v22 = vpop.f32.mrf.mxu0  ;;  %v2027_v52 = vpop.f32.mrf.mxu1 }
 0x2f0   : > { %v1805_v9 = vpop.f32.mrf.mxu0  ;;  %v2030_v8 = vpop.f32.mrf.mxu1 }
 0x2f2   : > { %v1807_v10 = vpop.f32.mrf.mxu0  ;;  %v2032_v57 = vpop.f32.mrf.mxu1 }
 0x2f4   : > { %v1810_v46 = vpop.f32.mrf.mxu0  ;;  %v5622_v29 = vpop.f32.mrf.mxu1 }
 0x2f6   : > { %v1812_v36 = vpop.f32.mrf.mxu0  ;;  %v2037_v54 = vpop.f32.mrf.mxu1 }
 0x2f8   : > { %v5624_v45 = vpop.f32.mrf.mxu0  ;;  %v5626_v37 = vpop.f32.mrf.mxu1 }
 0x2fa   : > { %v1817_v0 = vpop.f32.mrf.mxu0  ;;  %v2042_v44 = vpop.f32.mrf.mxu1 }
 0x2fc   : > { %v1820_v28 = vpop.f32.mrf.mxu0  ;;  %v5628_v53 = vpop.f32.mrf.mxu1 }
 0x2fe   : > { %v1822_v48 = vpop.f32.mrf.mxu0  ;;  %v2047_v61 = vpop.f32.mrf.mxu1 }
 0x300   : > { %v5630_v62 = vpop.f32.mrf.mxu0  ;;  %v5632_v43 = vpop.f32.mrf.mxu1 }
 0x302   : > { %v1827_v22 = vpop.f32.mrf.mxu0  ;;  %v2052_v52 = vpop.f32.mrf.mxu1 }
 0x303   : > { %v1776_v22 = vadd.f32 %v1775_v12, %v5465_v15  ;;  %v1806_v15 = vadd.f32 %v1805_v9, %v5537_v3 }
 0x304   : > { %v5634_v10 = vpop.f32.mrf.mxu0  ;;  %v5636_v57 = vpop.f32.mrf.mxu1 }
 0x306   : > { %v1832_v36 = vpop.f32.mrf.mxu0  ;;  %v2057_v54 = vpop.f32.mrf.mxu1 }
 0x307   : > { %v1781_v36 = vadd.f32 %v1780_v2, %v5476_v16  ;;  %v1786_v54 = vadd.f32 %v1785_v7, %v5487_v31 }
 0x308   : > { %v5638_v25 = vpop.f32.mrf.mxu0  ;;  %v5640_v0 = vpop.f32.mrf.mxu1 }
 0x309   : > { %v2006_v16 = vadd.f32 %v5616_v1, %v1781_v36  ;;  %v2011_v31 = vadd.f32 %v5618_v18, %v1786_v54  ;;  %v1811_v18 = vadd.f32 %v1810_v46, %v5540_v17 }
 0x30a   : > { %v1837_v44 = vpop.f32.mrf.mxu0  ;;  %v2062_v5 = vpop.f32.mrf.mxu1 }
 0x30c   : > { %v5642_v48 = vpop.f32.mrf.mxu0  ;;  %v5644_v61 = vpop.f32.mrf.mxu1 }
 0x30d   : > { %6172 = vst [vmem:[#allocation51_spill] sm:$0xff] %v5642_v48  ;;  %6173 = vst [vmem:[#allocation55_spill] sm:$0xff] %v5644_v61  ;;  %v2001_v48 = vadd.f32 %v5614_v58, %v1776_v22  ;;  %v1796_v61 = vadd.f32 %v1795_v35, %v5517_v56 }
 0x30e   : > { %v1842_v49 = vpop.f32.mrf.mxu0  ;;  %v2067_v39 = vpop.f32.mrf.mxu1 }
 0x30f   : > { %v1801_v49 = vadd.f32 %v1800_v30, %v5530_v51  ;;  %v2021_v3 = vadd.f32 %v5620_v4, %v1796_v61 }
 0x310   : > { %v5647_v52 = vpop.f32.mrf.mxu0  ;;  %v5649_v63 = vpop.f32.mrf.mxu1 }
 0x311   : > { %6174 = vst [vmem:[#allocation60_spill] sm:$0xff] %v5649_v63  ;;  %v5663_v35 = vadd.f32 %v2025_v23, %v1801_v49 }
 0x312   : > { %v1847_v44 = vpop.f32.mrf.mxu0  ;;  %v2072_v5 = vpop.f32.mrf.mxu1 }
 0x314   : > { %v3143_v39 = vpop.f32.mrf.mxu0  ;;  %v3167_v12 = vpop.f32.mrf.mxu1 }
 0x315   : > { %v2146_v63 = vadd.f32 %v3143_v39, %v5567_v13  ;;  %v2226_v19 = vadd.f32 %v3167_v12, %v2001_v48  ;;  %v2031_v13 = vadd.f32 %v2030_v8, %v1806_v15 }
 0x316   : > { %v2140_v2 = vpop.f32.mrf.mxu0  ;;  %v2220_v58 = vpop.f32.mrf.mxu1 }
 0x317   : > { %v2358_v7 = vmax.f32 %v2146_v63, 0.0  ;;  %v2300_v56 = vsub.f32 %v2146_v63, %v2226_v19  ;;  %v2390_v41 = vmax.f32 %v2226_v19, 0.0  ;;  %v2141_v51 = vadd.f32 %v2140_v2, %v5564_v20 }
 0x318   : > { %v2221_v30 = vadd.f32 %v2220_v58, %v5612_v6  ;;  %v3146_v1 = vpop.f32.mrf.mxu0  ;;  %v3170_v9 = vpop.f32.mrf.mxu1  ;;  %v1816_v19 = vadd.f32 %v5624_v45, %v5543_v34  ;;  %v1821_v6 = vadd.f32 %v1820_v28, %v5546_v40  ;;  %v5685_v28 = vadd.f32 %v5622_v29, %v1811_v18 }
 0x319   : > { %2374 = vst [vmem:[%s5668_s4 + $0x8] sm:$0xff] %v2358_v7  ;;  %2406 = vst [vmem:[%s5672_s18 + $0x8] sm:$0xff] %v2390_v41  ;;  %v2357_v63 = vmax.f32 %v2141_v51, 0.0  ;;  %v2156_v20 = vadd.f32 %v3146_v1, %v5573_v60  ;;  %v2236_v32 = vadd.f32 %v3170_v9, %v2011_v31  ;;  %v1826_v60 = vadd.f32 %v5630_v62, %v5549_v26 }
 0x31a   : > { %v2299_v17 = vsub.f32 %v2141_v51, %v2221_v30  ;;  %v2389_v42 = vmax.f32 %v2221_v30, 0.0  ;;  %v2150_v4 = vpop.f32.mrf.mxu0  ;;  %v2230_v23 = vpop.f32.mrf.mxu1  ;;  %v2316_v22 = vand.u32 2147483647, %v2300_v56  ;;  %v2041_v5 = vadd.f32 %v5626_v37, %v1816_v19 }
 0x31b   : > { %2373 = vst [vmem:[%s5668_s4] sm:$0xff] %v2357_v63  ;;  %v2360_v8 = vmax.f32 %v2156_v20, 0.0  ;;  %v2302_v46 = vsub.f32 %v2156_v20, %v2236_v32  ;;  %v2392_v48 = vmax.f32 %v2236_v32, 0.0  ;;  %v2151_v61 = vadd.f32 %v2150_v4, %v5570_v33 }
 0x31c   : > { %v2315_v36 = vand.u32 2147483647, %v2299_v17  ;;  %2405 = vst [vmem:[%s5672_s18] sm:$0xff] %v2389_v42  ;;  %v2231_v34 = vadd.f32 %v2230_v23, %v2006_v16  ;;  %v3149_v40 = vpop.f32.mrf.mxu0  ;;  %v3173_v45 = vpop.f32.mrf.mxu1  ;;  %v5694_v2 = vadd.f32 %v5628_v53, %v1821_v6  ;;  %v1831_v41 = vadd.f32 %v5634_v10, %v5552_v59 }
 0x31d   : > { %2376 = vst [vmem:[%s5668_s4 + $0x18] sm:$0xff] %v2360_v8  ;;  %2408 = vst [vmem:[%s5672_s18 + $0x18] sm:$0xff] %v2392_v48  ;;  %v2359_v54 = vmax.f32 %v2151_v61, 0.0  ;;  %v2166_v44 = vadd.f32 %v3149_v40, %v5579_v11  ;;  %v2246_v33 = vadd.f32 %v3173_v45, %v2021_v3  ;;  %v2051_v11 = vadd.f32 %v5632_v43, %v1826_v60 }
 0x31e   : > { %v2331_v26 = vadd.f32 %v2316_v22, %v2315_v36  ;;  %v2301_v62 = vsub.f32 %v2151_v61, %v2231_v34  ;;  %v2391_v49 = vmax.f32 %v2231_v34, 0.0  ;;  %v2160_v15 = vpop.f32.mrf.mxu0  ;;  %v2240_v39 = vpop.f32.mrf.mxu1  ;;  %v2318_v53 = vand.u32 2147483647, %v2302_v46 }
 0x31f   : > { %2375 = vst [vmem:[%s5668_s4 + $0x10] sm:$0xff] %v2359_v54  ;;  %v2362_v12 = vmax.f32 %v2166_v44, 0.0  ;;  %v2304_v29 = vsub.f32 %v2166_v44, %v2246_v33  ;;  %v2394_v16 = vmax.f32 %v2246_v33, 0.0  ;;  %v2161_v31 = vadd.f32 %v2160_v15, %v5576_v21  ;;  %v6175_v33 = vld [vmem:[#allocation54_spill] sm:$0xff] }
 0x320   : > { %v2317_v58 = vand.u32 2147483647, %v2301_v62  ;;  %2407 = vst [vmem:[%s5672_s18 + $0x10] sm:$0xff] %v2391_v49  ;;  %v2241_v37 = vadd.f32 %v2240_v39, %v2016_v55  ;;  %v3152_v7 = vpop.f32.mrf.mxu0  ;;  %v3176_v56 = vpop.f32.mrf.mxu1  ;;  %v1836_v10 = vadd.f32 %v5638_v25, %v5555_v50  ;;  %v5710_v17 = vadd.f32 %v5636_v57, %v1831_v41 }
 0x321   : > { %2378 = vst [vmem:[%s5668_s4 + $0x28] sm:$0xff] %v2362_v12  ;;  %2410 = vst [vmem:[%s5672_s18 + $0x28] sm:$0xff] %v2394_v16  ;;  %v2361_v51 = vmax.f32 %v2161_v31, 0.0  ;;  %v2176_v3 = vadd.f32 %v3152_v7, %v5585_v14  ;;  %v2256_v21 = vadd.f32 %v3176_v56, %v2031_v13  ;;  %v2320_v23 = vand.u32 2147483647, %v2304_v29  ;;  %v6177_v16 = vld [vmem:[#allocation47_spill] sm:$0xff] }
 0x322   : > { %v2332_v30 = vadd.f32 %v2331_v26, %v2317_v58  ;;  %v2303_v1 = vsub.f32 %v2161_v31, %v2241_v37  ;;  %v2393_v43 = vmax.f32 %v2241_v37, 0.0  ;;  %v2170_v9 = vpop.f32.mrf.mxu0  ;;  %v2250_v55 = vpop.f32.mrf.mxu1  ;;  %v2061_v22 = vadd.f32 %v5640_v0, %v1836_v10  ;;  %v6178_v31 = vld [vmem:[#allocation51_spill] sm:$0xff] }
 0x323   : > { %2377 = vst [vmem:[%s5668_s4 + $0x20] sm:$0xff] %v2361_v51  ;;  %v2364_v18 = vmax.f32 %v2176_v3, 0.0  ;;  %v2306_v63 = vsub.f32 %v2176_v3, %v2256_v21  ;;  %v2396_v20 = vmax.f32 %v2256_v21, 0.0  ;;  %v2171_v59 = vadd.f32 %v2170_v9, %v5582_v47  ;;  %v6179_v51 = vld [vmem:[#allocation60_spill] sm:$0xff] }
 0x324   : > { %v2319_v14 = vand.u32 2147483647, %v2303_v1  ;;  %v2333_v32 = vadd.f32 %v2332_v30, %v2318_v53  ;;  %2409 = vst [vmem:[%s5672_s18 + $0x20] sm:$0xff] %v2393_v43  ;;  %v2251_v13 = vadd.f32 %v2250_v55, %v5663_v35  ;;  %v3155_v19 = vpop.f32.mrf.mxu0  ;;  %v3179_v6 = vpop.f32.mrf.mxu1  ;;  %v1846_v54 = vadd.f32 %v5647_v52, %v5561_v38  ;;  %v6176_v38 = vld [vmem:[#allocation50_spill] sm:$0xff] }
 0x325   : > { %2380 = vst [vmem:[%s5668_s4 + $0x38] sm:$0xff] %v2364_v18  ;;  %2412 = vst [vmem:[%s5672_s18 + $0x38] sm:$0xff] %v2396_v20  ;;  %v2363_v42 = vmax.f32 %v2171_v59, 0.0  ;;  %v2186_v4 = vadd.f32 %v3155_v19, %v5591_v24  ;;  %v2266_v47 = vadd.f32 %v3179_v6, %v2041_v5  ;;  %v2322_v26 = vand.u32 2147483647, %v2306_v63  ;;  %v6180_v53 = vld [vmem:[#allocation46_spill] sm:$0xff] }
 0x326   : > { %v2334_v50 = vadd.f32 %v2333_v32, %v2319_v14  ;;  %v2305_v25 = vsub.f32 %v2171_v59, %v2251_v13  ;;  %v2395_v8 = vmax.f32 %v2251_v13, 0.0  ;;  %v2180_v46 = vpop.f32.mrf.mxu0  ;;  %v2260_v35 = vpop.f32.mrf.mxu1  ;;  %v1841_v58 = vadd.f32 %v6178_v31, %v6177_v16  ;;  %v6181_v14 = vld [vmem:[#allocation49_spill] sm:$0xff] }
 0x327   : > { %2379 = vst [vmem:[%s5668_s4 + $0x30] sm:$0xff] %v2363_v42  ;;  %v2366_v48 = vmax.f32 %v2186_v4, 0.0  ;;  %v2308_v61 = vsub.f32 %v2186_v4, %v2266_v47  ;;  %v2398_v57 = vmax.f32 %v2266_v47, 0.0  ;;  %v2181_v60 = vadd.f32 %v2180_v46, %v5588_v27  ;;  %v6182_v47 = vld [vmem:[#allocation55_spill] sm:$0xff] }
 0x328   : > { %v2321_v36 = vand.u32 2147483647, %v2305_v25  ;;  %v2335_v24 = vadd.f32 %v2334_v50, %v2320_v23  ;;  %2411 = vst [vmem:[%s5672_s18 + $0x30] sm:$0xff] %v2395_v8  ;;  %v2261_v34 = vadd.f32 %v2260_v35, %v5685_v28  ;;  %v3158_v40 = vpop.f32.mrf.mxu0  ;;  %v3182_v45 = vpop.f32.mrf.mxu1  ;;  %v2071_v3 = vadd.f32 %v6179_v51, %v1846_v54  ;;  %v6183_v25 = vld [vmem:[#allocation56_spill] sm:$0xff] }
 0x329   : > { %2382 = vst [vmem:[%s5668_s4 + $0x48] sm:$0xff] %v2366_v48  ;;  %2414 = vst [vmem:[%s5672_s18 + $0x48] sm:$0xff] %v2398_v57  ;;  %v2365_v44 = vmax.f32 %v2181_v60, 0.0  ;;  %v2196_v5 = vadd.f32 %v3158_v40, %v6175_v33  ;;  %v2276_v27 = vadd.f32 %v3182_v45, %v2051_v11  ;;  %v2324_v43 = vand.u32 2147483647, %v2308_v61 }
 0x32a   : > { %v2336_v0 = vadd.f32 %v2335_v24, %v2321_v36  ;;  %v2307_v62 = vsub.f32 %v2181_v60, %v2261_v34  ;;  %v2397_v49 = vmax.f32 %v2261_v34, 0.0  ;;  %v2190_v15 = vpop.f32.mrf.mxu0  ;;  %v2270_v28 = vpop.f32.mrf.mxu1  ;;  %v2066_v23 = vadd.f32 %v6182_v47, %v1841_v58  ;;  %v6184_v24 = vld [vmem:[#allocation53_spill] sm:$0xff] }
 0x32b   : > { %2381 = vst [vmem:[%s5668_s4 + $0x40] sm:$0xff] %v2365_v44  ;;  %v2368_v39 = vmax.f32 %v2196_v5, 0.0  ;;  %v2310_v12 = vsub.f32 %v2196_v5, %v2276_v27  ;;  %v2400_v29 = vmax.f32 %v2276_v27, 0.0  ;;  %v2191_v52 = vadd.f32 %v2190_v15, %v6176_v38 }
 0x32c   : > { %v2323_v37 = vand.u32 2147483647, %v2307_v62  ;;  %v2337_v7 = vadd.f32 %v2336_v0, %v2322_v26  ;;  %2413 = vst [vmem:[%s5672_s18 + $0x40] sm:$0xff] %v2397_v49  ;;  %v2271_v11 = vadd.f32 %v2270_v28, %v5694_v2  ;;  %v3161_v56 = vpop.f32.mrf.mxu0  ;;  %v3185_v41 = vpop.f32.mrf.mxu1 }
 0x32d   : > { %2384 = vst [vmem:[%s5668_s4 + $0x58] sm:$0xff] %v2368_v39  ;;  %2416 = vst [vmem:[%s5672_s18 + $0x58] sm:$0xff] %v2400_v29  ;;  %v2367_v21 = vmax.f32 %v2191_v52, 0.0  ;;  %v2206_v30 = vadd.f32 %v3161_v56, %v6180_v53  ;;  %v2286_v1 = vadd.f32 %v3185_v41, %v2061_v22  ;;  %v2326_v35 = vand.u32 2147483647, %v2310_v12 }
 0x32e   : > { %v2338_v9 = vadd.f32 %v2337_v7, %v2323_v37  ;;  %v2309_v55 = vsub.f32 %v2191_v52, %v2271_v11  ;;  %v2399_v18 = vmax.f32 %v2271_v11, 0.0  ;;  %v2200_v63 = vpop.f32.mrf.mxu0  ;;  %v2280_v20 = vpop.f32.mrf.mxu1 }
 0x32f   : > { %2383 = vst [vmem:[%s5668_s4 + $0x50] sm:$0xff] %v2367_v21  ;;  %v2370_v2 = vmax.f32 %v2206_v30, 0.0  ;;  %v2312_v59 = vsub.f32 %v2206_v30, %v2286_v1  ;;  %v2402_v10 = vmax.f32 %v2286_v1, 0.0  ;;  %v2201_v32 = vadd.f32 %v2200_v63, %v6181_v14 }
 0x330   : > { %v2325_v13 = vand.u32 2147483647, %v2309_v55  ;;  %v2339_v19 = vadd.f32 %v2338_v9, %v2324_v43  ;;  %2415 = vst [vmem:[%s5672_s18 + $0x50] sm:$0xff] %v2399_v18  ;;  %v2281_v6 = vadd.f32 %v2280_v20, %v5710_v17  ;;  %v3164_v42 = vpop.f32.mrf.mxu0  ;;  %v3188_v4 = vpop.f32.mrf.mxu1 }
 0x331   : > { %2386 = vst [vmem:[%s5668_s4 + $0x68] sm:$0xff] %v2370_v2  ;;  %2418 = vst [vmem:[%s5672_s18 + $0x68] sm:$0xff] %v2402_v10  ;;  %v2369_v50 = vmax.f32 %v2201_v32, 0.0  ;;  %v2216_v8 = vadd.f32 %v3164_v42, %v6183_v25  ;;  %v2296_v46 = vadd.f32 %v3188_v4, %v2071_v3  ;;  %v2328_v26 = vand.u32 2147483647, %v2312_v59 }
 0x332   : > { %v2340_v48 = vadd.f32 %v2339_v19, %v2325_v13  ;;  %v2311_v61 = vsub.f32 %v2201_v32, %v2281_v6  ;;  %v2401_v57 = vmax.f32 %v2281_v6, 0.0  ;;  %v2210_v60 = vpop.f32.mrf.mxu0  ;;  %v2290_v22 = vpop.f32.mrf.mxu1 }
 0x333   : > { %2385 = vst [vmem:[%s5668_s4 + $0x60] sm:$0xff] %v2369_v50  ;;  %v2372_v17 = vmax.f32 %v2216_v8, 0.0  ;;  %v2404_v36 = vmax.f32 %v2296_v46, 0.0  ;;  %v2211_v34 = vadd.f32 %v2210_v60, %v6184_v24  ;;  %v2291_v40 = vadd.f32 %v2290_v22, %v2066_v23 }
 0x334   : > { %v2327_v45 = vand.u32 2147483647, %v2311_v61  ;;  %v2341_v54 = vadd.f32 %v2340_v48, %v2326_v35  ;;  %2417 = vst [vmem:[%s5672_s18 + $0x60] sm:$0xff] %v2401_v57  ;;  %v2314_v44 = vsub.f32 %v2216_v8, %v2296_v46 }
 0x335   : > { %2388 = vst [vmem:[%s5668_s4 + $0x78] sm:$0xff] %v2372_v17  ;;  %2420 = vst [vmem:[%s5672_s18 + $0x78] sm:$0xff] %v2404_v36  ;;  %v2371_v33 = vmax.f32 %v2211_v34, 0.0  ;;  %v2313_v5 = vsub.f32 %v2211_v34, %v2291_v40  ;;  %v2403_v27 = vmax.f32 %v2291_v40, 0.0 }
 0x336   : > { %v2342_v0 = vadd.f32 %v2341_v54, %v2327_v45  ;;  %v2330_v15 = vand.u32 2147483647, %v2314_v44 }
 0x337   : > { %2387 = vst [vmem:[%s5668_s4 + $0x70] sm:$0xff] %v2371_v33  ;;  %v2329_v62 = vand.u32 2147483647, %v2313_v5  ;;  %2419 = vst [vmem:[%s5672_s18 + $0x70] sm:$0xff] %v2403_v27 }
 0x338   : > { %v2343_v49 = vadd.f32 %v2342_v0, %v2328_v26 }
 0x33a   : > { %v2344_v28 = vadd.f32 %v2343_v49, %v2329_v62 }
 0x33c   : > { %v2345_v39 = vadd.f32 %v2344_v28, %v2330_v15 }
 0x33e   : > { %2346 = vadd.xlane.f32.xlu0 %v2345_v39 }
 0x33f   : > { %3610 = shalt.err (!%p3607_p9)
}
 0x340   : > { %s3611_s19 = scalar_lea.hbm %s5761_s16, 2048  ;;  %s3615_s29 = scalar_lea.hbm %s6187_s9, 8192 }
 0x341   : > { %p3612_p1 = scmp.ne.s32.totalorder %s5761_s16, %s3611_s19  ;;  %p3616_p12 = scmp.lt.s32.totalorder %s5761_s16, %s6187_s9 }
 0x342   : > { %p3617_p3 = scmp.lt.s32.totalorder %s3615_s29, %s3611_s19 }
 0x343   : > { %p3613_p4 = pnand %p3612_p1, %p6188_p11 }
 0x344   : > { %p3618_p0 = por %p3617_p3, %p3616_p12 }
 0x345   : > { %p3614_p8 = pneg %p3613_p4 }
 0x347   : > { %p3619_p10 = pnand %p3618_p0, %p3614_p8 }
 0x349   : > { %3622 = shalt.err (!%p3619_p10)
}
 0x34a   : > { %s3838_s24 = smov 128   ;;  %s3839_s2 = smov 8  }
 0x34b   : > { %3240 = dma.vmem_to_hbm [thread:$0]  (%p6188_p11), %s5763_s17, 2048, %s5761_s16, %s2427_s10, %s3838_s24, %s3838_s24, %s3839_s2  }
 0x34c   : > { %s6189_s5 = sld [smem:[#allocation85_spill]]  ;;  %s2448_s23 = sshll.u32 %s5668_s4, 4  ;;  %s5799_s23 = int_to_ptr.vmem [resolvable:$true] %s2448_s23 }
 0x34d   : > { %s2422_s18 = scalar_lea.sflag [#allocation4], %s4287_s13  ;;  %s3623_s29 = scalar_lea.vmem %s5799_s23, 2048 }
 0x34e   : > { %p3624_p2 = scmp.ne.s32.totalorder %s5799_s23, %s3623_s29  ;;  %s3840_s1 = smov [#allocation14]  }
 0x34f   : > { %s3627_s17 = sshll.u32 %s3840_s1, 4  ;;  %s3628_s17 = int_to_ptr.vmem [resolvable:$false] %s3627_s17 }
 0x350   : > { %p3625_p7 = pnand %p3624_p2, %p6188_p11  ;;  %s3629_s22 = scalar_lea.vmem %s3628_s17, 4096 }
 0x351   : > { %p3630_p13 = scmp.lt.s32.totalorder %s5799_s23, %s3628_s17  ;;  %p3631_p6 = scmp.lt.s32.totalorder %s3629_s22, %s3623_s29 }
 0x352   : > { %s5796_s19 = scalar_lea.hbm %s6189_s5, %s3042_s28  ;;  %p3626_p5 = pneg %p3625_p7 }
 0x353   : > { %p3632_p9 = por %p3631_p6, %p3630_p13 }
 0x355   : > { %p3633_p1 = pnand %p3632_p9, %p3626_p5 }
 0x357   : > { %3636 = shalt.err (!%p3633_p1)
}
 0x358   : > { %s3637_s4 = scalar_lea.hbm %s5796_s19, 2048  ;;  %s3641_s8 = scalar_lea.hbm %s6189_s5, 8192 }
 0x359   : > { %p3638_p4 = scmp.ne.s32.totalorder %s5796_s19, %s3637_s4  ;;  %p3642_p3 = scmp.lt.s32.totalorder %s5796_s19, %s6189_s5 }
 0x35a   : > { %p3643_p0 = scmp.lt.s32.totalorder %s3641_s8, %s3637_s4 }
 0x35b   : > { %p3639_p8 = pnand %p3638_p4, %p6188_p11 }
 0x35c   : > { %p3644_p10 = por %p3643_p0, %p3642_p3 }
 0x35d   : > { %p3640_p12 = pneg %p3639_p8 }
 0x35f   : > { %p3645_p2 = pnand %p3644_p10, %p3640_p12 }
 0x361   : > { %3648 = shalt.err (!%p3645_p2)
}
 0x362   : > { %3239 = dma.vmem_to_hbm [thread:$0]  (%p6188_p11), %s5799_s23, 2048, %s5796_s19, %s2422_s18, %s3838_s24, %s3838_s24, %s3839_s2  }
 0x363   : > { %s2822_s29 = sshll.u32 %s4287_s13, 3  ;;  %s3047_s1 = sshll.u32 %s6185_s30, 1 }
 0x364   : > { %s2481_s17 = sadd.s32 %s6088_s27, %s3047_s1  ;;  %s687_s22 = scalar_lea.vmem [#allocation17], %s2822_s29 }
 0x365   : > { %s2485_s4 = sshll.u32 %s687_s22, 4  ;;  %s3048_s28 = sshll.u32 %s2481_s17, 7  ;;  %s5828_s4 = int_to_ptr.vmem [resolvable:$true] %s2485_s4 }
 0x366   : > { %s6190_s23 = sld [smem:[#allocation87_spill]]  ;;  %s3649_s16 = scalar_lea.vmem %s5828_s4, 128 }
 0x367   : > { %p3650_p7 = scmp.ne.s32.totalorder %s5828_s4, %s3649_s16  ;;  %s3841_s13 = smov [#allocation17]  }
 0x368   : > { %s3653_s27 = sshll.u32 %s3841_s13, 4  ;;  %s3654_s27 = int_to_ptr.vmem [resolvable:$false] %s3653_s27 }
 0x369   : > { %p3651_p5 = pnand %p3650_p7, %p6188_p11  ;;  %s3655_s30 = scalar_lea.vmem %s3654_s27, 256 }
 0x36a   : > { %p3656_p6 = scmp.lt.s32.totalorder %s5828_s4, %s3654_s27  ;;  %p3657_p9 = scmp.lt.s32.totalorder %s3655_s30, %s3649_s16 }
 0x36b   : > { %p3652_p13 = pneg %p3651_p5 }
 0x36c   : > { %s6191_s8 = smov %s6190_s23  ;;  %s2483_s18 = scalar_lea.hbm %s6190_s23, %s3048_s28 }
 0x36d   : > { %p3658_p1 = por %p3657_p9, %p3656_p6 }
 0x36f   : > { %p3659_p4 = pnand %p3658_p1, %p3652_p13 }
 0x3c7   : > { %v2347_v12 = vpop.xlane.xlu0 %2346 }
 0x3c8   : > { %v2348_v29 = vrot.slane %v2347_v12, 4 }
 0x3ca   : > { %v2349_v38 = vadd.f32 %v2348_v29, %v2347_v12 }
 0x3cc   : > { %v2350_v52 = vrot.slane %v2349_v38, 2 }
 0x3ce   : > { %v2351_v16 = vadd.f32 %v2350_v52, %v2349_v38 }
 0x3d0   : > { %v2352_v31 = vrot.slane %v2351_v16, 1 }
 0x3d2   : > { %v2353_v58 = vadd.f32 %v2352_v31, %v2351_v16 }
 0x3d4   : > { %3221 = vpush %v2353_v58 }
 0x405   : > { %s3222_s24 = spop %3221 }
 0x406   : > { %v2355_v37 = vstv %s3222_s24 }
 0x407   : > { %2356 = vst [vmem:[%s687_s22] sm:$0xff] %v2355_v37 }
 0x408   : > { %3662 = shalt.err (!%p3659_p4)
}
 0x409   : > { %s3663_s6 = scalar_lea.hbm %s2483_s18, 128  ;;  %s3667_s1 = scalar_lea.hbm %s6191_s8, 512 }
 0x40a   : > { %p3664_p8 = scmp.ne.s32.totalorder %s2483_s18, %s3663_s6  ;;  %p3668_p0 = scmp.lt.s32.totalorder %s2483_s18, %s6191_s8 }
 0x40b   : > { %p3669_p10 = scmp.lt.s32.totalorder %s3667_s1, %s3663_s6 }
 0x40c   : > { %p3665_p12 = pnand %p3664_p8, %p6188_p11 }
 0x40d   : > { %p3670_p2 = por %p3669_p10, %p3668_p0 }
 0x40e   : > { %p3666_p3 = pneg %p3665_p12 }
 0x410   : > { %p3671_p7 = pnand %p3670_p2, %p3666_p3 }
 0x412   : > { %3674 = shalt.err (!%p3671_p7)
}
 0x413   : > { %3241 = dma.vmem_to_hbm [thread:$0]  (%p6188_p11), %s5828_s4, 128, %s2483_s18, %s2427_s10  }
 0x414 PF: > { %s6192_s28 = sld [smem:[#allocation29_spill]]  ;;  %p3281_p5 = scmp.ge.s32.totalorder %s3825_s26, 2 }
 0x415   : > { %s6193_s24 = sld [smem:[#allocation44_spill]] }
 0x41a   : > { %s2497_s2 = sand.u32 1, %s6192_s28  }
 0x41b   : > { %p6194_p13 = scmp.ne.s32.totalorder %s6193_s24, 0  ;;  %s2498_s19 = scalar_lea.sflag [#allocation4], %s2497_s2 }
 0x41d   : > { %p3269_p6 = pnand %p3281_p5, %p6194_p13 }
 0x41f   : > { %p3270_p9 = pneg %p3269_p6 }
 0x421   : > { %3760 = dma.done.wait (%p3270_p9), %s2498_s19, 2048  }
 0x422   : > { %3762 = vsyncadd (%p3270_p9), %s2498_s19, 4294965248  ;;  %s6195_s23 = sadd.s32 4294967294, %s3825_s26  }
 0x423   : > { %s2506_s16 = sand.u32 1, %s6195_s23  }
 0x424   : > { %s2507_s25 = scalar_lea.sflag [#allocation16], %s2506_s16 }
 0x425   : > { %3764 = dma.done.wait (%p3270_p9), %s2507_s25, 2176  }
 0x426   : > { %3766 = vsyncadd (%p3270_p9), %s2507_s25, 4294965120  ;;  %s39_s26 = sadd.s32 1, %s3825_s26   ;;  %s6197_s16 = sld [smem:[#allocation27_spill]] }
 0x427   : > { %p5858_p11 = scmp.ge.s32.totalorder %s39_s26, 6   ;;  %s6198_s17 = sld [smem:[#allocation28_spill]] }
 0x428   : > { %s6199_s18 = sld [smem:[#allocation40_spill]]  ;;  %s6206_s13 = smov %s3777_s14 }
 0x429   : > { %s6200_s19 = sld [smem:[#allocation30_spill]]  ;;  %s6207_s14 = smov %s3781_s15 }
 0x42a   : > { %s6201_s10 = sld [smem:[#allocation41_spill]]  ;;  %s6208_s15 = smov %s4187_s20 }
 0x42b   : > { %s6202_s22 = sld [smem:[#allocation33_spill]]  ;;  %s6209_s20 = smov %s3805_s21 }
 0x42c   : > { %s6203_s23 = sld [smem:[#allocation34_spill]]  ;;  %38 = sbr.rel (!%p5858_p11) target bundleno = 29 (0x1d), region = 196 }
 0x42d   : > { %s6204_s24 = sld [smem:[#allocation36_spill]] }
 0x42e   : > { %s6205_s25 = sld [smem:[#allocation37_spill]] }
 0x430   : > { %s6210_s21 = smov %s6201_s10 }
 0x431   :  { %2521 = vsyncpa [#allocation3], 1 }
 0x432   :  { %2523 = vsyncpa [#allocation3 + $0x1], 1 }
 0x433   :  { %2524 = vsyncpa [#allocation6], 1 }
 0x434   :  { %2526 = vsyncpa [#allocation6 + $0x1], 1 }
 0x435   :  { %2527 = vsyncpa [#allocation9], 1 }
 0x436   :  { %2529 = vsyncpa [#allocation9 + $0x1], 1 }
 0x437   :  { %2530 = vsyncpa [#allocation12], 1 }
 0x438   :  { %2532 = vsyncpa [#allocation12 + $0x1], 1 }
 0x439   :  { %2533 = vsyncpa [#allocation4], 1 }
 0x43a   :  { %2535 = vsyncpa [#allocation4 + $0x1], 1 }
 0x43b   :  { %2536 = vsyncpa [#allocation16], 1 }
 0x43c   :  { %2538 = vsyncpa [#allocation16 + $0x1], 1 }

</bundles_post_ra>
